<compile_context>
chip_gen: v7x
topology: tpu7x:2x2x1
jax: 0.10.0
libtpu: 0.0.40
codegen_flags: <defaults>
</compile_context>

<pallas_src>
import math

import numpy as np
import jax
import jax.numpy as jnp
from jax.experimental import pallas as pl
from jax.experimental.pallas import tpu as pltpu


IN_FEATURES = 1
HIDDEN = 32
OUT_FEATURES = 2

LANES = 128            # TPU lane width; elements are laid out as (rows, 128)
CHUNK_ROWS = 64        # rows per register-resident inner chunk (64*128 elems)
MAX_TILE_ROWS = 2048   # rows per grid step: 1 MiB in + 2 MiB out per tile


def _round_up(x, m):
    return ((x + m - 1) // m) * m


def _cdiv(a, b):
    return -(-a // b)


def _make_kernel(n_pos, n_neg, n_chunks):
    """Specialize the kernel on the (static) unit split and chunk count."""
    n_units = n_pos + n_neg

    def kernel(thr_ref, c0_ref, c1_ref, b2_ref, x_ref, o_ref):
        # thr/c0/c1: (32,) f32 SMEM folded layer-1/2 params (+w1 units first).
        # b2_ref   : (2,)  f32 SMEM effective output bias.
        # x_ref    : (TILE_R, 128) f32 VMEM  -- TILE_R*128 scalar inputs.
        # o_ref    : (2, TILE_R, 128) f32 VMEM -- channel-major, lane-dense.
        # Hoist every SMEM scalar read out of the chunk loop.
        thr = [thr_ref[j] for j in range(n_units)]
        c0 = [c0_ref[j] for j in range(n_units)]
        c1 = [c1_ref[j] for j in range(n_units)]
        bias0 = b2_ref[0]
        bias1 = b2_ref[1]

        def chunk_body(c, carry):
            r0 = pl.multiple_of(c * CHUNK_ROWS, CHUNK_ROWS)
            x = x_ref[pl.ds(r0, CHUNK_ROWS), :]           # (64,128) ~ 8 vregs
            acc0 = jnp.full_like(x, bias0)                # bias folded into init
            acc1 = jnp.full_like(x, bias1)
            if n_neg:
                xn = -x
            # Unrolled at trace time; the whole chain stays in registers.
            for j in range(n_pos):                        # w1_j > 0 units
                h = jnp.maximum(x - thr[j], 0.0)          # relu(w1*x+b1)=c*max(x-t,0)
                acc0 = acc0 + h * c0[j]
                acc1 = acc1 + h * c1[j]
            for j in range(n_pos, n_units):               # w1_j < 0 units
                h = jnp.maximum(xn - thr[j], 0.0)
                acc0 = acc0 + h * c0[j]
                acc1 = acc1 + h * c1[j]
            # Sigmoid: exp on the EUP slot; one add + one exact divide on VPU.
            o_ref[0, pl.ds(r0, CHUNK_ROWS), :] = 1.0 / (1.0 + jnp.exp(-acc0))
            o_ref[1, pl.ds(r0, CHUNK_ROWS), :] = 1.0 / (1.0 + jnp.exp(-acc1))
            return carry

        jax.lax.fori_loop(0, n_chunks, chunk_body, 0)

    return kernel


def prepare_params(params):
    """One-time host-side folding of the tiny weights (needs concrete arrays).

    relu(w1_j*x + b1_j) == |w1_j| * max(sign(w1_j)*x - t_j, 0),
    t_j = -b1_j/|w1_j|.  |w1_j| folds into the layer-2 weights (c_jk), units
    with w1_j == 0 fold into the output bias, and units are reordered so the
    sign selection is static in the kernel (positive-w1 first).
    """
    w1, b1, w2, b2 = params  # w1:(1,32) b1:(32,) w2:(32,2) b2:(2,)
    w1 = np.asarray(jax.device_get(w1), np.float32).reshape(HIDDEN)
    b1 = np.asarray(jax.device_get(b1), np.float32).reshape(HIDDEN)
    w2 = np.asarray(jax.device_get(w2), np.float32).reshape(HIDDEN, OUT_FEATURES)
    b2 = np.asarray(jax.device_get(b2), np.float32).reshape(OUT_FEATURES)

    pos = np.nonzero(w1 > 0)[0]
    neg = np.nonzero(w1 < 0)[0]
    zero = np.nonzero(w1 == 0)[0]
    order = np.concatenate([pos, neg]).astype(np.int64)

    thr = np.zeros((HIDDEN,), np.float32)
    c = np.zeros((HIDDEN, OUT_FEATURES), np.float32)
    if order.size:
        a = np.abs(w1[order])
        thr[:order.size] = -b1[order] / a
        c[:order.size] = w2[order] * a[:, None]
    b2_eff = b2.copy()
    if zero.size:
        b2_eff = b2_eff + np.maximum(b1[zero], 0.0) @ w2[zero]

    return {
        "n_pos": int(pos.size),          # static (baked into the kernel trace)
        "n_neg": int(neg.size),          # static
        "thr": jnp.asarray(thr),
        "c0": jnp.asarray(np.ascontiguousarray(c[:, 0])),
        "c1": jnp.asarray(np.ascontiguousarray(c[:, 1])),
        "b2": jnp.asarray(b2_eff),
    }


def fixed_system_net_forward(x, prepared):
    """x: (batch, n, 1) -> (batch, n, 2), sigmoid(relu(x@W1+b1)@W2+b2)."""
    batch, n, fin = x.shape
    assert fin == IN_FEATURES
    m = batch * n

    # Lane-dense layout: element index e = row*128 + lane.
    rows = _cdiv(m, LANES)
    if rows >= 2 * MAX_TILE_ROWS:
        tile_rows = MAX_TILE_ROWS
    else:
        # >= 2 tiles whenever possible so both v7x TensorCores get work; keep
        # tiles a multiple of CHUNK_ROWS for the in-kernel chunk loop.
        tile_rows = min(MAX_TILE_ROWS,
                        max(CHUNK_ROWS, _round_up(_cdiv(rows, 2), CHUNK_ROWS)))
    num_tiles = _cdiv(rows, tile_rows)
    rows_padded = num_tiles * tile_rows
    m_padded = rows_padded * LANES

    xf = x.reshape(m).astype(jnp.float32)
    if m_padded != m:
        xf = jnp.pad(xf, (0, m_padded - m))
    x2d = xf.reshape(rows_padded, LANES)

    kernel = _make_kernel(prepared["n_pos"], prepared["n_neg"],
                          tile_rows // CHUNK_ROWS)
    smem = pl.BlockSpec(memory_space=pltpu.MemorySpace.SMEM)
    out3 = pl.pallas_call(
        kernel,
        out_shape=jax.ShapeDtypeStruct(
            (OUT_FEATURES, rows_padded, LANES), jnp.float32),
        grid=(num_tiles,),
        in_specs=[
            smem, smem, smem, smem,                                   # weights
            pl.BlockSpec((tile_rows, LANES), lambda i: (i, 0)),       # x tile
        ],
        out_specs=pl.BlockSpec((OUT_FEATURES, tile_rows, LANES),
                               lambda i: (0, i, 0)),
        compiler_params=pltpu.CompilerParams(
            dimension_semantics=("parallel",)),
    )(prepared["thr"], prepared["c0"], prepared["c1"], prepared["b2"], x2d)

    # TODO(synk): the channel interleave (2,M)->(M,2) stays in the wrapper; an
    # in-kernel (C,128)x2 -> (C,256) lane interleave would need a lane-shuffle
    # relayout ((C,128,2)->(C,256) reshape) whose Mosaic lowering is not safe,
    # so we accept one XLA transpose here.
    out2 = out3.reshape(OUT_FEATURES, m_padded)[:, :m]   # (2, M)
    return out2.T.reshape(batch, n, OUT_FEATURES)


def init_params(key):
    """Deterministic init mirroring the PyTorch module:
    xavier_normal_ on Linear weights, bias filled with 0.01."""
    k1, k2 = jax.random.split(key)
    std1 = math.sqrt(2.0 / (IN_FEATURES + HIDDEN))
    w1 = std1 * jax.random.normal(k1, (IN_FEATURES, HIDDEN), dtype=jnp.float32)
    b1 = jnp.full((HIDDEN,), 0.01, dtype=jnp.float32)
    std2 = math.sqrt(2.0 / (HIDDEN + OUT_FEATURES))
    w2 = std2 * jax.random.normal(k2, (HIDDEN, OUT_FEATURES), dtype=jnp.float32)
    b2 = jnp.full((OUT_FEATURES,), 0.01, dtype=jnp.float32)
    return (w1, b1, w2, b2)


def _reference(x, params):
    w1, b1, w2, b2 = params
    h = jnp.maximum(x @ w1 + b1, 0.0)
    return jax.nn.sigmoid(h @ w2 + b2)


if __name__ == "__main__":
    key = jax.random.PRNGKey(0)
    kx, kp = jax.random.split(key)

    batch, n = 2, 8
    x = jax.random.normal(kx, (batch, n, IN_FEATURES), dtype=jnp.float32)
    params = init_params(kp)
    prepared = prepare_params(params)

    out = fixed_system_net_forward(x, prepared)
    out = jax.block_until_ready(out)

    ref = _reference(x, params)
    assert out.shape == (batch, n, OUT_FEATURES)
    assert jnp.allclose(out, ref, atol=1e-5, rtol=1e-5)

    print("KERNEL_OK")
</pallas_src>

<mosaic_0001>
module attributes {stable_mosaic.version = 11 : i64} {
  func.func @kernel(%arg0: i32, %arg1: memref<32xf32, #tpu.memory_space<smem>>, %arg2: memref<32xf32, #tpu.memory_space<smem>>, %arg3: memref<32xf32, #tpu.memory_space<smem>>, %arg4: memref<2xf32, #tpu.memory_space<smem>>, %arg5: memref<64x128xf32, #tpu.memory_space<vmem>>, %arg6: memref<2x64x128xf32, #tpu.memory_space<vmem>>) attributes {dimension_semantics = [#tpu.dimension_semantics<parallel>], iteration_bounds = array<i64: 1>, scalar_prefetch = 0 : i64, scratch_operands = 0 : i64, tpu.core_type = #tpu.core_type<tc>, window_params = [{transform_indices = @transform_0, window_bounds = array<i64: 32>}, {transform_indices = @transform_1, window_bounds = array<i64: 32>}, {transform_indices = @transform_2, window_bounds = array<i64: 32>}, {transform_indices = @transform_3, window_bounds = array<i64: 2>}, {transform_indices = @transform_4, window_bounds = array<i64: 64, 128>}, {transform_indices = @transform_5, window_bounds = array<i64: 2, 64, 128>}]} {
    %c0 = arith.constant 0 : index
    %0 = memref.load %arg1[%c0] : memref<32xf32, #tpu.memory_space<smem>>
    %c1 = arith.constant 1 : index
    %1 = memref.load %arg1[%c1] : memref<32xf32, #tpu.memory_space<smem>>
    %c2 = arith.constant 2 : index
    %2 = memref.load %arg1[%c2] : memref<32xf32, #tpu.memory_space<smem>>
    %c3 = arith.constant 3 : index
    %3 = memref.load %arg1[%c3] : memref<32xf32, #tpu.memory_space<smem>>
    %c4 = arith.constant 4 : index
    %4 = memref.load %arg1[%c4] : memref<32xf32, #tpu.memory_space<smem>>
    %c5 = arith.constant 5 : index
    %5 = memref.load %arg1[%c5] : memref<32xf32, #tpu.memory_space<smem>>
    %c6 = arith.constant 6 : index
    %6 = memref.load %arg1[%c6] : memref<32xf32, #tpu.memory_space<smem>>
    %c7 = arith.constant 7 : index
    %7 = memref.load %arg1[%c7] : memref<32xf32, #tpu.memory_space<smem>>
    %c8 = arith.constant 8 : index
    %8 = memref.load %arg1[%c8] : memref<32xf32, #tpu.memory_space<smem>>
    %c9 = arith.constant 9 : index
    %9 = memref.load %arg1[%c9] : memref<32xf32, #tpu.memory_space<smem>>
    %c10 = arith.constant 10 : index
    %10 = memref.load %arg1[%c10] : memref<32xf32, #tpu.memory_space<smem>>
    %c11 = arith.constant 11 : index
    %11 = memref.load %arg1[%c11] : memref<32xf32, #tpu.memory_space<smem>>
    %c12 = arith.constant 12 : index
    %12 = memref.load %arg1[%c12] : memref<32xf32, #tpu.memory_space<smem>>
    %c13 = arith.constant 13 : index
    %13 = memref.load %arg1[%c13] : memref<32xf32, #tpu.memory_space<smem>>
    %c14 = arith.constant 14 : index
    %14 = memref.load %arg1[%c14] : memref<32xf32, #tpu.memory_space<smem>>
    %c15 = arith.constant 15 : index
    %15 = memref.load %arg1[%c15] : memref<32xf32, #tpu.memory_space<smem>>
    %c16 = arith.constant 16 : index
    %16 = memref.load %arg1[%c16] : memref<32xf32, #tpu.memory_space<smem>>
    %c17 = arith.constant 17 : index
    %17 = memref.load %arg1[%c17] : memref<32xf32, #tpu.memory_space<smem>>
    %c18 = arith.constant 18 : index
    %18 = memref.load %arg1[%c18] : memref<32xf32, #tpu.memory_space<smem>>
    %c19 = arith.constant 19 : index
    %19 = memref.load %arg1[%c19] : memref<32xf32, #tpu.memory_space<smem>>
    %c20 = arith.constant 20 : index
    %20 = memref.load %arg1[%c20] : memref<32xf32, #tpu.memory_space<smem>>
    %c21 = arith.constant 21 : index
    %21 = memref.load %arg1[%c21] : memref<32xf32, #tpu.memory_space<smem>>
    %c22 = arith.constant 22 : index
    %22 = memref.load %arg1[%c22] : memref<32xf32, #tpu.memory_space<smem>>
    %c23 = arith.constant 23 : index
    %23 = memref.load %arg1[%c23] : memref<32xf32, #tpu.memory_space<smem>>
    %c24 = arith.constant 24 : index
    %24 = memref.load %arg1[%c24] : memref<32xf32, #tpu.memory_space<smem>>
    %c25 = arith.constant 25 : index
    %25 = memref.load %arg1[%c25] : memref<32xf32, #tpu.memory_space<smem>>
    %c26 = arith.constant 26 : index
    %26 = memref.load %arg1[%c26] : memref<32xf32, #tpu.memory_space<smem>>
    %c27 = arith.constant 27 : index
    %27 = memref.load %arg1[%c27] : memref<32xf32, #tpu.memory_space<smem>>
    %c28 = arith.constant 28 : index
    %28 = memref.load %arg1[%c28] : memref<32xf32, #tpu.memory_space<smem>>
    %c29 = arith.constant 29 : index
    %29 = memref.load %arg1[%c29] : memref<32xf32, #tpu.memory_space<smem>>
    %c30 = arith.constant 30 : index
    %30 = memref.load %arg1[%c30] : memref<32xf32, #tpu.memory_space<smem>>
    %c31 = arith.constant 31 : index
    %31 = memref.load %arg1[%c31] : memref<32xf32, #tpu.memory_space<smem>>
    %c0_0 = arith.constant 0 : index
    %32 = memref.load %arg2[%c0_0] : memref<32xf32, #tpu.memory_space<smem>>
    %c1_1 = arith.constant 1 : index
    %33 = memref.load %arg2[%c1_1] : memref<32xf32, #tpu.memory_space<smem>>
    %c2_2 = arith.constant 2 : index
    %34 = memref.load %arg2[%c2_2] : memref<32xf32, #tpu.memory_space<smem>>
    %c3_3 = arith.constant 3 : index
    %35 = memref.load %arg2[%c3_3] : memref<32xf32, #tpu.memory_space<smem>>
    %c4_4 = arith.constant 4 : index
    %36 = memref.load %arg2[%c4_4] : memref<32xf32, #tpu.memory_space<smem>>
    %c5_5 = arith.constant 5 : index
    %37 = memref.load %arg2[%c5_5] : memref<32xf32, #tpu.memory_space<smem>>
    %c6_6 = arith.constant 6 : index
    %38 = memref.load %arg2[%c6_6] : memref<32xf32, #tpu.memory_space<smem>>
    %c7_7 = arith.constant 7 : index
    %39 = memref.load %arg2[%c7_7] : memref<32xf32, #tpu.memory_space<smem>>
    %c8_8 = arith.constant 8 : index
    %40 = memref.load %arg2[%c8_8] : memref<32xf32, #tpu.memory_space<smem>>
    %c9_9 = arith.constant 9 : index
    %41 = memref.load %arg2[%c9_9] : memref<32xf32, #tpu.memory_space<smem>>
    %c10_10 = arith.constant 10 : index
    %42 = memref.load %arg2[%c10_10] : memref<32xf32, #tpu.memory_space<smem>>
    %c11_11 = arith.constant 11 : index
    %43 = memref.load %arg2[%c11_11] : memref<32xf32, #tpu.memory_space<smem>>
    %c12_12 = arith.constant 12 : index
    %44 = memref.load %arg2[%c12_12] : memref<32xf32, #tpu.memory_space<smem>>
    %c13_13 = arith.constant 13 : index
    %45 = memref.load %arg2[%c13_13] : memref<32xf32, #tpu.memory_space<smem>>
    %c14_14 = arith.constant 14 : index
    %46 = memref.load %arg2[%c14_14] : memref<32xf32, #tpu.memory_space<smem>>
    %c15_15 = arith.constant 15 : index
    %47 = memref.load %arg2[%c15_15] : memref<32xf32, #tpu.memory_space<smem>>
    %c16_16 = arith.constant 16 : index
    %48 = memref.load %arg2[%c16_16] : memref<32xf32, #tpu.memory_space<smem>>
    %c17_17 = arith.constant 17 : index
    %49 = memref.load %arg2[%c17_17] : memref<32xf32, #tpu.memory_space<smem>>
    %c18_18 = arith.constant 18 : index
    %50 = memref.load %arg2[%c18_18] : memref<32xf32, #tpu.memory_space<smem>>
    %c19_19 = arith.constant 19 : index
    %51 = memref.load %arg2[%c19_19] : memref<32xf32, #tpu.memory_space<smem>>
    %c20_20 = arith.constant 20 : index
    %52 = memref.load %arg2[%c20_20] : memref<32xf32, #tpu.memory_space<smem>>
    %c21_21 = arith.constant 21 : index
    %53 = memref.load %arg2[%c21_21] : memref<32xf32, #tpu.memory_space<smem>>
    %c22_22 = arith.constant 22 : index
    %54 = memref.load %arg2[%c22_22] : memref<32xf32, #tpu.memory_space<smem>>
    %c23_23 = arith.constant 23 : index
    %55 = memref.load %arg2[%c23_23] : memref<32xf32, #tpu.memory_space<smem>>
    %c24_24 = arith.constant 24 : index
    %56 = memref.load %arg2[%c24_24] : memref<32xf32, #tpu.memory_space<smem>>
    %c25_25 = arith.constant 25 : index
    %57 = memref.load %arg2[%c25_25] : memref<32xf32, #tpu.memory_space<smem>>
    %c26_26 = arith.constant 26 : index
    %58 = memref.load %arg2[%c26_26] : memref<32xf32, #tpu.memory_space<smem>>
    %c27_27 = arith.constant 27 : index
    %59 = memref.load %arg2[%c27_27] : memref<32xf32, #tpu.memory_space<smem>>
    %c28_28 = arith.constant 28 : index
    %60 = memref.load %arg2[%c28_28] : memref<32xf32, #tpu.memory_space<smem>>
    %c29_29 = arith.constant 29 : index
    %61 = memref.load %arg2[%c29_29] : memref<32xf32, #tpu.memory_space<smem>>
    %c30_30 = arith.constant 30 : index
    %62 = memref.load %arg2[%c30_30] : memref<32xf32, #tpu.memory_space<smem>>
    %c31_31 = arith.constant 31 : index
    %63 = memref.load %arg2[%c31_31] : memref<32xf32, #tpu.memory_space<smem>>
    %c0_32 = arith.constant 0 : index
    %64 = memref.load %arg3[%c0_32] : memref<32xf32, #tpu.memory_space<smem>>
    %c1_33 = arith.constant 1 : index
    %65 = memref.load %arg3[%c1_33] : memref<32xf32, #tpu.memory_space<smem>>
    %c2_34 = arith.constant 2 : index
    %66 = memref.load %arg3[%c2_34] : memref<32xf32, #tpu.memory_space<smem>>
    %c3_35 = arith.constant 3 : index
    %67 = memref.load %arg3[%c3_35] : memref<32xf32, #tpu.memory_space<smem>>
    %c4_36 = arith.constant 4 : index
    %68 = memref.load %arg3[%c4_36] : memref<32xf32, #tpu.memory_space<smem>>
    %c5_37 = arith.constant 5 : index
    %69 = memref.load %arg3[%c5_37] : memref<32xf32, #tpu.memory_space<smem>>
    %c6_38 = arith.constant 6 : index
    %70 = memref.load %arg3[%c6_38] : memref<32xf32, #tpu.memory_space<smem>>
    %c7_39 = arith.constant 7 : index
    %71 = memref.load %arg3[%c7_39] : memref<32xf32, #tpu.memory_space<smem>>
    %c8_40 = arith.constant 8 : index
    %72 = memref.load %arg3[%c8_40] : memref<32xf32, #tpu.memory_space<smem>>
    %c9_41 = arith.constant 9 : index
    %73 = memref.load %arg3[%c9_41] : memref<32xf32, #tpu.memory_space<smem>>
    %c10_42 = arith.constant 10 : index
    %74 = memref.load %arg3[%c10_42] : memref<32xf32, #tpu.memory_space<smem>>
    %c11_43 = arith.constant 11 : index
    %75 = memref.load %arg3[%c11_43] : memref<32xf32, #tpu.memory_space<smem>>
    %c12_44 = arith.constant 12 : index
    %76 = memref.load %arg3[%c12_44] : memref<32xf32, #tpu.memory_space<smem>>
    %c13_45 = arith.constant 13 : index
    %77 = memref.load %arg3[%c13_45] : memref<32xf32, #tpu.memory_space<smem>>
    %c14_46 = arith.constant 14 : index
    %78 = memref.load %arg3[%c14_46] : memref<32xf32, #tpu.memory_space<smem>>
    %c15_47 = arith.constant 15 : index
    %79 = memref.load %arg3[%c15_47] : memref<32xf32, #tpu.memory_space<smem>>
    %c16_48 = arith.constant 16 : index
    %80 = memref.load %arg3[%c16_48] : memref<32xf32, #tpu.memory_space<smem>>
    %c17_49 = arith.constant 17 : index
    %81 = memref.load %arg3[%c17_49] : memref<32xf32, #tpu.memory_space<smem>>
    %c18_50 = arith.constant 18 : index
    %82 = memref.load %arg3[%c18_50] : memref<32xf32, #tpu.memory_space<smem>>
    %c19_51 = arith.constant 19 : index
    %83 = memref.load %arg3[%c19_51] : memref<32xf32, #tpu.memory_space<smem>>
    %c20_52 = arith.constant 20 : index
    %84 = memref.load %arg3[%c20_52] : memref<32xf32, #tpu.memory_space<smem>>
    %c21_53 = arith.constant 21 : index
    %85 = memref.load %arg3[%c21_53] : memref<32xf32, #tpu.memory_space<smem>>
    %c22_54 = arith.constant 22 : index
    %86 = memref.load %arg3[%c22_54] : memref<32xf32, #tpu.memory_space<smem>>
    %c23_55 = arith.constant 23 : index
    %87 = memref.load %arg3[%c23_55] : memref<32xf32, #tpu.memory_space<smem>>
    %c24_56 = arith.constant 24 : index
    %88 = memref.load %arg3[%c24_56] : memref<32xf32, #tpu.memory_space<smem>>
    %c25_57 = arith.constant 25 : index
    %89 = memref.load %arg3[%c25_57] : memref<32xf32, #tpu.memory_space<smem>>
    %c26_58 = arith.constant 26 : index
    %90 = memref.load %arg3[%c26_58] : memref<32xf32, #tpu.memory_space<smem>>
    %c27_59 = arith.constant 27 : index
    %91 = memref.load %arg3[%c27_59] : memref<32xf32, #tpu.memory_space<smem>>
    %c28_60 = arith.constant 28 : index
    %92 = memref.load %arg3[%c28_60] : memref<32xf32, #tpu.memory_space<smem>>
    %c29_61 = arith.constant 29 : index
    %93 = memref.load %arg3[%c29_61] : memref<32xf32, #tpu.memory_space<smem>>
    %c30_62 = arith.constant 30 : index
    %94 = memref.load %arg3[%c30_62] : memref<32xf32, #tpu.memory_space<smem>>
    %c31_63 = arith.constant 31 : index
    %95 = memref.load %arg3[%c31_63] : memref<32xf32, #tpu.memory_space<smem>>
    %c0_64 = arith.constant 0 : index
    %96 = memref.load %arg4[%c0_64] : memref<2xf32, #tpu.memory_space<smem>>
    %c1_65 = arith.constant 1 : index
    %97 = memref.load %arg4[%c1_65] : memref<2xf32, #tpu.memory_space<smem>>
    %c0_i32 = arith.constant 0 : i32
    %c64_i32 = arith.constant 64 : i32
    %98 = arith.muli %c0_i32, %c64_i32 : i32
    %99 = tpu.assume_multiple %98, 64 : i32
    %100 = arith.index_cast %99 : i32 to index
    %c0_66 = arith.constant 0 : index
    %101 = vector.load %arg5[%100, %c0_66] : memref<64x128xf32, #tpu.memory_space<vmem>>, vector<64x128xf32>
    %102 = vector.broadcast %96 : f32 to vector<64x128xf32>
    %103 = vector.broadcast %97 : f32 to vector<64x128xf32>
    %cst = arith.constant 0.000000e+00 : f32
    %104 = vector.broadcast %cst : f32 to vector<64x128xf32>
    %105 = arith.subf %104, %101 : vector<64x128xf32>
    %106 = vector.broadcast %0 : f32 to vector<64x128xf32>
    %107 = arith.subf %101, %106 : vector<64x128xf32>
    %cst_67 = arith.constant 0.000000e+00 : f32
    %108 = vector.broadcast %cst_67 : f32 to vector<64x128xf32>
    %109 = arith.maximumf %107, %108 : vector<64x128xf32>
    %110 = vector.broadcast %32 : f32 to vector<64x128xf32>
    %111 = arith.mulf %109, %110 : vector<64x128xf32>
    %112 = arith.addf %102, %111 : vector<64x128xf32>
    %113 = vector.broadcast %64 : f32 to vector<64x128xf32>
    %114 = arith.mulf %109, %113 : vector<64x128xf32>
    %115 = arith.addf %103, %114 : vector<64x128xf32>
    %116 = vector.broadcast %1 : f32 to vector<64x128xf32>
    %117 = arith.subf %101, %116 : vector<64x128xf32>
    %cst_68 = arith.constant 0.000000e+00 : f32
    %118 = vector.broadcast %cst_68 : f32 to vector<64x128xf32>
    %119 = arith.maximumf %117, %118 : vector<64x128xf32>
    %120 = vector.broadcast %33 : f32 to vector<64x128xf32>
    %121 = arith.mulf %119, %120 : vector<64x128xf32>
    %122 = arith.addf %112, %121 : vector<64x128xf32>
    %123 = vector.broadcast %65 : f32 to vector<64x128xf32>
    %124 = arith.mulf %119, %123 : vector<64x128xf32>
    %125 = arith.addf %115, %124 : vector<64x128xf32>
    %126 = vector.broadcast %2 : f32 to vector<64x128xf32>
    %127 = arith.subf %101, %126 : vector<64x128xf32>
    %cst_69 = arith.constant 0.000000e+00 : f32
    %128 = vector.broadcast %cst_69 : f32 to vector<64x128xf32>
    %129 = arith.maximumf %127, %128 : vector<64x128xf32>
    %130 = vector.broadcast %34 : f32 to vector<64x128xf32>
    %131 = arith.mulf %129, %130 : vector<64x128xf32>
    %132 = arith.addf %122, %131 : vector<64x128xf32>
    %133 = vector.broadcast %66 : f32 to vector<64x128xf32>
    %134 = arith.mulf %129, %133 : vector<64x128xf32>
    %135 = arith.addf %125, %134 : vector<64x128xf32>
    %136 = vector.broadcast %3 : f32 to vector<64x128xf32>
    %137 = arith.subf %101, %136 : vector<64x128xf32>
    %cst_70 = arith.constant 0.000000e+00 : f32
    %138 = vector.broadcast %cst_70 : f32 to vector<64x128xf32>
    %139 = arith.maximumf %137, %138 : vector<64x128xf32>
    %140 = vector.broadcast %35 : f32 to vector<64x128xf32>
    %141 = arith.mulf %139, %140 : vector<64x128xf32>
    %142 = arith.addf %132, %141 : vector<64x128xf32>
    %143 = vector.broadcast %67 : f32 to vector<64x128xf32>
    %144 = arith.mulf %139, %143 : vector<64x128xf32>
    %145 = arith.addf %135, %144 : vector<64x128xf32>
    %146 = vector.broadcast %4 : f32 to vector<64x128xf32>
    %147 = arith.subf %101, %146 : vector<64x128xf32>
    %cst_71 = arith.constant 0.000000e+00 : f32
    %148 = vector.broadcast %cst_71 : f32 to vector<64x128xf32>
    %149 = arith.maximumf %147, %148 : vector<64x128xf32>
    %150 = vector.broadcast %36 : f32 to vector<64x128xf32>
    %151 = arith.mulf %149, %150 : vector<64x128xf32>
    %152 = arith.addf %142, %151 : vector<64x128xf32>
    %153 = vector.broadcast %68 : f32 to vector<64x128xf32>
    %154 = arith.mulf %149, %153 : vector<64x128xf32>
    %155 = arith.addf %145, %154 : vector<64x128xf32>
    %156 = vector.broadcast %5 : f32 to vector<64x128xf32>
    %157 = arith.subf %101, %156 : vector<64x128xf32>
    %cst_72 = arith.constant 0.000000e+00 : f32
    %158 = vector.broadcast %cst_72 : f32 to vector<64x128xf32>
    %159 = arith.maximumf %157, %158 : vector<64x128xf32>
    %160 = vector.broadcast %37 : f32 to vector<64x128xf32>
    %161 = arith.mulf %159, %160 : vector<64x128xf32>
    %162 = arith.addf %152, %161 : vector<64x128xf32>
    %163 = vector.broadcast %69 : f32 to vector<64x128xf32>
    %164 = arith.mulf %159, %163 : vector<64x128xf32>
    %165 = arith.addf %155, %164 : vector<64x128xf32>
    %166 = vector.broadcast %6 : f32 to vector<64x128xf32>
    %167 = arith.subf %101, %166 : vector<64x128xf32>
    %cst_73 = arith.constant 0.000000e+00 : f32
    %168 = vector.broadcast %cst_73 : f32 to vector<64x128xf32>
    %169 = arith.maximumf %167, %168 : vector<64x128xf32>
    %170 = vector.broadcast %38 : f32 to vector<64x128xf32>
    %171 = arith.mulf %169, %170 : vector<64x128xf32>
    %172 = arith.addf %162, %171 : vector<64x128xf32>
    %173 = vector.broadcast %70 : f32 to vector<64x128xf32>
    %174 = arith.mulf %169, %173 : vector<64x128xf32>
    %175 = arith.addf %165, %174 : vector<64x128xf32>
    %176 = vector.broadcast %7 : f32 to vector<64x128xf32>
    %177 = arith.subf %101, %176 : vector<64x128xf32>
    %cst_74 = arith.constant 0.000000e+00 : f32
    %178 = vector.broadcast %cst_74 : f32 to vector<64x128xf32>
    %179 = arith.maximumf %177, %178 : vector<64x128xf32>
    %180 = vector.broadcast %39 : f32 to vector<64x128xf32>
    %181 = arith.mulf %179, %180 : vector<64x128xf32>
    %182 = arith.addf %172, %181 : vector<64x128xf32>
    %183 = vector.broadcast %71 : f32 to vector<64x128xf32>
    %184 = arith.mulf %179, %183 : vector<64x128xf32>
    %185 = arith.addf %175, %184 : vector<64x128xf32>
    %186 = vector.broadcast %8 : f32 to vector<64x128xf32>
    %187 = arith.subf %101, %186 : vector<64x128xf32>
    %cst_75 = arith.constant 0.000000e+00 : f32
    %188 = vector.broadcast %cst_75 : f32 to vector<64x128xf32>
    %189 = arith.maximumf %187, %188 : vector<64x128xf32>
    %190 = vector.broadcast %40 : f32 to vector<64x128xf32>
    %191 = arith.mulf %189, %190 : vector<64x128xf32>
    %192 = arith.addf %182, %191 : vector<64x128xf32>
    %193 = vector.broadcast %72 : f32 to vector<64x128xf32>
    %194 = arith.mulf %189, %193 : vector<64x128xf32>
    %195 = arith.addf %185, %194 : vector<64x128xf32>
    %196 = vector.broadcast %9 : f32 to vector<64x128xf32>
    %197 = arith.subf %101, %196 : vector<64x128xf32>
    %cst_76 = arith.constant 0.000000e+00 : f32
    %198 = vector.broadcast %cst_76 : f32 to vector<64x128xf32>
    %199 = arith.maximumf %197, %198 : vector<64x128xf32>
    %200 = vector.broadcast %41 : f32 to vector<64x128xf32>
    %201 = arith.mulf %199, %200 : vector<64x128xf32>
    %202 = arith.addf %192, %201 : vector<64x128xf32>
    %203 = vector.broadcast %73 : f32 to vector<64x128xf32>
    %204 = arith.mulf %199, %203 : vector<64x128xf32>
    %205 = arith.addf %195, %204 : vector<64x128xf32>
    %206 = vector.broadcast %10 : f32 to vector<64x128xf32>
    %207 = arith.subf %101, %206 : vector<64x128xf32>
    %cst_77 = arith.constant 0.000000e+00 : f32
    %208 = vector.broadcast %cst_77 : f32 to vector<64x128xf32>
    %209 = arith.maximumf %207, %208 : vector<64x128xf32>
    %210 = vector.broadcast %42 : f32 to vector<64x128xf32>
    %211 = arith.mulf %209, %210 : vector<64x128xf32>
    %212 = arith.addf %202, %211 : vector<64x128xf32>
    %213 = vector.broadcast %74 : f32 to vector<64x128xf32>
    %214 = arith.mulf %209, %213 : vector<64x128xf32>
    %215 = arith.addf %205, %214 : vector<64x128xf32>
    %216 = vector.broadcast %11 : f32 to vector<64x128xf32>
    %217 = arith.subf %101, %216 : vector<64x128xf32>
    %cst_78 = arith.constant 0.000000e+00 : f32
    %218 = vector.broadcast %cst_78 : f32 to vector<64x128xf32>
    %219 = arith.maximumf %217, %218 : vector<64x128xf32>
    %220 = vector.broadcast %43 : f32 to vector<64x128xf32>
    %221 = arith.mulf %219, %220 : vector<64x128xf32>
    %222 = arith.addf %212, %221 : vector<64x128xf32>
    %223 = vector.broadcast %75 : f32 to vector<64x128xf32>
    %224 = arith.mulf %219, %223 : vector<64x128xf32>
    %225 = arith.addf %215, %224 : vector<64x128xf32>
    %226 = vector.broadcast %12 : f32 to vector<64x128xf32>
    %227 = arith.subf %101, %226 : vector<64x128xf32>
    %cst_79 = arith.constant 0.000000e+00 : f32
    %228 = vector.broadcast %cst_79 : f32 to vector<64x128xf32>
    %229 = arith.maximumf %227, %228 : vector<64x128xf32>
    %230 = vector.broadcast %44 : f32 to vector<64x128xf32>
    %231 = arith.mulf %229, %230 : vector<64x128xf32>
    %232 = arith.addf %222, %231 : vector<64x128xf32>
    %233 = vector.broadcast %76 : f32 to vector<64x128xf32>
    %234 = arith.mulf %229, %233 : vector<64x128xf32>
    %235 = arith.addf %225, %234 : vector<64x128xf32>
    %236 = vector.broadcast %13 : f32 to vector<64x128xf32>
    %237 = arith.subf %101, %236 : vector<64x128xf32>
    %cst_80 = arith.constant 0.000000e+00 : f32
    %238 = vector.broadcast %cst_80 : f32 to vector<64x128xf32>
    %239 = arith.maximumf %237, %238 : vector<64x128xf32>
    %240 = vector.broadcast %45 : f32 to vector<64x128xf32>
    %241 = arith.mulf %239, %240 : vector<64x128xf32>
    %242 = arith.addf %232, %241 : vector<64x128xf32>
    %243 = vector.broadcast %77 : f32 to vector<64x128xf32>
    %244 = arith.mulf %239, %243 : vector<64x128xf32>
    %245 = arith.addf %235, %244 : vector<64x128xf32>
    %246 = vector.broadcast %14 : f32 to vector<64x128xf32>
    %247 = arith.subf %101, %246 : vector<64x128xf32>
    %cst_81 = arith.constant 0.000000e+00 : f32
    %248 = vector.broadcast %cst_81 : f32 to vector<64x128xf32>
    %249 = arith.maximumf %247, %248 : vector<64x128xf32>
    %250 = vector.broadcast %46 : f32 to vector<64x128xf32>
    %251 = arith.mulf %249, %250 : vector<64x128xf32>
    %252 = arith.addf %242, %251 : vector<64x128xf32>
    %253 = vector.broadcast %78 : f32 to vector<64x128xf32>
    %254 = arith.mulf %249, %253 : vector<64x128xf32>
    %255 = arith.addf %245, %254 : vector<64x128xf32>
    %256 = vector.broadcast %15 : f32 to vector<64x128xf32>
    %257 = arith.subf %105, %256 : vector<64x128xf32>
    %cst_82 = arith.constant 0.000000e+00 : f32
    %258 = vector.broadcast %cst_82 : f32 to vector<64x128xf32>
    %259 = arith.maximumf %257, %258 : vector<64x128xf32>
    %260 = vector.broadcast %47 : f32 to vector<64x128xf32>
    %261 = arith.mulf %259, %260 : vector<64x128xf32>
    %262 = arith.addf %252, %261 : vector<64x128xf32>
    %263 = vector.broadcast %79 : f32 to vector<64x128xf32>
    %264 = arith.mulf %259, %263 : vector<64x128xf32>
    %265 = arith.addf %255, %264 : vector<64x128xf32>
    %266 = vector.broadcast %16 : f32 to vector<64x128xf32>
    %267 = arith.subf %105, %266 : vector<64x128xf32>
    %cst_83 = arith.constant 0.000000e+00 : f32
    %268 = vector.broadcast %cst_83 : f32 to vector<64x128xf32>
    %269 = arith.maximumf %267, %268 : vector<64x128xf32>
    %270 = vector.broadcast %48 : f32 to vector<64x128xf32>
    %271 = arith.mulf %269, %270 : vector<64x128xf32>
    %272 = arith.addf %262, %271 : vector<64x128xf32>
    %273 = vector.broadcast %80 : f32 to vector<64x128xf32>
    %274 = arith.mulf %269, %273 : vector<64x128xf32>
    %275 = arith.addf %265, %274 : vector<64x128xf32>
    %276 = vector.broadcast %17 : f32 to vector<64x128xf32>
    %277 = arith.subf %105, %276 : vector<64x128xf32>
    %cst_84 = arith.constant 0.000000e+00 : f32
    %278 = vector.broadcast %cst_84 : f32 to vector<64x128xf32>
    %279 = arith.maximumf %277, %278 : vector<64x128xf32>
    %280 = vector.broadcast %49 : f32 to vector<64x128xf32>
    %281 = arith.mulf %279, %280 : vector<64x128xf32>
    %282 = arith.addf %272, %281 : vector<64x128xf32>
    %283 = vector.broadcast %81 : f32 to vector<64x128xf32>
    %284 = arith.mulf %279, %283 : vector<64x128xf32>
    %285 = arith.addf %275, %284 : vector<64x128xf32>
    %286 = vector.broadcast %18 : f32 to vector<64x128xf32>
    %287 = arith.subf %105, %286 : vector<64x128xf32>
    %cst_85 = arith.constant 0.000000e+00 : f32
    %288 = vector.broadcast %cst_85 : f32 to vector<64x128xf32>
    %289 = arith.maximumf %287, %288 : vector<64x128xf32>
    %290 = vector.broadcast %50 : f32 to vector<64x128xf32>
    %291 = arith.mulf %289, %290 : vector<64x128xf32>
    %292 = arith.addf %282, %291 : vector<64x128xf32>
    %293 = vector.broadcast %82 : f32 to vector<64x128xf32>
    %294 = arith.mulf %289, %293 : vector<64x128xf32>
    %295 = arith.addf %285, %294 : vector<64x128xf32>
    %296 = vector.broadcast %19 : f32 to vector<64x128xf32>
    %297 = arith.subf %105, %296 : vector<64x128xf32>
    %cst_86 = arith.constant 0.000000e+00 : f32
    %298 = vector.broadcast %cst_86 : f32 to vector<64x128xf32>
    %299 = arith.maximumf %297, %298 : vector<64x128xf32>
    %300 = vector.broadcast %51 : f32 to vector<64x128xf32>
    %301 = arith.mulf %299, %300 : vector<64x128xf32>
    %302 = arith.addf %292, %301 : vector<64x128xf32>
    %303 = vector.broadcast %83 : f32 to vector<64x128xf32>
    %304 = arith.mulf %299, %303 : vector<64x128xf32>
    %305 = arith.addf %295, %304 : vector<64x128xf32>
    %306 = vector.broadcast %20 : f32 to vector<64x128xf32>
    %307 = arith.subf %105, %306 : vector<64x128xf32>
    %cst_87 = arith.constant 0.000000e+00 : f32
    %308 = vector.broadcast %cst_87 : f32 to vector<64x128xf32>
    %309 = arith.maximumf %307, %308 : vector<64x128xf32>
    %310 = vector.broadcast %52 : f32 to vector<64x128xf32>
    %311 = arith.mulf %309, %310 : vector<64x128xf32>
    %312 = arith.addf %302, %311 : vector<64x128xf32>
    %313 = vector.broadcast %84 : f32 to vector<64x128xf32>
    %314 = arith.mulf %309, %313 : vector<64x128xf32>
    %315 = arith.addf %305, %314 : vector<64x128xf32>
    %316 = vector.broadcast %21 : f32 to vector<64x128xf32>
    %317 = arith.subf %105, %316 : vector<64x128xf32>
    %cst_88 = arith.constant 0.000000e+00 : f32
    %318 = vector.broadcast %cst_88 : f32 to vector<64x128xf32>
    %319 = arith.maximumf %317, %318 : vector<64x128xf32>
    %320 = vector.broadcast %53 : f32 to vector<64x128xf32>
    %321 = arith.mulf %319, %320 : vector<64x128xf32>
    %322 = arith.addf %312, %321 : vector<64x128xf32>
    %323 = vector.broadcast %85 : f32 to vector<64x128xf32>
    %324 = arith.mulf %319, %323 : vector<64x128xf32>
    %325 = arith.addf %315, %324 : vector<64x128xf32>
    %326 = vector.broadcast %22 : f32 to vector<64x128xf32>
    %327 = arith.subf %105, %326 : vector<64x128xf32>
    %cst_89 = arith.constant 0.000000e+00 : f32
    %328 = vector.broadcast %cst_89 : f32 to vector<64x128xf32>
    %329 = arith.maximumf %327, %328 : vector<64x128xf32>
    %330 = vector.broadcast %54 : f32 to vector<64x128xf32>
    %331 = arith.mulf %329, %330 : vector<64x128xf32>
    %332 = arith.addf %322, %331 : vector<64x128xf32>
    %333 = vector.broadcast %86 : f32 to vector<64x128xf32>
    %334 = arith.mulf %329, %333 : vector<64x128xf32>
    %335 = arith.addf %325, %334 : vector<64x128xf32>
    %336 = vector.broadcast %23 : f32 to vector<64x128xf32>
    %337 = arith.subf %105, %336 : vector<64x128xf32>
    %cst_90 = arith.constant 0.000000e+00 : f32
    %338 = vector.broadcast %cst_90 : f32 to vector<64x128xf32>
    %339 = arith.maximumf %337, %338 : vector<64x128xf32>
    %340 = vector.broadcast %55 : f32 to vector<64x128xf32>
    %341 = arith.mulf %339, %340 : vector<64x128xf32>
    %342 = arith.addf %332, %341 : vector<64x128xf32>
    %343 = vector.broadcast %87 : f32 to vector<64x128xf32>
    %344 = arith.mulf %339, %343 : vector<64x128xf32>
    %345 = arith.addf %335, %344 : vector<64x128xf32>
    %346 = vector.broadcast %24 : f32 to vector<64x128xf32>
    %347 = arith.subf %105, %346 : vector<64x128xf32>
    %cst_91 = arith.constant 0.000000e+00 : f32
    %348 = vector.broadcast %cst_91 : f32 to vector<64x128xf32>
    %349 = arith.maximumf %347, %348 : vector<64x128xf32>
    %350 = vector.broadcast %56 : f32 to vector<64x128xf32>
    %351 = arith.mulf %349, %350 : vector<64x128xf32>
    %352 = arith.addf %342, %351 : vector<64x128xf32>
    %353 = vector.broadcast %88 : f32 to vector<64x128xf32>
    %354 = arith.mulf %349, %353 : vector<64x128xf32>
    %355 = arith.addf %345, %354 : vector<64x128xf32>
    %356 = vector.broadcast %25 : f32 to vector<64x128xf32>
    %357 = arith.subf %105, %356 : vector<64x128xf32>
    %cst_92 = arith.constant 0.000000e+00 : f32
    %358 = vector.broadcast %cst_92 : f32 to vector<64x128xf32>
    %359 = arith.maximumf %357, %358 : vector<64x128xf32>
    %360 = vector.broadcast %57 : f32 to vector<64x128xf32>
    %361 = arith.mulf %359, %360 : vector<64x128xf32>
    %362 = arith.addf %352, %361 : vector<64x128xf32>
    %363 = vector.broadcast %89 : f32 to vector<64x128xf32>
    %364 = arith.mulf %359, %363 : vector<64x128xf32>
    %365 = arith.addf %355, %364 : vector<64x128xf32>
    %366 = vector.broadcast %26 : f32 to vector<64x128xf32>
    %367 = arith.subf %105, %366 : vector<64x128xf32>
    %cst_93 = arith.constant 0.000000e+00 : f32
    %368 = vector.broadcast %cst_93 : f32 to vector<64x128xf32>
    %369 = arith.maximumf %367, %368 : vector<64x128xf32>
    %370 = vector.broadcast %58 : f32 to vector<64x128xf32>
    %371 = arith.mulf %369, %370 : vector<64x128xf32>
    %372 = arith.addf %362, %371 : vector<64x128xf32>
    %373 = vector.broadcast %90 : f32 to vector<64x128xf32>
    %374 = arith.mulf %369, %373 : vector<64x128xf32>
    %375 = arith.addf %365, %374 : vector<64x128xf32>
    %376 = vector.broadcast %27 : f32 to vector<64x128xf32>
    %377 = arith.subf %105, %376 : vector<64x128xf32>
    %cst_94 = arith.constant 0.000000e+00 : f32
    %378 = vector.broadcast %cst_94 : f32 to vector<64x128xf32>
    %379 = arith.maximumf %377, %378 : vector<64x128xf32>
    %380 = vector.broadcast %59 : f32 to vector<64x128xf32>
    %381 = arith.mulf %379, %380 : vector<64x128xf32>
    %382 = arith.addf %372, %381 : vector<64x128xf32>
    %383 = vector.broadcast %91 : f32 to vector<64x128xf32>
    %384 = arith.mulf %379, %383 : vector<64x128xf32>
    %385 = arith.addf %375, %384 : vector<64x128xf32>
    %386 = vector.broadcast %28 : f32 to vector<64x128xf32>
    %387 = arith.subf %105, %386 : vector<64x128xf32>
    %cst_95 = arith.constant 0.000000e+00 : f32
    %388 = vector.broadcast %cst_95 : f32 to vector<64x128xf32>
    %389 = arith.maximumf %387, %388 : vector<64x128xf32>
    %390 = vector.broadcast %60 : f32 to vector<64x128xf32>
    %391 = arith.mulf %389, %390 : vector<64x128xf32>
    %392 = arith.addf %382, %391 : vector<64x128xf32>
    %393 = vector.broadcast %92 : f32 to vector<64x128xf32>
    %394 = arith.mulf %389, %393 : vector<64x128xf32>
    %395 = arith.addf %385, %394 : vector<64x128xf32>
    %396 = vector.broadcast %29 : f32 to vector<64x128xf32>
    %397 = arith.subf %105, %396 : vector<64x128xf32>
    %cst_96 = arith.constant 0.000000e+00 : f32
    %398 = vector.broadcast %cst_96 : f32 to vector<64x128xf32>
    %399 = arith.maximumf %397, %398 : vector<64x128xf32>
    %400 = vector.broadcast %61 : f32 to vector<64x128xf32>
    %401 = arith.mulf %399, %400 : vector<64x128xf32>
    %402 = arith.addf %392, %401 : vector<64x128xf32>
    %403 = vector.broadcast %93 : f32 to vector<64x128xf32>
    %404 = arith.mulf %399, %403 : vector<64x128xf32>
    %405 = arith.addf %395, %404 : vector<64x128xf32>
    %406 = vector.broadcast %30 : f32 to vector<64x128xf32>
    %407 = arith.subf %105, %406 : vector<64x128xf32>
    %cst_97 = arith.constant 0.000000e+00 : f32
    %408 = vector.broadcast %cst_97 : f32 to vector<64x128xf32>
    %409 = arith.maximumf %407, %408 : vector<64x128xf32>
    %410 = vector.broadcast %62 : f32 to vector<64x128xf32>
    %411 = arith.mulf %409, %410 : vector<64x128xf32>
    %412 = arith.addf %402, %411 : vector<64x128xf32>
    %413 = vector.broadcast %94 : f32 to vector<64x128xf32>
    %414 = arith.mulf %409, %413 : vector<64x128xf32>
    %415 = arith.addf %405, %414 : vector<64x128xf32>
    %416 = vector.broadcast %31 : f32 to vector<64x128xf32>
    %417 = arith.subf %105, %416 : vector<64x128xf32>
    %cst_98 = arith.constant 0.000000e+00 : f32
    %418 = vector.broadcast %cst_98 : f32 to vector<64x128xf32>
    %419 = arith.maximumf %417, %418 : vector<64x128xf32>
    %420 = vector.broadcast %63 : f32 to vector<64x128xf32>
    %421 = arith.mulf %419, %420 : vector<64x128xf32>
    %422 = arith.addf %412, %421 : vector<64x128xf32>
    %423 = vector.broadcast %95 : f32 to vector<64x128xf32>
    %424 = arith.mulf %419, %423 : vector<64x128xf32>
    %425 = arith.addf %415, %424 : vector<64x128xf32>
    %cst_99 = arith.constant 0.000000e+00 : f32
    %426 = vector.broadcast %cst_99 : f32 to vector<64x128xf32>
    %427 = arith.subf %426, %422 : vector<64x128xf32>
    %428 = math.exp %427 : vector<64x128xf32>
    %cst_100 = arith.constant 1.000000e+00 : f32
    %429 = vector.broadcast %cst_100 : f32 to vector<64x128xf32>
    %430 = arith.addf %429, %428 : vector<64x128xf32>
    %cst_101 = arith.constant 1.000000e+00 : f32
    %431 = vector.broadcast %cst_101 : f32 to vector<64x128xf32>
    %432 = arith.divf %431, %430 : vector<64x128xf32>
    %c0_102 = arith.constant 0 : index
    %433 = arith.index_cast %99 : i32 to index
    %c0_103 = arith.constant 0 : index
    %434 = vector.load %arg6[%c0_102, %433, %c0_103] : memref<2x64x128xf32, #tpu.memory_space<vmem>>, vector<1x64x128xf32>
    %435 = vector.shape_cast %434 : vector<1x64x128xf32> to vector<64x128xf32>
    %436 = vector.shape_cast %432 : vector<64x128xf32> to vector<1x64x128xf32>
    tpu.vector_store %arg6[%c0_102, %433, %c0_103], %436 {strides = array<i32>} : memref<2x64x128xf32, #tpu.memory_space<vmem>>, vector<1x64x128xf32>,
    %cst_104 = arith.constant 0.000000e+00 : f32
    %437 = vector.broadcast %cst_104 : f32 to vector<64x128xf32>
    %438 = arith.subf %437, %425 : vector<64x128xf32>
    %439 = math.exp %438 : vector<64x128xf32>
    %cst_105 = arith.constant 1.000000e+00 : f32
    %440 = vector.broadcast %cst_105 : f32 to vector<64x128xf32>
    %441 = arith.addf %440, %439 : vector<64x128xf32>
    %cst_106 = arith.constant 1.000000e+00 : f32
    %442 = vector.broadcast %cst_106 : f32 to vector<64x128xf32>
    %443 = arith.divf %442, %441 : vector<64x128xf32>
    %c1_107 = arith.constant 1 : index
    %444 = arith.index_cast %99 : i32 to index
    %c0_108 = arith.constant 0 : index
    %445 = vector.load %arg6[%c1_107, %444, %c0_108] : memref<2x64x128xf32, #tpu.memory_space<vmem>>, vector<1x64x128xf32>
    %446 = vector.shape_cast %445 : vector<1x64x128xf32> to vector<64x128xf32>
    %447 = vector.shape_cast %443 : vector<64x128xf32> to vector<1x64x128xf32>
    tpu.vector_store %arg6[%c1_107, %444, %c0_108], %447 {strides = array<i32>} : memref<2x64x128xf32, #tpu.memory_space<vmem>>, vector<1x64x128xf32>,
    %c1_i32 = arith.constant 1 : i32
    return
  }
  func.func @transform_0(%arg0: i32) -> i32 {
    %c0_i32 = arith.constant 0 : i32
    %c0_i32_0 = arith.constant 0 : i32
    return %c0_i32 : i32
  }
  func.func @transform_1(%arg0: i32) -> i32 {
    %c0_i32 = arith.constant 0 : i32
    %c0_i32_0 = arith.constant 0 : i32
    return %c0_i32 : i32
  }
  func.func @transform_2(%arg0: i32) -> i32 {
    %c0_i32 = arith.constant 0 : i32
    %c0_i32_0 = arith.constant 0 : i32
    return %c0_i32 : i32
  }
  func.func @transform_3(%arg0: i32) -> i32 {
    %c0_i32 = arith.constant 0 : i32
    %c0_i32_0 = arith.constant 0 : i32
    return %c0_i32 : i32
  }
  func.func @transform_4(%arg0: i32) -> (i32, i32) {
    %c0_i32 = arith.constant 0 : i32
    %c0_i32_0 = arith.constant 0 : i32
    return %arg0, %c0_i32 : i32, i32
  }
  func.func @transform_5(%arg0: i32) -> (i32, i32, i32) {
    %c0_i32 = arith.constant 0 : i32
    %c0_i32_0 = arith.constant 0 : i32
    %c0_i32_1 = arith.constant 0 : i32
    return %c0_i32, %arg0, %c0_i32_0 : i32, i32, i32
  }
}

</mosaic_0001>

<bundles_post_ra>
// kernel: tpu_custom_call.1
= control target key start
LH: loop header
LB: loop body
LE: loop exit
PB: predicated region body
PF: predicated region fallthrough
CT: control target
= control target key end

     0   :  { %10 = vsyncpa [#allocation5], 0  ;;  %s3639_s0 = inlined_call_operand.hbm [shape: f32[32], index: 0, kind: input, shape index: {}]   ;;  %s3640_s1 = inlined_call_operand.vmem [shape: f32[32], index: 1, kind: input, shape index: {}]   ;;  %s3641_s2 = inlined_call_operand.vmem [shape: f32[32], index: 2, kind: input, shape index: {}]   ;;  %s3642_s3 = inlined_call_operand.vmem [shape: f32[2], index: 3, kind: input, shape index: {}]   ;;  %s3643_s4 = inlined_call_operand.hbm [shape: f32[64,128], index: 4, kind: input, shape index: {}]   ;;  %s3644_s5 = inlined_call_operand.hbm [shape: f32[2,64,128], index: 5, kind: output, shape index: {}]  }
   0x1   :  { %11 = vsyncpa [#allocation6], 0 }
   0x2   :  { %12 = vsyncpa [#allocation9], 0 }
   0x3   :  { %13 = vsyncpa [#allocation3], 0  ;;  %s39_s20 = sshll.u32 %s3641_s2, 4  ;;  %s40_s20 = int_to_ptr.vmem [resolvable:$true] %s39_s20 }
   0x4   :  { %14 = vsyncpa [#allocation4], 0  ;;  %s2138_s21 = scalar_lea.vmem %s40_s20, 16  ;;  %p2143_p1 = scmp.lt.s32.totalorder %s40_s20, %s40_s20 }
   0x5   :  { %p2139_p0 = scmp.ne.s32.totalorder %s40_s20, %s2138_s21  ;;  %p2144_p2 = scmp.lt.s32.totalorder %s2138_s21, %s2138_s21 }
   0x7   :  { %p2145_p3 = por %p2144_p2, %p2143_p1 }
   0x9   :  { %p2146_p4 = pnand %p2145_p3, %p2139_p0 }
   0xb   :  { %2149 = shalt.err (!%p2146_p4)
}
   0xc   :  { %s2238_s22 = smov [#allocation8]   ;;  %s2150_s25 = scalar_lea.hbm %s3639_s0, 16 }
   0xd   :  { %42 = dma.vmem_to_smem %s40_s20, 16, %s2238_s22, [#allocation9]  }
   0xe   :  { %p2151_p5 = scmp.ne.s32.totalorder %s3639_s0, %s2150_s25  ;;  %p2154_p6 = scmp.lt.u32.totalorder %s2150_s25, %s3639_s0 }
  0x10   :  { %p2156_p7 = pnand %p2154_p6, %p2151_p5 }
  0x12   :  { %2159 = shalt.err (!%p2156_p7)
}
  0x13   :  { %s2239_s29 = smov [#allocation2]   ;;  %s29_s9 = sshll.u32 %s3640_s1, 4  ;;  %s30_s9 = int_to_ptr.vmem [resolvable:$true] %s29_s9 }
  0x14   :  { %22 = dma.hbm_to_smem %s3639_s0, 16, %s2239_s29, [#allocation5]  }
  0x15   :  { %s49_s12 = sshll.u32 %s3642_s3, 4  ;;  %s2160_s13 = scalar_lea.vmem %s30_s9, 16  ;;  %s50_s12 = int_to_ptr.vmem [resolvable:$true] %s49_s12 }
  0x16   :  { %p2161_p8 = scmp.ne.s32.totalorder %s30_s9, %s2160_s13  ;;  %p2165_p9 = scmp.lt.s32.totalorder %s30_s9, %s30_s9 }
  0x17   :  { %p2166_p10 = scmp.lt.s32.totalorder %s2160_s13, %s2160_s13 }
  0x19   :  { %p2167_p11 = por %p2166_p10, %p2165_p9 }
  0x1b   :  { %p2168_p12 = pnand %p2167_p11, %p2161_p8 }
  0x1d   :  { %2171 = shalt.err (!%p2168_p12)
}
  0x1e   :  { %s2240_s14 = smov [#allocation7]   ;;  %s2172_s0 = scalar_lea.vmem %s50_s12, 16 }
  0x1f   :  { %32 = dma.vmem_to_smem %s30_s9, 16, %s2240_s14, [#allocation6]  }
  0x20   :  { %p2173_p13 = scmp.ne.s32.totalorder %s50_s12, %s2172_s0  ;;  %p2177_p0 = scmp.lt.s32.totalorder %s50_s12, %s50_s12 }
  0x21   :  { %p2178_p1 = scmp.lt.s32.totalorder %s2172_s0, %s2172_s0 }
  0x23   :  { %p2179_p2 = por %p2178_p1, %p2177_p0 }
  0x25   :  { %p2180_p3 = pnand %p2179_p2, %p2173_p13 }
  0x27   :  { %2183 = shalt.err (!%p2180_p3)
}
  0x28   :  { %s2241_s1 = smov [#allocation10]   ;;  %s2242_s3 = smov [#allocation11]  }
  0x29   :  { %52 = dma.vmem_to_smem %s50_s12, 16, %s2241_s1, [#allocation9]  }
  0x2a   :  { %s58_s15 = sshll.u32 %s2242_s3, 4  ;;  %s2184_s18 = scalar_lea.hbm %s3643_s4, 1024  ;;  %s59_s15 = int_to_ptr.vmem [resolvable:$true] %s58_s15 }
  0x2b   :  { %p2185_p4 = scmp.ne.s32.totalorder %s3643_s4, %s2184_s18  ;;  %p2188_p5 = scmp.lt.u32.totalorder %s2184_s18, %s3643_s4 }
  0x2d   :  { %p2190_p6 = pnand %p2188_p5, %p2185_p4 }
  0x2f   :  { %2193 = shalt.err (!%p2190_p6)
}
  0x30   :  { %s2194_s23 = scalar_lea.vmem %s59_s15, 1024  ;;  %p2199_p8 = scmp.lt.s32.totalorder %s59_s15, %s59_s15 }
  0x31   :  { %p2195_p7 = scmp.ne.s32.totalorder %s59_s15, %s2194_s23  ;;  %p2200_p9 = scmp.lt.s32.totalorder %s2194_s23, %s2194_s23 }
  0x33   :  { %p2201_p10 = por %p2200_p9, %p2199_p8 }
  0x35   :  { %p2202_p11 = pnand %p2201_p10, %p2195_p7 }
  0x37   :  { %2205 = shalt.err (!%p2202_p11)
}
  0x38   :  { %s2243_s24 = smov 128   ;;  %s2244_s25 = smov 8  }
  0x39   :  { %64 = dma.hbm_to_vmem [thread:$0]  %s3643_s4, 1024, %s59_s15, [#allocation3], %s2243_s24, %s2243_s24, %s2244_s25  }
  0x3a   :  { %2228 = dma.done.wait [#allocation5], 16  }
  0x3b   :  { %2229 = vsyncadd [#allocation5], 4294967280 }
  0x3c   :  { %2230 = dma.done.wait [#allocation6], 16  }
  0x3d   :  { %2231 = vsyncadd [#allocation6], 4294967280 }
  0x3e   :  { %2232 = dma.done.wait [#allocation9], 32  }
  0x3f   :  { %2233 = vsyncadd [#allocation9], 4294967264 }
  0x40   :  { %2234 = dma.done.wait [#allocation3], 1024  }
  0x41   :  { %2235 = vsyncadd [#allocation3], 4294966272 }
  0x42   :  { %80 = sfence }
  0x43   :  { %s81_s2 = sld [smem:[#allocation2]]  ;;  %s1964_s28 = sld [smem:[#allocation2 + $0x1]]  ;;  %v2314_v0 = vld [vmem:[#allocation11] sm:$0xff]  ;;  %v2316_v1 = vld [vmem:[#allocation11 + $0x8] sm:$0xff]  ;;  %v2318_v3 = vld [vmem:[#allocation11 + $0x10] sm:$0xff] }
  0x44   :  { %s2312_s29 = sld [smem:[#allocation2 + $0x2]]  ;;  %3673 = vst [vmem:[#allocation18_spill] sm:$0xff] %v2314_v0  ;;  %3674 = vst [vmem:[#allocation19_spill] sm:$0xff] %v2316_v1  ;;  %v2320_v4 = vld [vmem:[#allocation11 + $0x18] sm:$0xff]  ;;  %v2322_v5 = vld [vmem:[#allocation11 + $0x20] sm:$0xff]  ;;  %v2329_v8 = vsub.f32 0.0, %v2314_v0 }
  0x45   :  { %3675 = vst [vmem:[#allocation20_spill] sm:$0xff] %v2318_v3  ;;  %3676 = vst [vmem:[#allocation21_spill] sm:$0xff] %v2320_v4  ;;  %v2324_v6 = vld [vmem:[#allocation11 + $0x28] sm:$0xff]  ;;  %v2326_v7 = vld [vmem:[#allocation11 + $0x30] sm:$0xff]  ;;  %v2332_v9 = vsub.f32 0.0, %v2316_v1  ;;  %v2339_v13 = vsub.f32 0.0, %v2318_v3 }
  0x46   :  { %3677 = vst [vmem:[#allocation22_spill] sm:$0xff] %v2322_v5  ;;  %3678 = vst [vmem:[#allocation23_spill] sm:$0xff] %v2329_v8  ;;  %v2336_v12 = vld [vmem:[#allocation11 + $0x38] sm:$0xff]  ;;  %v2342_v14 = vsub.f32 0.0, %v2320_v4  ;;  %s2345_s4 = sld [smem:[#allocation2 + $0x3]]  ;;  %v2348_v17 = vsub.f32 0.0, %v2322_v5 }
  0x47   :  { %3679 = vst [vmem:[#allocation24_spill] sm:$0xff] %v2332_v9  ;;  %3680 = vst [vmem:[#allocation25_spill] sm:$0xff] %v2339_v13  ;;  %v2351_v18 = vsub.f32 0.0, %v2324_v6  ;;  %v2356_v21 = vsub.f32 0.0, %v2326_v7  ;;  %v2359_v22 = vsub.f32 0.0, %v2336_v12  ;;  %s2374_s30 = sld [smem:[#allocation7]] }
  0x48   :  { %3681 = vst [vmem:[#allocation26_spill] sm:$0xff] %v2342_v14  ;;  %3682 = vst [vmem:[#allocation27_spill] sm:$0xff] %v2348_v17  ;;  %s2388_s6 = sld [smem:[#allocation7 + $0x1]]  ;;  %s2416_s7 = sld [smem:[#allocation7 + $0x2]] }
  0x49   :  { %v197_v2 = vstv %s81_s2  ;;  %v248_v16 = vstv %s1964_s28  ;;  %3683 = vst [vmem:[#allocation28_spill] sm:$0xff] %v2351_v18  ;;  %3684 = vst [vmem:[#allocation29_spill] sm:$0xff] %v2356_v21  ;;  %s2432_s8 = sld [smem:[#allocation2 + $0x4]]  ;;  %s2434_s9 = sld [smem:[#allocation7 + $0x3]] }
  0x4a   :  { %v198_v10 = vsub.f32 %v2314_v0, %v197_v2  ;;  %v199_v11 = vsub.f32 %v2316_v1, %v197_v2  ;;  %v200_v15 = vsub.f32 %v2318_v3, %v197_v2  ;;  %v201_v19 = vsub.f32 %v2320_v4, %v197_v2  ;;  %3685 = vst [vmem:[#allocation30_spill] sm:$0xff] %v2359_v22  ;;  %s2501_s10 = sld [smem:[#allocation7 + $0x4]]  ;;  %s2515_s11 = sld [smem:[#allocation8]] }
  0x4b   :  { %v202_v20 = vsub.f32 %v2322_v5, %v197_v2  ;;  %v203_v23 = vsub.f32 %v2324_v6, %v197_v2  ;;  %v204_v24 = vsub.f32 %v2326_v7, %v197_v2  ;;  %v205_v25 = vsub.f32 %v2336_v12, %v197_v2  ;;  %s2523_s12 = sld [smem:[#allocation2 + $0x5]]  ;;  %s2547_s14 = sld [smem:[#allocation8 + $0x1]] }
  0x4c   :  { %v2364_v26 = vmax.f32 %v198_v10, 0.0  ;;  %v2366_v27 = vmax.f32 %v199_v11, 0.0  ;;  %v249_v28 = vsub.f32 %v2314_v0, %v248_v16  ;;  %v2369_v29 = vmax.f32 %v200_v15, 0.0  ;;  %s2525_s13 = sld [smem:[#allocation7 + $0x5]]  ;;  %s2569_s0 = sld [smem:[#allocation8 + $0x2]] }
  0x4d   :  { %v250_v30 = vsub.f32 %v2316_v1, %v248_v16  ;;  %v251_v31 = vsub.f32 %v2318_v3, %v248_v16  ;;  %v299_v32 = vstv %s2312_s29  ;;  %v2376_v33 = vmax.f32 %v201_v19, 0.0  ;;  %s2585_s1 = sld [smem:[#allocation8 + $0x3]]  ;;  %s2617_s3 = sld [smem:[#allocation8 + $0x4]] }
  0x4e   :  { %v2378_v34 = vmax.f32 %v202_v20, 0.0  ;;  %v252_v35 = vsub.f32 %v2320_v4, %v248_v16  ;;  %v253_v36 = vsub.f32 %v2322_v5, %v248_v16  ;;  %v2382_v37 = vmax.f32 %v203_v23, 0.0  ;;  %s2667_s15 = sld [smem:[#allocation10]]  ;;  %s2692_s16 = sld [smem:[#allocation10 + $0x1]] }
  0x4f   :  { %v2384_v38 = vmax.f32 %v204_v24, 0.0  ;;  %v254_v39 = vsub.f32 %v2324_v6, %v248_v16  ;;  %v255_v40 = vsub.f32 %v2326_v7, %v248_v16  ;;  %v2390_v41 = vmax.f32 %v205_v25, 0.0  ;;  %s2850_s17 = sld [smem:[#allocation2 + $0x6]]  ;;  %s2852_s18 = sld [smem:[#allocation8 + $0x5]] }
  0x50   :  { %v256_v42 = vsub.f32 %v2336_v12, %v248_v16  ;;  %v2393_v43 = vmax.f32 %v249_v28, 0.0  ;;  %v300_v44 = vsub.f32 %v2314_v0, %v299_v32  ;;  %v2396_v45 = vmax.f32 %v250_v30, 0.0  ;;  %s2872_s19 = sld [smem:[#allocation7 + $0x6]]  ;;  %s2897_s20 = sld [smem:[#allocation2 + $0x7]] }
  0x51   :  { %v2398_v46 = vmax.f32 %v251_v31, 0.0  ;;  %v301_v47 = vsub.f32 %v2316_v1, %v299_v32  ;;  %v302_v48 = vsub.f32 %v2318_v3, %v299_v32  ;;  %v2402_v49 = vmax.f32 %v252_v35, 0.0  ;;  %s2903_s21 = sld [smem:[#allocation8 + $0x6]]  ;;  %s2911_s22 = sld [smem:[#allocation7 + $0x7]] }
  0x52   :  { %v2404_v50 = vmax.f32 %v253_v36, 0.0  ;;  %v303_v51 = vsub.f32 %v2320_v4, %v299_v32  ;;  %v2408_v52 = vstv %s2345_s4  ;;  %v2410_v53 = vmax.f32 %v254_v39, 0.0  ;;  %s2920_s23 = sld [smem:[#allocation2 + $0x8]]  ;;  %s2922_s26 = sld [smem:[#allocation8 + $0x7]] }
  0x53   :  { %v2412_v54 = vmax.f32 %v255_v40, 0.0  ;;  %v304_v55 = vsub.f32 %v2322_v5, %v299_v32  ;;  %v305_v56 = vsub.f32 %v2324_v6, %v299_v32  ;;  %v2418_v57 = vmax.f32 %v256_v42, 0.0  ;;  %s2925_s27 = sld [smem:[#allocation7 + $0x8]]  ;;  %s2942_s2 = sld [smem:[#allocation2 + $0x9]] }
  0x54   :  { %v306_v58 = vsub.f32 %v2326_v7, %v299_v32  ;;  %v307_v59 = vsub.f32 %v2336_v12, %v299_v32  ;;  %v2422_v60 = vmax.f32 %v300_v44, 0.0  ;;  %v2424_v61 = vmax.f32 %v301_v47, 0.0  ;;  %s2951_s28 = sld [smem:[#allocation8 + $0x8]]  ;;  %s2953_s29 = sld [smem:[#allocation7 + $0x9]] }
  0x55   :  { %v2426_v62 = vmax.f32 %v302_v48, 0.0  ;;  %v351_v63 = vsub.f32 %v2314_v0, %v2408_v52  ;;  %v352_v2 = vsub.f32 %v2316_v1, %v2408_v52  ;;  %v214_v10 = vstv %s2374_s30  ;;  %s2955_s4 = sld [smem:[#allocation8 + $0x9]]  ;;  %s2983_s30 = sld [smem:[#allocation2 + $0xa]] }
  0x56   :  { %v2437_v11 = vmax.f32 %v303_v51, 0.0  ;;  %v353_v15 = vsub.f32 %v2318_v3, %v2408_v52  ;;  %v354_v16 = vsub.f32 %v2320_v4, %v2408_v52  ;;  %v2443_v19 = vmax.f32 %v304_v55, 0.0 }
  0x57   :  { %v2445_v20 = vmax.f32 %v305_v56, 0.0  ;;  %v355_v23 = vsub.f32 %v2322_v5, %v2408_v52  ;;  %v356_v24 = vsub.f32 %v2324_v6, %v2408_v52  ;;  %v265_v25 = vstv %s2388_s6  ;;  %s2995_s6 = sld [smem:[#allocation7 + $0xa]] }
  0x58   :  { %v2452_v28 = vmax.f32 %v306_v58, 0.0  ;;  %v2454_v30 = vmax.f32 %v307_v59, 0.0  ;;  %v357_v31 = vsub.f32 %v2326_v7, %v2408_v52  ;;  %v2459_v32 = vmul.f32 %v214_v10, %v2364_v26 }
  0x59   :  { %v358_v35 = vsub.f32 %v2336_v12, %v2408_v52  ;;  %v2463_v36 = vmax.f32 %v351_v63, 0.0  ;;  %v2465_v39 = vmax.f32 %v352_v2, 0.0  ;;  %v2468_v40 = vmul.f32 %v214_v10, %v2366_v27 }
  0x5a   :  { %v2471_v42 = vmul.f32 %v214_v10, %v2369_v29  ;;  %v2474_v44 = vmul.f32 %v214_v10, %v2376_v33  ;;  %v2477_v47 = vmul.f32 %v214_v10, %v2378_v34  ;;  %v2480_v48 = vmul.f32 %v214_v10, %v2382_v37 }
  0x5b   :  { %v2483_v51 = vmul.f32 %v214_v10, %v2384_v38  ;;  %v2486_v52 = vmul.f32 %v214_v10, %v2390_v41  ;;  %v2489_v55 = vmul.f32 %v265_v25, %v2393_v43  ;;  %v2492_v56 = vmul.f32 %v265_v25, %v2396_v45 }
  0x5c   :  { %3686 = vst [vmem:[#allocation31_spill] sm:$0xff] %v2474_v44  ;;  %3687 = vst [vmem:[#allocation32_spill] sm:$0xff] %v2477_v47  ;;  %v2495_v58 = vmul.f32 %v265_v25, %v2398_v46  ;;  %v2498_v59 = vmul.f32 %v265_v25, %v2402_v49  ;;  %v316_v63 = vstv %s2416_s7  ;;  %v2504_v2 = vmul.f32 %v265_v25, %v2404_v50  ;;  %s3030_s7 = sld [smem:[#allocation2 + $0xb]] }
  0x5d   :  { %3688 = vst [vmem:[#allocation33_spill] sm:$0xff] %v2480_v48  ;;  %3689 = vst [vmem:[#allocation34_spill] sm:$0xff] %v2483_v51  ;;  %v2507_v10 = vmul.f32 %v265_v25, %v2410_v53  ;;  %v2510_v22 = vmul.f32 %v265_v25, %v2412_v54  ;;  %v2513_v21 = vmul.f32 %v265_v25, %v2418_v57  ;;  %v2517_v18 = vmax.f32 %v353_v15, 0.0 }
  0x5e   :  { %3690 = vst [vmem:[#allocation35_spill] sm:$0xff] %v2486_v52  ;;  %3691 = vst [vmem:[#allocation36_spill] sm:$0xff] %v2489_v55  ;;  %v2519_v17 = vmax.f32 %v354_v16, 0.0  ;;  %v367_v14 = vstv %s2434_s9  ;;  %v401_v13 = vstv %s2432_s8  ;;  %v2528_v9 = vmul.f32 %v316_v63, %v2422_v60  ;;  %s3044_s8 = sld [smem:[#allocation8 + $0xa]]  ;;  %s3062_s9 = sld [smem:[#allocation7 + $0xb]] }
  0x5f   :  { %3692 = vst [vmem:[#allocation37_spill] sm:$0xff] %v2492_v56  ;;  %3693 = vst [vmem:[#allocation38_spill] sm:$0xff] %v2495_v58  ;;  %v2531_v8 = vmul.f32 %v316_v63, %v2424_v61  ;;  %v2534_v25 = vmul.f32 %v316_v63, %v2426_v62  ;;  %v2537_v15 = vmul.f32 %v316_v63, %v2437_v11  ;;  %v418_v58 = vstv %s2501_s10  ;;  %s3078_s10 = sld [smem:[#allocation2 + $0xc]] }
  0x60   :  { %3694 = vst [vmem:[#allocation39_spill] sm:$0xff] %v2498_v59  ;;  %3695 = vst [vmem:[#allocation40_spill] sm:$0xff] %v2504_v2  ;;  %v2540_v16 = vmul.f32 %v316_v63, %v2443_v19  ;;  %v2561_v2 = vmax.f32 %v358_v35, 0.0  ;;  %v2567_v59 = vmul.f32 %v367_v14, %v2465_v39  ;;  %v406_v35 = vsub.f32 %v2322_v5, %v401_v13 }
  0x61   :  { %3696 = vst [vmem:[#allocation41_spill] sm:$0xff] %v2507_v10  ;;  %3697 = vst [vmem:[#allocation42_spill] sm:$0xff] %v2510_v22  ;;  %v402_v22 = vsub.f32 %v2314_v0, %v401_v13  ;;  %v403_v10 = vsub.f32 %v2316_v1, %v401_v13  ;;  %v231_v56 = vstv %s2515_s11  ;;  %v2609_v48 = vstv %s2525_s13  ;;  %s3080_s11 = sld [smem:[#allocation8 + $0xb]]  ;;  %s3100_s13 = sld [smem:[#allocation2 + $0xd]] }
  0x62   :  { %3698 = vst [vmem:[#allocation43_spill] sm:$0xff] %v2513_v21  ;;  %3699 = vst [vmem:[#allocation44_spill] sm:$0xff] %v2528_v9  ;;  %v2543_v21 = vmul.f32 %v316_v63, %v2445_v20  ;;  %v2555_v9 = vmax.f32 %v355_v23, 0.0  ;;  %v2575_v23 = vmul.f32 %v367_v14, %v2519_v17 }
  0x63   :  { %3700 = vst [vmem:[#allocation45_spill] sm:$0xff] %v2531_v8  ;;  %3701 = vst [vmem:[#allocation46_spill] sm:$0xff] %v2534_v25  ;;  %v2550_v8 = vmul.f32 %v316_v63, %v2452_v28  ;;  %v2553_v25 = vmul.f32 %v316_v63, %v2454_v30  ;;  %v2572_v63 = vmul.f32 %v367_v14, %v2517_v18 }
  0x64   :  { %3702 = vst [vmem:[#allocation47_spill] sm:$0xff] %v2537_v15  ;;  %3703 = vst [vmem:[#allocation48_spill] sm:$0xff] %v2540_v16  ;;  %v2557_v15 = vmax.f32 %v356_v24, 0.0  ;;  %v2559_v16 = vmax.f32 %v357_v31, 0.0  ;;  %v404_v24 = vsub.f32 %v2318_v3, %v401_v13  ;;  %v405_v31 = vsub.f32 %v2320_v4, %v401_v13 }
  0x65   :  { %3704 = vst [vmem:[#allocation49_spill] sm:$0xff] %v2543_v21  ;;  %3705 = vst [vmem:[#allocation50_spill] sm:$0xff] %v2550_v8  ;;  %v2564_v21 = vmul.f32 %v367_v14, %v2463_v36  ;;  %v409_v8 = vsub.f32 %v2336_v12, %v401_v13 }
  0x66   :  { %3706 = vst [vmem:[#allocation51_spill] sm:$0xff] %v2553_v25  ;;  %3708 = vst [vmem:[#allocation53_spill] sm:$0xff] %v2567_v59  ;;  %v2581_v25 = vmax.f32 %v402_v22, 0.0  ;;  %v2583_v59 = vmax.f32 %v403_v10, 0.0  ;;  %v2595_v55 = vmul.f32 %v367_v14, %v2557_v15  ;;  %v2598_v22 = vmul.f32 %v367_v14, %v2559_v16 }
  0x67   :  { %3707 = vst [vmem:[#allocation52_spill] sm:$0xff] %v2564_v21  ;;  %3709 = vst [vmem:[#allocation54_spill] sm:$0xff] %v2572_v63  ;;  %v407_v21 = vsub.f32 %v2324_v6, %v401_v13  ;;  %v2588_v63 = vmul.f32 %v367_v14, %v2555_v9  ;;  %v2601_v10 = vmul.f32 %v367_v14, %v2561_v2  ;;  %v412_v52 = vmax.f32 %v404_v24, 0.0 }
  0x68   :  { %3710 = vst [vmem:[#allocation55_spill] sm:$0xff] %v2575_v23  ;;  %v408_v23 = vsub.f32 %v2326_v7, %v401_v13  ;;  %3712 = vst [vmem:[#allocation57_spill] sm:$0xff] %v2595_v55  ;;  %v2603_v51 = vmax.f32 %v405_v31, 0.0  ;;  %v414_v13 = vmax.f32 %v406_v35, 0.0  ;;  %v2612_v44 = vmul.f32 %v418_v58, %v2581_v25 }
  0x69   :  { %3711 = vst [vmem:[#allocation56_spill] sm:$0xff] %v2588_v63  ;;  %3713 = vst [vmem:[#allocation58_spill] sm:$0xff] %v2601_v10  ;;  %v2606_v63 = vstv %s2523_s12  ;;  %v415_v47 = vmax.f32 %v407_v21, 0.0  ;;  %v2615_v55 = vmul.f32 %v418_v58, %v2583_v59  ;;  %v2620_v14 = vmul.f32 %v231_v56, %v2364_v26  ;;  %s3083_s12 = sld [smem:[#allocation7 + $0xc]] }
  0x6a   :  { %3714 = vst [vmem:[#allocation59_spill] sm:$0xff] %v2609_v48  ;;  %3715 = vst [vmem:[#allocation60_spill] sm:$0xff] %v2612_v44  ;;  %v282_v24 = vstv %s2547_s14  ;;  %v416_v31 = vmax.f32 %v408_v23, 0.0  ;;  %v417_v10 = vmax.f32 %v409_v8, 0.0  ;;  %v2624_v48 = vmul.f32 %v231_v56, %v2366_v27  ;;  %s3109_s14 = sld [smem:[#allocation8 + $0xc]] }
  0x6b   :  { %3716 = vst [vmem:[#allocation61_spill] sm:$0xff] %v2615_v55  ;;  %v2627_v21 = vmul.f32 %v231_v56, %v2369_v29  ;;  %v2630_v35 = vmul.f32 %v231_v56, %v2376_v33  ;;  %v2633_v55 = vmul.f32 %v231_v56, %v2378_v34  ;;  %v2636_v44 = vmul.f32 %v231_v56, %v2382_v37 }
  0x6c   :  { %v2639_v26 = vmul.f32 %v231_v56, %v2384_v38  ;;  %v2642_v8 = vmul.f32 %v231_v56, %v2390_v41  ;;  %v333_v27 = vstv %s2569_s0  ;;  %v2646_v23 = vmul.f32 %v282_v24, %v2393_v43  ;;  %s3111_s0 = sld [smem:[#allocation7 + $0xd]] }
  0x6d   :  { %v2649_v29 = vmul.f32 %v282_v24, %v2396_v45  ;;  %v2652_v33 = vmul.f32 %v282_v24, %v2398_v46  ;;  %v2655_v34 = vmul.f32 %v282_v24, %v2402_v49  ;;  %v2658_v37 = vmul.f32 %v282_v24, %v2404_v50 }
  0x6e   :  { %v2661_v38 = vmul.f32 %v282_v24, %v2410_v53  ;;  %v2664_v41 = vmul.f32 %v282_v24, %v2412_v54  ;;  %v384_v43 = vstv %s2585_s1  ;;  %v2670_v45 = vmul.f32 %v282_v24, %v2418_v57  ;;  %s3113_s1 = sld [smem:[#allocation8 + $0xd]] }
  0x6f   :  { %v2673_v46 = vmul.f32 %v333_v27, %v2422_v60  ;;  %v2675_v49 = vmul.f32 %v418_v58, %v412_v52  ;;  %v2678_v50 = vmul.f32 %v418_v58, %v2603_v51  ;;  %v2681_v53 = vmul.f32 %v333_v27, %v2424_v61 }
  0x70   :  { %v2684_v54 = vmul.f32 %v333_v27, %v2426_v62  ;;  %v2687_v56 = vmul.f32 %v333_v27, %v2437_v11  ;;  %v2690_v57 = vmul.f32 %v333_v27, %v2443_v19  ;;  %v2695_v60 = vmul.f32 %v333_v27, %v2445_v20 }
  0x71   :  { %3717 = vst [vmem:[#allocation62_spill] sm:$0xff] %v2675_v49  ;;  %3718 = vst [vmem:[#allocation63_spill] sm:$0xff] %v2678_v50  ;;  %v2698_v24 = vmul.f32 %v333_v27, %v2452_v28  ;;  %v2701_v61 = vmul.f32 %v333_v27, %v2454_v30  ;;  %v2704_v62 = vmul.f32 %v384_v43, %v2463_v36  ;;  %v435_v20 = vstv %s2617_s3  ;;  %s3133_s3 = sld [smem:[#allocation2 + $0xe]] }
  0x72   :  { %v2707_v11 = vmul.f32 %v384_v43, %v2465_v39  ;;  %v2710_v19 = vmul.f32 %v384_v43, %v2517_v18  ;;  %v2713_v50 = vmul.f32 %v384_v43, %v2519_v17  ;;  %v2717_v49 = vmul.f32 %v384_v43, %v2555_v9 }
  0x73   :  { %v2720_v28 = vmul.f32 %v384_v43, %v2557_v15  ;;  %v2723_v30 = vmul.f32 %v384_v43, %v2559_v16  ;;  %v2726_v36 = vmul.f32 %v384_v43, %v2561_v2  ;;  %v2728_v39 = vmul.f32 %v418_v58, %v414_v13 }
  0x74   :  { %v2730_v18 = vmul.f32 %v418_v58, %v415_v47  ;;  %v2732_v17 = vmul.f32 %v418_v58, %v416_v31  ;;  %v2734_v27 = vmul.f32 %v418_v58, %v417_v10  ;;  %v2737_v9 = vmul.f32 %v435_v20, %v2581_v25 }
  0x75   :  { %3719 = vst [vmem:[#allocation64_spill] sm:$0xff] %v2728_v39  ;;  %v453_v15 = vsub.f32 %v2314_v0, %v2606_v63  ;;  %v454_v16 = vsub.f32 %v2316_v1, %v2606_v63  ;;  %v455_v2 = vsub.f32 %v2318_v3, %v2606_v63  ;;  %v2746_v43 = vmul.f32 %v435_v20, %v2583_v59  ;;  %v3748_v39 = vld [vmem:[#allocation43_spill] sm:$0xff] }
  0x76   :  { %3720 = vst [vmem:[#allocation65_spill] sm:$0xff] %v2730_v18  ;;  %3721 = vst [vmem:[#allocation66_spill] sm:$0xff] %v2732_v17  ;;  %v2748_v18 = vmul.f32 %v435_v20, %v412_v52  ;;  %v456_v58 = vsub.f32 %v2320_v4, %v2606_v63  ;;  %v457_v25 = vsub.f32 %v2322_v5, %v2606_v63  ;;  %v3747_v17 = vld [vmem:[#allocation42_spill] sm:$0xff] }
  0x77   :  { %3722 = vst [vmem:[#allocation67_spill] sm:$0xff] %v2734_v27  ;;  %3723 = vst [vmem:[#allocation68_spill] sm:$0xff] %v2737_v9  ;;  %v187_v9 = vstv %s2667_s15  ;;  %v2756_v0 = vmul.f32 %v435_v20, %v2603_v51  ;;  %v2758_v27 = vmul.f32 %v435_v20, %v414_v13  ;;  %v2760_v1 = vmul.f32 %v435_v20, %v415_v47  ;;  %s3138_s15 = sld [smem:[#allocation7 + $0xe]] }
  0x78   :  { %3724 = vst [vmem:[#allocation69_spill] sm:$0xff] %v2746_v43  ;;  %3725 = vst [vmem:[#allocation70_spill] sm:$0xff] %v2748_v18  ;;  %v2762_v3 = vmul.f32 %v435_v20, %v416_v31  ;;  %v2764_v59 = vmul.f32 %v435_v20, %v417_v10  ;;  %v188_v18 = vstv %s2692_s16  ;;  %v2773_v51 = vmax.f32 %v453_v15, 0.0  ;;  %v3738_v15 = vld [vmem:[#allocation33_spill] sm:$0xff]  ;;  %v3740_v43 = vld [vmem:[#allocation35_spill] sm:$0xff]  ;;  %s3145_s16 = sld [smem:[#allocation2 + $0xf]] }
  0x79   :  { %3726 = vst [vmem:[#allocation71_spill] sm:$0xff] %v2756_v0  ;;  %3727 = vst [vmem:[#allocation72_spill] sm:$0xff] %v2758_v27  ;;  %v2775_v13 = vmax.f32 %v454_v16, 0.0  ;;  %v223_v47 = vadd.f32 %v2459_v32, %v187_v9  ;;  %v2778_v31 = vmax.f32 %v455_v2, 0.0  ;;  %v2780_v10 = vmax.f32 %v456_v58, 0.0  ;;  %v3739_v16 = vld [vmem:[#allocation34_spill] sm:$0xff] }
  0x7a   :  { %3728 = vst [vmem:[#allocation73_spill] sm:$0xff] %v2760_v1  ;;  %3729 = vst [vmem:[#allocation74_spill] sm:$0xff] %v2762_v3  ;;  %v2782_v20 = vmax.f32 %v457_v25, 0.0  ;;  %v224_v52 = vadd.f32 %v2468_v40, %v187_v9  ;;  %v225_v4 = vadd.f32 %v2471_v42, %v187_v9  ;;  %v3737_v1 = vld [vmem:[#allocation32_spill] sm:$0xff]  ;;  %v228_v27 = vadd.f32 %v3738_v15, %v187_v9 }
  0x7b   :  { %3730 = vst [vmem:[#allocation75_spill] sm:$0xff] %v2764_v59  ;;  %3731 = vst [vmem:[#allocation76_spill] sm:$0xff] %v2773_v51  ;;  %v3736_v59 = vld [vmem:[#allocation31_spill] sm:$0xff]  ;;  %v227_v5 = vadd.f32 %v3737_v1, %v187_v9  ;;  %v229_v0 = vadd.f32 %v3739_v16, %v187_v9  ;;  %v230_v32 = vadd.f32 %v3740_v43, %v187_v9  ;;  %v3743_v43 = vld [vmem:[#allocation38_spill] sm:$0xff] }
  0x7c   :  { %3732 = vst [vmem:[#allocation77_spill] sm:$0xff] %v2775_v13  ;;  %3733 = vst [vmem:[#allocation78_spill] sm:$0xff] %v2778_v31  ;;  %v226_v3 = vadd.f32 %v3736_v59, %v187_v9  ;;  %v240_v2 = vadd.f32 %v2620_v14, %v188_v18  ;;  %v241_v58 = vadd.f32 %v2624_v48, %v188_v18  ;;  %v3744_v31 = vld [vmem:[#allocation39_spill] sm:$0xff]  ;;  %v3745_v13 = vld [vmem:[#allocation40_spill] sm:$0xff] }
  0x7d   :  { %3734 = vst [vmem:[#allocation79_spill] sm:$0xff] %v2780_v10  ;;  %3735 = vst [vmem:[#allocation80_spill] sm:$0xff] %v2782_v20  ;;  %v242_v25 = vadd.f32 %v2627_v21, %v188_v18  ;;  %v243_v40 = vadd.f32 %v2630_v35, %v188_v18  ;;  %v244_v42 = vadd.f32 %v2633_v55, %v188_v18  ;;  %v3741_v20 = vld [vmem:[#allocation36_spill] sm:$0xff]  ;;  %v3742_v10 = vld [vmem:[#allocation37_spill] sm:$0xff] }
  0x7e   :  { %v245_v59 = vadd.f32 %v2636_v44, %v188_v18  ;;  %v246_v1 = vadd.f32 %v2639_v26, %v188_v18  ;;  %v247_v15 = vadd.f32 %v2642_v8, %v188_v18  ;;  %v274_v16 = vadd.f32 %v3741_v20, %v223_v47  ;;  %v3746_v51 = vld [vmem:[#allocation41_spill] sm:$0xff]  ;;  %v3752_v47 = vld [vmem:[#allocation47_spill] sm:$0xff]  ;;  %v3755_v20 = vld [vmem:[#allocation50_spill] sm:$0xff] }
  0x7f   :  { %v275_v9 = vadd.f32 %v3742_v10, %v224_v52  ;;  %v276_v14 = vadd.f32 %v3743_v43, %v225_v4  ;;  %v277_v48 = vadd.f32 %v3744_v31, %v226_v3  ;;  %v278_v21 = vadd.f32 %v3745_v13, %v227_v5  ;;  %v3751_v13 = vld [vmem:[#allocation46_spill] sm:$0xff]  ;;  %v3753_v31 = vld [vmem:[#allocation48_spill] sm:$0xff]  ;;  %v3754_v10 = vld [vmem:[#allocation49_spill] sm:$0xff] }
  0x80   :  { %v279_v35 = vadd.f32 %v3746_v51, %v228_v27  ;;  %v280_v55 = vadd.f32 %v3747_v17, %v229_v0  ;;  %v281_v44 = vadd.f32 %v3748_v39, %v230_v32  ;;  %v291_v26 = vadd.f32 %v2646_v23, %v240_v2  ;;  %v3749_v51 = vld [vmem:[#allocation44_spill] sm:$0xff]  ;;  %v3750_v17 = vld [vmem:[#allocation45_spill] sm:$0xff]  ;;  %v3756_v32 = vld [vmem:[#allocation51_spill] sm:$0xff] }
  0x81   :  { %v292_v8 = vadd.f32 %v2649_v29, %v241_v58  ;;  %v293_v18 = vadd.f32 %v2652_v33, %v242_v25  ;;  %v294_v52 = vadd.f32 %v2655_v34, %v243_v40  ;;  %v295_v4 = vadd.f32 %v2658_v37, %v244_v42  ;;  %v3759_v43 = vld [vmem:[#allocation54_spill] sm:$0xff] }
  0x82   :  { %v296_v3 = vadd.f32 %v2661_v38, %v245_v59  ;;  %v297_v5 = vadd.f32 %v2664_v41, %v246_v1  ;;  %v298_v27 = vadd.f32 %v2670_v45, %v247_v15  ;;  %v325_v0 = vadd.f32 %v3749_v51, %v274_v16  ;;  %v3757_v1 = vld [vmem:[#allocation52_spill] sm:$0xff]  ;;  %v3758_v16 = vld [vmem:[#allocation53_spill] sm:$0xff] }
  0x83   :  { %v326_v39 = vadd.f32 %v3750_v17, %v275_v9  ;;  %v327_v23 = vadd.f32 %v3751_v13, %v276_v14  ;;  %v328_v29 = vadd.f32 %v3752_v47, %v277_v48  ;;  %v329_v33 = vadd.f32 %v3753_v31, %v278_v21  ;;  %v3760_v14 = vld [vmem:[#allocation55_spill] sm:$0xff]  ;;  %v3761_v48 = vld [vmem:[#allocation56_spill] sm:$0xff]  ;;  %v3762_v21 = vld [vmem:[#allocation57_spill] sm:$0xff] }
  0x84   :  { %v330_v34 = vadd.f32 %v3754_v10, %v279_v35  ;;  %v331_v37 = vadd.f32 %v3755_v20, %v280_v55  ;;  %v332_v38 = vadd.f32 %v3756_v32, %v281_v44  ;;  %v342_v41 = vadd.f32 %v2673_v46, %v291_v26  ;;  %v3763_v35 = vld [vmem:[#allocation58_spill] sm:$0xff]  ;;  %v3776_v10 = vld [vmem:[#allocation59_spill] sm:$0xff]  ;;  %v3777_v20 = vld [vmem:[#allocation77_spill] sm:$0xff] }
  0x85   :  { %v343_v45 = vadd.f32 %v2681_v53, %v292_v8  ;;  %v344_v2 = vadd.f32 %v2684_v54, %v293_v18  ;;  %v345_v58 = vadd.f32 %v2687_v56, %v294_v52  ;;  %v346_v25 = vadd.f32 %v2690_v57, %v295_v4 }
  0x86   :  { %v347_v40 = vadd.f32 %v2695_v60, %v296_v3  ;;  %v348_v42 = vadd.f32 %v2698_v24, %v297_v5  ;;  %v349_v59 = vadd.f32 %v2701_v61, %v298_v27  ;;  %v376_v15 = vadd.f32 %v3757_v1, %v325_v0  ;;  %v3769_v3 = vld [vmem:[#allocation62_spill] sm:$0xff]  ;;  %v3770_v27 = vld [vmem:[#allocation63_spill] sm:$0xff]  ;;  %v3771_v0 = vld [vmem:[#allocation64_spill] sm:$0xff] }
  0x87   :  { %v377_v9 = vadd.f32 %v3758_v16, %v326_v39  ;;  %v378_v46 = vadd.f32 %v3759_v43, %v327_v23  ;;  %v379_v53 = vadd.f32 %v3760_v14, %v328_v29  ;;  %v380_v54 = vadd.f32 %v3761_v48, %v329_v33  ;;  %v3772_v39 = vld [vmem:[#allocation65_spill] sm:$0xff]  ;;  %v3773_v23 = vld [vmem:[#allocation66_spill] sm:$0xff]  ;;  %v3774_v29 = vld [vmem:[#allocation67_spill] sm:$0xff] }
  0x88   :  { %v381_v56 = vadd.f32 %v3762_v21, %v330_v34  ;;  %v382_v57 = vadd.f32 %v2598_v22, %v331_v37  ;;  %v383_v60 = vadd.f32 %v3763_v35, %v332_v38  ;;  %v393_v24 = vadd.f32 %v2704_v62, %v342_v41  ;;  %v3765_v62 = vld [vmem:[#allocation60_spill] sm:$0xff]  ;;  %v3779_v38 = vld [vmem:[#allocation79_spill] sm:$0xff]  ;;  %v3783_v16 = vld [vmem:[#allocation70_spill] sm:$0xff] }
  0x89   :  { %v394_v61 = vadd.f32 %v2707_v11, %v343_v45  ;;  %v395_v55 = vadd.f32 %v2710_v19, %v344_v2  ;;  %v396_v44 = vadd.f32 %v2713_v50, %v345_v58  ;;  %v397_v26 = vadd.f32 %v2717_v49, %v346_v25  ;;  %v3766_v19 = vld [vmem:[#allocation61_spill] sm:$0xff]  ;;  %v3775_v33 = vld [vmem:[#allocation76_spill] sm:$0xff]  ;;  %v3784_v43 = vld [vmem:[#allocation71_spill] sm:$0xff] }
  0x8a   :  { %v398_v8 = vadd.f32 %v2720_v28, %v347_v40  ;;  %v399_v18 = vadd.f32 %v2723_v30, %v348_v42  ;;  %v400_v52 = vadd.f32 %v2726_v36, %v349_v59  ;;  %v3764_v22 = vsub.f32 %v2324_v6, %v2606_v63  ;;  %v3780_v45 = vld [vmem:[#allocation80_spill] sm:$0xff]  ;;  %v3782_v42 = vld [vmem:[#allocation69_spill] sm:$0xff]  ;;  %v3787_v21 = vld [vmem:[#allocation74_spill] sm:$0xff] }
  0x8b   :  { %v427_v11 = vadd.f32 %v3765_v62, %v376_v15  ;;  %v428_v50 = vadd.f32 %v3766_v19, %v377_v9  ;;  %v3767_v49 = vsub.f32 %v2326_v7, %v2606_v63  ;;  %v3768_v30 = vsub.f32 %v2336_v12, %v2606_v63  ;;  %v3778_v63 = vld [vmem:[#allocation78_spill] sm:$0xff]  ;;  %v3781_v25 = vld [vmem:[#allocation68_spill] sm:$0xff]  ;;  %v3786_v48 = vld [vmem:[#allocation73_spill] sm:$0xff] }
  0x8c   :  { %v466_v4 = vmax.f32 %v3764_v22, 0.0  ;;  %v429_v5 = vadd.f32 %v3769_v3, %v378_v46  ;;  %v430_v51 = vadd.f32 %v3770_v27, %v379_v53  ;;  %v431_v17 = vadd.f32 %v3771_v0, %v380_v54  ;;  %v3785_v14 = vld [vmem:[#allocation72_spill] sm:$0xff] }
  0x8d   :  { %v467_v28 = vmax.f32 %v3767_v49, 0.0  ;;  %v468_v36 = vmax.f32 %v3768_v30, 0.0  ;;  %v432_v13 = vadd.f32 %v3772_v39, %v381_v56  ;;  %v433_v47 = vadd.f32 %v3773_v23, %v382_v57  ;;  %v3788_v57 = vld [vmem:[#allocation75_spill] sm:$0xff] }
  0x8e   :  { %v434_v31 = vadd.f32 %v3774_v29, %v383_v60  ;;  %v470_v34 = vmul.f32 %v3776_v10, %v3775_v33  ;;  %v471_v37 = vmul.f32 %v3776_v10, %v3777_v20  ;;  %v472_v32 = vmul.f32 %v3776_v10, %v3778_v63 }
  0x8f   :  { %v473_v41 = vmul.f32 %v3776_v10, %v3779_v38  ;;  %v474_v2 = vmul.f32 %v3776_v10, %v3780_v45  ;;  %v475_v58 = vmul.f32 %v3776_v10, %v466_v4  ;;  %v444_v40 = vadd.f32 %v3781_v25, %v393_v24 }
  0x90   :  { %v445_v59 = vadd.f32 %v3782_v42, %v394_v61  ;;  %v476_v1 = vmul.f32 %v3776_v10, %v467_v28  ;;  %v477_v15 = vmul.f32 %v3776_v10, %v468_v36  ;;  %v446_v9 = vadd.f32 %v3783_v16, %v395_v55 }
  0x91   :  { %v447_v46 = vadd.f32 %v3784_v43, %v396_v44  ;;  %v448_v53 = vadd.f32 %v3785_v14, %v397_v26  ;;  %v449_v54 = vadd.f32 %v3786_v48, %v398_v8  ;;  %v450_v56 = vadd.f32 %v3787_v21, %v399_v18  ;;  %v3789_v44 = vld [vmem:[#allocation18_spill] sm:$0xff]  ;;  %v3790_v26 = vld [vmem:[#allocation19_spill] sm:$0xff]  ;;  %v3791_v8 = vld [vmem:[#allocation20_spill] sm:$0xff] }
  0x92   :  { %v451_v35 = vadd.f32 %v3788_v57, %v400_v52  ;;  %v478_v60 = vadd.f32 %v470_v34, %v427_v11  ;;  %v479_v24 = vadd.f32 %v471_v37, %v428_v50  ;;  %v480_v61 = vadd.f32 %v472_v32, %v429_v5  ;;  %v3792_v18 = vld [vmem:[#allocation21_spill] sm:$0xff]  ;;  %v3793_v52 = vld [vmem:[#allocation22_spill] sm:$0xff] }
  0x93   :  { %v481_v22 = vadd.f32 %v473_v41, %v430_v51  ;;  %v482_v62 = vadd.f32 %v474_v2, %v431_v17  ;;  %v483_v19 = vadd.f32 %v475_v58, %v432_v13  ;;  %v484_v49 = vadd.f32 %v476_v1, %v433_v47 }
  0x94   :  { %v485_v30 = vadd.f32 %v477_v15, %v434_v31  ;;  %v486_v55 = vstv %s2852_s18  ;;  %v503_v3 = vstv %s2850_s17  ;;  %v520_v29 = vstv %s2872_s19  ;;  %s3151_s17 = sld [smem:[#allocation8 + $0xe]]  ;;  %s3162_s18 = sld [smem:[#allocation7 + $0xf]] }
  0x95   :  { %v504_v27 = vsub.f32 %v3789_v44, %v503_v3  ;;  %v505_v0 = vsub.f32 %v3790_v26, %v503_v3  ;;  %v506_v39 = vsub.f32 %v3791_v8, %v503_v3  ;;  %v507_v23 = vsub.f32 %v3792_v18, %v503_v3  ;;  %s3171_s19 = sld [smem:[#allocation2 + $0x10]] }
  0x96   :  { %v508_v11 = vsub.f32 %v3793_v52, %v503_v3  ;;  %v509_v50 = vsub.f32 %v2324_v6, %v503_v3  ;;  %v510_v5 = vsub.f32 %v2326_v7, %v503_v3  ;;  %v511_v51 = vsub.f32 %v2336_v12, %v503_v3 }
  0x97   :  { %v487_v17 = vmul.f32 %v486_v55, %v3775_v33  ;;  %v488_v13 = vmul.f32 %v486_v55, %v3777_v20  ;;  %v512_v47 = vmax.f32 %v504_v27, 0.0  ;;  %v513_v31 = vmax.f32 %v505_v0, 0.0 }
  0x98   :  { %v514_v10 = vmax.f32 %v506_v39, 0.0  ;;  %v515_v34 = vmax.f32 %v507_v23, 0.0  ;;  %v516_v37 = vmax.f32 %v508_v11, 0.0  ;;  %v489_v32 = vmul.f32 %v486_v55, %v3778_v63 }
  0x99   :  { %v490_v41 = vmul.f32 %v486_v55, %v3779_v38  ;;  %v491_v2 = vmul.f32 %v486_v55, %v3780_v45  ;;  %v492_v58 = vmul.f32 %v486_v55, %v466_v4  ;;  %v493_v25 = vmul.f32 %v486_v55, %v467_v28 }
  0x9a   :  { %v517_v42 = vmax.f32 %v509_v50, 0.0  ;;  %v518_v1 = vmax.f32 %v510_v5, 0.0  ;;  %v519_v15 = vmax.f32 %v511_v51, 0.0  ;;  %v494_v33 = vmul.f32 %v486_v55, %v468_v36 }
  0x9b   :  { %v495_v20 = vadd.f32 %v487_v17, %v444_v40  ;;  %v496_v16 = vadd.f32 %v488_v13, %v445_v59  ;;  %v521_v43 = vmul.f32 %v520_v29, %v512_v47  ;;  %v522_v14 = vmul.f32 %v520_v29, %v513_v31 }
  0x9c   :  { %v523_v48 = vmul.f32 %v520_v29, %v514_v10  ;;  %v524_v21 = vmul.f32 %v520_v29, %v515_v34  ;;  %v525_v57 = vmul.f32 %v520_v29, %v516_v37  ;;  %v497_v63 = vadd.f32 %v489_v32, %v446_v9 }
  0x9d   :  { %v498_v38 = vadd.f32 %v490_v41, %v447_v46  ;;  %v499_v45 = vadd.f32 %v491_v2, %v448_v53  ;;  %v500_v4 = vadd.f32 %v492_v58, %v449_v54  ;;  %v526_v28 = vmul.f32 %v520_v29, %v517_v42 }
  0x9e   :  { %v527_v3 = vmul.f32 %v520_v29, %v518_v1  ;;  %v528_v27 = vmul.f32 %v520_v29, %v519_v15  ;;  %v554_v0 = vstv %s2897_s20  ;;  %v501_v36 = vadd.f32 %v493_v25, %v450_v56  ;;  %s3173_s20 = sld [smem:[#allocation8 + $0xf]] }
  0x9f   :  { %v502_v55 = vadd.f32 %v494_v33, %v451_v35  ;;  %v529_v40 = vadd.f32 %v521_v43, %v478_v60  ;;  %v537_v59 = vstv %s2903_s21  ;;  %v530_v39 = vadd.f32 %v522_v14, %v479_v24  ;;  %s3176_s21 = sld [smem:[#allocation7 + $0x10]] }
  0xa0   :  { %v531_v23 = vadd.f32 %v523_v48, %v480_v61  ;;  %v532_v11 = vadd.f32 %v524_v21, %v481_v22  ;;  %v533_v50 = vadd.f32 %v525_v57, %v482_v62  ;;  %v555_v5 = vsub.f32 %v3789_v44, %v554_v0 }
  0xa1   :  { %v556_v51 = vsub.f32 %v3790_v26, %v554_v0  ;;  %v557_v9 = vsub.f32 %v3791_v8, %v554_v0  ;;  %v558_v46 = vsub.f32 %v3792_v18, %v554_v0  ;;  %v534_v53 = vadd.f32 %v526_v28, %v483_v19 }
  0xa2   :  { %v535_v54 = vadd.f32 %v527_v3, %v484_v49  ;;  %v536_v17 = vadd.f32 %v528_v27, %v485_v30  ;;  %v559_v56 = vsub.f32 %v3793_v52, %v554_v0  ;;  %v538_v35 = vmul.f32 %v537_v59, %v512_v47 }
  0xa3   :  { %v539_v60 = vmul.f32 %v537_v59, %v513_v31  ;;  %v540_v24 = vmul.f32 %v537_v59, %v514_v10  ;;  %v560_v61 = vsub.f32 %v2324_v6, %v554_v0  ;;  %v561_v22 = vsub.f32 %v2326_v7, %v554_v0 }
  0xa4   :  { %v562_v62 = vsub.f32 %v2336_v12, %v554_v0  ;;  %v563_v19 = vmax.f32 %v555_v5, 0.0  ;;  %v564_v49 = vmax.f32 %v556_v51, 0.0  ;;  %v565_v30 = vmax.f32 %v557_v9, 0.0 }
  0xa5   :  { %v566_v13 = vmax.f32 %v558_v46, 0.0  ;;  %v567_v29 = vmax.f32 %v559_v56, 0.0  ;;  %v571_v32 = vstv %s2911_s22  ;;  %v541_v41 = vmul.f32 %v537_v59, %v515_v34  ;;  %s3193_s22 = sld [smem:[#allocation2 + $0x11]] }
  0xa6   :  { %v542_v2 = vmul.f32 %v537_v59, %v516_v37  ;;  %v543_v58 = vmul.f32 %v537_v59, %v517_v42  ;;  %v544_v47 = vmul.f32 %v537_v59, %v518_v1  ;;  %v545_v31 = vmul.f32 %v537_v59, %v519_v15 }
  0xa7   :  { %v546_v10 = vadd.f32 %v538_v35, %v495_v20  ;;  %v547_v25 = vadd.f32 %v539_v60, %v496_v16  ;;  %v568_v33 = vmax.f32 %v560_v61, 0.0  ;;  %v2930_v43 = vadd.f32 %v540_v24, %v497_v63 }
  0xa8   :  { %v569_v14 = vmax.f32 %v561_v22, 0.0  ;;  %v570_v48 = vmax.f32 %v562_v62, 0.0  ;;  %v572_v21 = vmul.f32 %v571_v32, %v563_v19  ;;  %v573_v57 = vmul.f32 %v571_v32, %v564_v49 }
  0xa9   :  { %v574_v28 = vmul.f32 %v571_v32, %v565_v30  ;;  %v575_v3 = vmul.f32 %v571_v32, %v566_v13  ;;  %v576_v27 = vmul.f32 %v571_v32, %v567_v29  ;;  %v549_v34 = vadd.f32 %v541_v41, %v498_v38 }
  0xaa   :  { %v550_v37 = vadd.f32 %v542_v2, %v499_v45  ;;  %v551_v42 = vadd.f32 %v543_v58, %v500_v4  ;;  %v552_v1 = vadd.f32 %v544_v47, %v501_v36  ;;  %v553_v15 = vadd.f32 %v545_v31, %v502_v55 }
  0xab   :  { %v577_v20 = vmul.f32 %v571_v32, %v568_v33  ;;  %v588_v16 = vstv %s2922_s26  ;;  %v605_v0 = vstv %s2920_s23  ;;  %v578_v59 = vmul.f32 %v571_v32, %v569_v14  ;;  %s3202_s23 = sld [smem:[#allocation8 + $0x10]]  ;;  %s3204_s26 = sld [smem:[#allocation7 + $0x11]] }
  0xac   :  { %v579_v5 = vmul.f32 %v571_v32, %v570_v48  ;;  %v580_v63 = vadd.f32 %v572_v21, %v529_v40  ;;  %v622_v51 = vstv %s2925_s27  ;;  %v581_v9 = vadd.f32 %v573_v57, %v530_v39  ;;  %s3206_s27 = sld [smem:[#allocation8 + $0x11]] }
  0xad   :  { %v582_v46 = vadd.f32 %v574_v28, %v531_v23  ;;  %v583_v56 = vadd.f32 %v575_v3, %v532_v11  ;;  %v584_v35 = vadd.f32 %v576_v27, %v533_v50  ;;  %v606_v60 = vsub.f32 %v3789_v44, %v605_v0 }
  0xae   :  { %v607_v24 = vsub.f32 %v3790_v26, %v605_v0  ;;  %v608_v38 = vsub.f32 %v3791_v8, %v605_v0  ;;  %v609_v45 = vsub.f32 %v3792_v18, %v605_v0  ;;  %v585_v4 = vadd.f32 %v577_v20, %v534_v53 }
  0xaf   :  { %v610_v36 = vsub.f32 %v3793_v52, %v605_v0  ;;  %v611_v55 = vsub.f32 %v2324_v6, %v605_v0  ;;  %v612_v40 = vsub.f32 %v2326_v7, %v605_v0  ;;  %v586_v39 = vadd.f32 %v578_v59, %v535_v54 }
  0xb0   :  { %v587_v23 = vadd.f32 %v579_v5, %v536_v17  ;;  %v589_v11 = vmul.f32 %v588_v16, %v563_v19  ;;  %v613_v50 = vsub.f32 %v2336_v12, %v605_v0  ;;  %v614_v61 = vmax.f32 %v606_v60, 0.0 }
  0xb1   :  { %v2945_v22 = vmax.f32 %v607_v24, 0.0  ;;  %v2947_v62 = vmax.f32 %v608_v38, 0.0  ;;  %v2949_v32 = vmax.f32 %v609_v45, 0.0  ;;  %v590_v53 = vmul.f32 %v588_v16, %v564_v49 }
  0xb2   :  { %v618_v41 = vmax.f32 %v610_v36, 0.0  ;;  %v619_v2 = vmax.f32 %v611_v55, 0.0  ;;  %v620_v58 = vmax.f32 %v612_v40, 0.0  ;;  %v591_v47 = vmul.f32 %v588_v16, %v565_v30 }
  0xb3   :  { %v592_v31 = vmul.f32 %v588_v16, %v566_v13  ;;  %v593_v54 = vmul.f32 %v588_v16, %v567_v29  ;;  %v594_v17 = vmul.f32 %v588_v16, %v568_v33  ;;  %v595_v19 = vmul.f32 %v588_v16, %v569_v14 }
  0xb4   :  { %v596_v21 = vmul.f32 %v588_v16, %v570_v48  ;;  %v597_v57 = vadd.f32 %v589_v11, %v546_v10  ;;  %v621_v28 = vmax.f32 %v613_v50, 0.0  ;;  %v623_v3 = vmul.f32 %v622_v51, %v614_v61 }
  0xb5   :  { %v624_v27 = vmul.f32 %v622_v51, %v2945_v22  ;;  %v625_v49 = vmul.f32 %v622_v51, %v2947_v62  ;;  %v626_v20 = vmul.f32 %v622_v51, %v2949_v32  ;;  %v598_v30 = vadd.f32 %v590_v53, %v547_v25 }
  0xb6   :  { %v627_v13 = vmul.f32 %v622_v51, %v618_v41  ;;  %v628_v29 = vmul.f32 %v622_v51, %v619_v2  ;;  %v629_v33 = vmul.f32 %v622_v51, %v620_v58  ;;  %v599_v10 = vadd.f32 %v591_v47, %v2930_v43 }
  0xb7   :  { %v600_v14 = vadd.f32 %v592_v31, %v549_v34  ;;  %v601_v48 = vadd.f32 %v593_v54, %v550_v37  ;;  %v602_v16 = vadd.f32 %v594_v17, %v551_v42  ;;  %v603_v0 = vadd.f32 %v595_v19, %v552_v1 }
  0xb8   :  { %v604_v59 = vadd.f32 %v596_v21, %v553_v15  ;;  %v630_v5 = vmul.f32 %v622_v51, %v621_v28  ;;  %v656_v60 = vstv %s2942_s2  ;;  %v631_v24 = vadd.f32 %v623_v3, %v580_v63  ;;  %s3226_s2 = sld [smem:[#allocation2 + $0x12]] }
  0xb9   :  { %v632_v38 = vadd.f32 %v624_v27, %v581_v9  ;;  %v633_v45 = vadd.f32 %v625_v49, %v582_v46  ;;  %v634_v36 = vadd.f32 %v626_v20, %v583_v56  ;;  %v635_v25 = vadd.f32 %v627_v13, %v584_v35 }
  0xba   :  { %v636_v55 = vadd.f32 %v628_v29, %v585_v4  ;;  %v637_v40 = vadd.f32 %v629_v33, %v586_v39  ;;  %v639_v11 = vstv %s2951_s28  ;;  %v657_v50 = vsub.f32 %v3789_v44, %v656_v60  ;;  %s3231_s28 = sld [smem:[#allocation7 + $0x12]] }
  0xbb   :  { %v658_v43 = vsub.f32 %v3790_v26, %v656_v60  ;;  %v659_v34 = vsub.f32 %v3791_v8, %v656_v60  ;;  %v660_v37 = vsub.f32 %v3792_v18, %v656_v60  ;;  %v661_v42 = vsub.f32 %v3793_v52, %v656_v60 }
  0xbc   :  { %v662_v1 = vsub.f32 %v2324_v6, %v656_v60  ;;  %v663_v15 = vsub.f32 %v2326_v7, %v656_v60  ;;  %v664_v63 = vsub.f32 %v2336_v12, %v656_v60  ;;  %v638_v51 = vadd.f32 %v630_v5, %v587_v23 }
  0xbd   :  { %v2971_v9 = vmax.f32 %v657_v50, 0.0  ;;  %v673_v46 = vstv %s2953_s29  ;;  %v2975_v56 = vstv %s2955_s4  ;;  %v666_v44 = vmax.f32 %v658_v43, 0.0  ;;  %v3038_v50 = vld [vmem:[#allocation11 + $0x30] sm:$0xff]  ;;  %s3238_s29 = sld [smem:[#allocation2 + $0x13]]  ;;  %s3244_s4 = sld [smem:[#allocation8 + $0x12]] }
  0xbe   :  { %v2977_v26 = vmax.f32 %v659_v34, 0.0  ;;  %v2979_v8 = vmax.f32 %v660_v37, 0.0  ;;  %v2981_v18 = vmax.f32 %v661_v42, 0.0  ;;  %v640_v6 = vmul.f32 %v639_v11, %v614_v61  ;;  %v3041_v34 = vld [vmem:[#allocation11 + $0x38] sm:$0xff] }
  0xbf   :  { %v2985_v52 = vmax.f32 %v662_v1, 0.0  ;;  %v2987_v7 = vmax.f32 %v663_v15, 0.0  ;;  %v2989_v12 = vmax.f32 %v664_v63, 0.0  ;;  %v641_v35 = vmul.f32 %v639_v11, %v2945_v22 }
  0xc0   :  { %v642_v4 = vmul.f32 %v639_v11, %v2947_v62  ;;  %v643_v39 = vmul.f32 %v639_v11, %v2949_v32  ;;  %v644_v23 = vmul.f32 %v639_v11, %v618_v41  ;;  %v645_v53 = vmul.f32 %v639_v11, %v619_v2 }
  0xc1   :  { %v646_v47 = vmul.f32 %v639_v11, %v620_v58  ;;  %v647_v31 = vmul.f32 %v639_v11, %v621_v28  ;;  %v674_v54 = vmul.f32 %v673_v46, %v2971_v9  ;;  %v675_v61 = vmul.f32 %v673_v46, %v666_v44 }
  0xc2   :  { %v676_v17 = vmul.f32 %v673_v46, %v2977_v26  ;;  %v677_v19 = vmul.f32 %v673_v46, %v2979_v8  ;;  %v678_v21 = vmul.f32 %v673_v46, %v2981_v18  ;;  %v648_v22 = vadd.f32 %v640_v6, %v597_v57 }
  0xc3   :  { %v679_v62 = vmul.f32 %v673_v46, %v2985_v52  ;;  %v680_v32 = vmul.f32 %v673_v46, %v2987_v7  ;;  %v681_v41 = vmul.f32 %v673_v46, %v2989_v12  ;;  %v649_v2 = vadd.f32 %v641_v35, %v598_v30 }
  0xc4   :  { %v650_v58 = vadd.f32 %v642_v4, %v599_v10  ;;  %v651_v28 = vadd.f32 %v643_v39, %v600_v14  ;;  %v652_v3 = vadd.f32 %v644_v23, %v601_v48  ;;  %v653_v27 = vadd.f32 %v645_v53, %v602_v16  ;;  %v3018_v14 = vld [vmem:[#allocation11] sm:$0xff]  ;;  %v3021_v16 = vld [vmem:[#allocation11 + $0x8] sm:$0xff] }
  0xc5   :  { %v654_v49 = vadd.f32 %v646_v47, %v603_v0  ;;  %v655_v20 = vadd.f32 %v647_v31, %v604_v59  ;;  %v682_v13 = vadd.f32 %v674_v54, %v631_v24  ;;  %v3003_v29 = vadd.f32 %v675_v61, %v632_v38  ;;  %v3024_v59 = vld [vmem:[#allocation11 + $0x10] sm:$0xff]  ;;  %v3027_v38 = vld [vmem:[#allocation11 + $0x18] sm:$0xff] }
  0xc6   :  { %v3005_v33 = vadd.f32 %v676_v17, %v633_v45  ;;  %v3007_v57 = vadd.f32 %v677_v19, %v634_v36  ;;  %v3009_v5 = vadd.f32 %v678_v21, %v635_v25  ;;  %v3011_v60 = vadd.f32 %v679_v62, %v636_v55  ;;  %v3032_v36 = vld [vmem:[#allocation11 + $0x20] sm:$0xff]  ;;  %v3035_v55 = vld [vmem:[#allocation11 + $0x28] sm:$0xff] }
  0xc7   :  { %v3013_v11 = vadd.f32 %v680_v32, %v637_v40  ;;  %v3015_v30 = vadd.f32 %v681_v41, %v638_v51  ;;  %v707_v10 = vstv %s2983_s30  ;;  %v691_v42 = vmul.f32 %v2975_v56, %v2971_v9  ;;  %s3255_s30 = sld [smem:[#allocation7 + $0x13]] }
  0xc8   :  { %v708_v48 = vsub.f32 %v3018_v14, %v707_v10  ;;  %v709_v0 = vsub.f32 %v3021_v16, %v707_v10  ;;  %v710_v24 = vsub.f32 %v3024_v59, %v707_v10  ;;  %v711_v45 = vsub.f32 %v3027_v38, %v707_v10 }
  0xc9   :  { %v712_v25 = vsub.f32 %v3032_v36, %v707_v10  ;;  %v713_v40 = vsub.f32 %v3035_v55, %v707_v10  ;;  %v714_v43 = vsub.f32 %v3038_v50, %v707_v10  ;;  %v715_v37 = vsub.f32 %v3041_v34, %v707_v10 }
  0xca   :  { %v692_v1 = vmul.f32 %v2975_v56, %v666_v44  ;;  %v716_v15 = vmax.f32 %v708_v48, 0.0  ;;  %v724_v63 = vstv %s2995_s6  ;;  %v717_v51 = vmax.f32 %v709_v0, 0.0  ;;  %s3264_s6 = sld [smem:[#allocation2 + $0x14]] }
  0xcb   :  { %v718_v46 = vmax.f32 %v710_v24, 0.0  ;;  %v719_v6 = vmax.f32 %v711_v45, 0.0  ;;  %v720_v35 = vmax.f32 %v712_v25, 0.0  ;;  %v693_v4 = vmul.f32 %v2975_v56, %v2977_v26 }
  0xcc   :  { %v694_v39 = vmul.f32 %v2975_v56, %v2979_v8  ;;  %v695_v23 = vmul.f32 %v2975_v56, %v2981_v18  ;;  %v696_v9 = vmul.f32 %v2975_v56, %v2985_v52  ;;  %v697_v44 = vmul.f32 %v2975_v56, %v2987_v7 }
  0xcd   :  { %v721_v53 = vmax.f32 %v713_v40, 0.0  ;;  %v722_v47 = vmax.f32 %v714_v43, 0.0  ;;  %v723_v31 = vmax.f32 %v715_v37, 0.0  ;;  %v698_v54 = vmul.f32 %v2975_v56, %v2989_v12 }
  0xce   :  { %v699_v26 = vadd.f32 %v691_v42, %v648_v22  ;;  %v700_v61 = vadd.f32 %v692_v1, %v649_v2  ;;  %v725_v17 = vmul.f32 %v724_v63, %v716_v15  ;;  %v726_v8 = vmul.f32 %v724_v63, %v717_v51 }
  0xcf   :  { %v727_v19 = vmul.f32 %v724_v63, %v718_v46  ;;  %v728_v18 = vmul.f32 %v724_v63, %v719_v6  ;;  %v729_v21 = vmul.f32 %v724_v63, %v720_v35  ;;  %v701_v52 = vadd.f32 %v693_v4, %v650_v58 }
  0xd0   :  { %v702_v62 = vadd.f32 %v694_v39, %v651_v28  ;;  %v703_v7 = vadd.f32 %v695_v23, %v652_v3  ;;  %v704_v32 = vadd.f32 %v696_v9, %v653_v27  ;;  %v730_v41 = vmul.f32 %v724_v63, %v721_v53 }
  0xd1   :  { %v731_v10 = vmul.f32 %v724_v63, %v722_v47  ;;  %v732_v48 = vmul.f32 %v724_v63, %v723_v31  ;;  %v758_v0 = vstv %s3030_s7  ;;  %v705_v56 = vadd.f32 %v697_v44, %v654_v49  ;;  %s3266_s7 = sld [smem:[#allocation8 + $0x13]] }
  0xd2   :  { %v706_v12 = vadd.f32 %v698_v54, %v655_v20  ;;  %v733_v22 = vadd.f32 %v725_v17, %v682_v13  ;;  %v741_v2 = vstv %s3044_s8  ;;  %v734_v24 = vadd.f32 %v726_v8, %v3003_v29  ;;  %s3269_s8 = sld [smem:[#allocation7 + $0x14]] }
  0xd3   :  { %v735_v45 = vadd.f32 %v727_v19, %v3005_v33  ;;  %v736_v25 = vadd.f32 %v728_v18, %v3007_v57  ;;  %v737_v40 = vadd.f32 %v729_v21, %v3009_v5  ;;  %v759_v58 = vsub.f32 %v3018_v14, %v758_v0 }
  0xd4   :  { %v760_v28 = vsub.f32 %v3021_v16, %v758_v0  ;;  %v761_v3 = vsub.f32 %v3024_v59, %v758_v0  ;;  %v762_v27 = vsub.f32 %v3027_v38, %v758_v0  ;;  %v738_v49 = vadd.f32 %v730_v41, %v3011_v60 }
  0xd5   :  { %v739_v20 = vadd.f32 %v731_v10, %v3013_v11  ;;  %v740_v13 = vadd.f32 %v732_v48, %v3015_v30  ;;  %v763_v29 = vsub.f32 %v3032_v36, %v758_v0  ;;  %v742_v33 = vmul.f32 %v741_v2, %v716_v15 }
  0xd6   :  { %v743_v57 = vmul.f32 %v741_v2, %v717_v51  ;;  %v744_v5 = vmul.f32 %v741_v2, %v718_v46  ;;  %v764_v43 = vsub.f32 %v3035_v55, %v758_v0  ;;  %v765_v60 = vsub.f32 %v3038_v50, %v758_v0 }
  0xd7   :  { %v766_v11 = vsub.f32 %v3041_v34, %v758_v0  ;;  %v767_v37 = vmax.f32 %v759_v58, 0.0  ;;  %v768_v30 = vmax.f32 %v760_v28, 0.0  ;;  %v769_v42 = vmax.f32 %v761_v3, 0.0 }
  0xd8   :  { %v770_v1 = vmax.f32 %v762_v27, 0.0  ;;  %v771_v63 = vmax.f32 %v763_v29, 0.0  ;;  %v775_v4 = vstv %s3062_s9  ;;  %v745_v39 = vmul.f32 %v741_v2, %v719_v6  ;;  %s3286_s9 = sld [smem:[#allocation2 + $0x15]] }
  0xd9   :  { %v746_v23 = vmul.f32 %v741_v2, %v720_v35  ;;  %v747_v9 = vmul.f32 %v741_v2, %v721_v53  ;;  %v748_v15 = vmul.f32 %v741_v2, %v722_v47  ;;  %v749_v51 = vmul.f32 %v741_v2, %v723_v31 }
  0xda   :  { %v750_v46 = vadd.f32 %v742_v33, %v699_v26  ;;  %v751_v44 = vadd.f32 %v743_v57, %v700_v61  ;;  %v772_v54 = vmax.f32 %v764_v43, 0.0  ;;  %v3088_v17 = vadd.f32 %v744_v5, %v701_v52 }
  0xdb   :  { %v773_v8 = vmax.f32 %v765_v60, 0.0  ;;  %v774_v19 = vmax.f32 %v766_v11, 0.0  ;;  %v776_v18 = vmul.f32 %v775_v4, %v767_v37  ;;  %v777_v21 = vmul.f32 %v775_v4, %v768_v30 }
  0xdc   :  { %v778_v41 = vmul.f32 %v775_v4, %v769_v42  ;;  %v779_v10 = vmul.f32 %v775_v4, %v770_v1  ;;  %v780_v48 = vmul.f32 %v775_v4, %v771_v63  ;;  %v753_v6 = vadd.f32 %v745_v39, %v702_v62 }
  0xdd   :  { %v754_v35 = vadd.f32 %v746_v23, %v703_v7  ;;  %v755_v53 = vadd.f32 %v747_v9, %v704_v32  ;;  %v756_v47 = vadd.f32 %v748_v15, %v705_v56  ;;  %v757_v31 = vadd.f32 %v749_v51, %v706_v12 }
  0xde   :  { %v781_v26 = vmul.f32 %v775_v4, %v772_v54  ;;  %v792_v61 = vstv %s3080_s11  ;;  %v809_v0 = vstv %s3078_s10  ;;  %v782_v2 = vmul.f32 %v775_v4, %v773_v8  ;;  %s3295_s10 = sld [smem:[#allocation8 + $0x14]]  ;;  %s3297_s11 = sld [smem:[#allocation7 + $0x15]] }
  0xdf   :  { %v783_v58 = vmul.f32 %v775_v4, %v774_v19  ;;  %v784_v52 = vadd.f32 %v776_v18, %v733_v22  ;;  %v826_v28 = vstv %s3083_s12  ;;  %v785_v3 = vadd.f32 %v777_v21, %v734_v24  ;;  %s3299_s12 = sld [smem:[#allocation8 + $0x15]] }
  0xe0   :  { %v786_v27 = vadd.f32 %v778_v41, %v735_v45  ;;  %v787_v29 = vadd.f32 %v779_v10, %v736_v25  ;;  %v788_v33 = vadd.f32 %v780_v48, %v737_v40  ;;  %v810_v57 = vsub.f32 %v3018_v14, %v809_v0 }
  0xe1   :  { %v811_v5 = vsub.f32 %v3021_v16, %v809_v0  ;;  %v812_v62 = vsub.f32 %v3024_v59, %v809_v0  ;;  %v813_v7 = vsub.f32 %v3027_v38, %v809_v0  ;;  %v789_v32 = vadd.f32 %v781_v26, %v738_v49 }
  0xe2   :  { %v814_v56 = vsub.f32 %v3032_v36, %v809_v0  ;;  %v815_v12 = vsub.f32 %v3035_v55, %v809_v0  ;;  %v816_v22 = vsub.f32 %v3038_v50, %v809_v0  ;;  %v790_v24 = vadd.f32 %v782_v2, %v739_v20 }
  0xe3   :  { %v791_v45 = vadd.f32 %v783_v58, %v740_v13  ;;  %v793_v25 = vmul.f32 %v792_v61, %v767_v37  ;;  %v817_v40 = vsub.f32 %v3041_v34, %v809_v0  ;;  %v818_v43 = vmax.f32 %v810_v57, 0.0 }
  0xe4   :  { %v3103_v60 = vmax.f32 %v811_v5, 0.0  ;;  %v3105_v11 = vmax.f32 %v812_v62, 0.0  ;;  %v3107_v4 = vmax.f32 %v813_v7, 0.0  ;;  %v794_v49 = vmul.f32 %v792_v61, %v768_v30 }
  0xe5   :  { %v822_v39 = vmax.f32 %v814_v56, 0.0  ;;  %v823_v23 = vmax.f32 %v815_v12, 0.0  ;;  %v824_v9 = vmax.f32 %v816_v22, 0.0  ;;  %v795_v15 = vmul.f32 %v792_v61, %v769_v42 }
  0xe6   :  { %v796_v51 = vmul.f32 %v792_v61, %v770_v1  ;;  %v797_v20 = vmul.f32 %v792_v61, %v771_v63  ;;  %v798_v13 = vmul.f32 %v792_v61, %v772_v54  ;;  %v799_v37 = vmul.f32 %v792_v61, %v773_v8 }
  0xe7   :  { %v800_v18 = vmul.f32 %v792_v61, %v774_v19  ;;  %v801_v21 = vadd.f32 %v793_v25, %v750_v46  ;;  %v825_v41 = vmax.f32 %v817_v40, 0.0  ;;  %v827_v10 = vmul.f32 %v826_v28, %v818_v43 }
  0xe8   :  { %v828_v48 = vmul.f32 %v826_v28, %v3103_v60  ;;  %v829_v30 = vmul.f32 %v826_v28, %v3105_v11  ;;  %v830_v26 = vmul.f32 %v826_v28, %v3107_v4  ;;  %v802_v42 = vadd.f32 %v794_v49, %v751_v44 }
  0xe9   :  { %v831_v1 = vmul.f32 %v826_v28, %v822_v39  ;;  %v832_v63 = vmul.f32 %v826_v28, %v823_v23  ;;  %v833_v54 = vmul.f32 %v826_v28, %v824_v9  ;;  %v803_v46 = vadd.f32 %v795_v15, %v3088_v17 }
  0xea   :  { %v804_v8 = vadd.f32 %v796_v51, %v753_v6  ;;  %v805_v19 = vadd.f32 %v797_v20, %v754_v35  ;;  %v806_v61 = vadd.f32 %v798_v13, %v755_v53  ;;  %v807_v0 = vadd.f32 %v799_v37, %v756_v47 }
  0xeb   :  { %v808_v2 = vadd.f32 %v800_v18, %v757_v31  ;;  %v834_v58 = vmul.f32 %v826_v28, %v825_v41  ;;  %v860_v57 = vstv %s3100_s13  ;;  %v835_v5 = vadd.f32 %v827_v10, %v784_v52  ;;  %s3319_s13 = sld [smem:[#allocation2 + $0x16]] }
  0xec   :  { %v836_v62 = vadd.f32 %v828_v48, %v785_v3  ;;  %v837_v7 = vadd.f32 %v829_v30, %v786_v27  ;;  %v838_v56 = vadd.f32 %v830_v26, %v787_v29  ;;  %v839_v44 = vadd.f32 %v831_v1, %v788_v33 }
  0xed   :  { %v840_v12 = vadd.f32 %v832_v63, %v789_v32  ;;  %v841_v22 = vadd.f32 %v833_v54, %v790_v24  ;;  %v843_v25 = vstv %s3109_s14  ;;  %v861_v40 = vsub.f32 %v3018_v14, %v860_v57  ;;  %s3324_s14 = sld [smem:[#allocation7 + $0x16]] }
  0xee   :  { %v862_v17 = vsub.f32 %v3021_v16, %v860_v57  ;;  %v863_v6 = vsub.f32 %v3024_v59, %v860_v57  ;;  %v864_v35 = vsub.f32 %v3027_v38, %v860_v57  ;;  %v865_v53 = vsub.f32 %v3032_v36, %v860_v57 }
  0xef   :  { %v866_v47 = vsub.f32 %v3035_v55, %v860_v57  ;;  %v867_v31 = vsub.f32 %v3038_v50, %v860_v57  ;;  %v868_v52 = vsub.f32 %v3041_v34, %v860_v57  ;;  %v842_v28 = vadd.f32 %v834_v58, %v791_v45 }
  0xf0   :  { %v869_v3 = vmax.f32 %v861_v40, 0.0  ;;  %v877_v27 = vstv %s3111_s0  ;;  %v3131_v29 = vstv %s3113_s1  ;;  %v870_v33 = vmax.f32 %v862_v17, 0.0  ;;  %s3331_s0 = sld [smem:[#allocation2 + $0x17]]  ;;  %s3337_s1 = sld [smem:[#allocation8 + $0x16]] }
  0xf1   :  { %3794 = vst [vmem:[#allocation31_spill] sm:$0xff] %v3131_v29  ;;  %v871_v32 = vmax.f32 %v863_v6, 0.0  ;;  %v872_v24 = vmax.f32 %v864_v35, 0.0  ;;  %v873_v49 = vmax.f32 %v865_v53, 0.0  ;;  %v844_v15 = vmul.f32 %v843_v25, %v818_v43 }
  0xf2   :  { %v874_v51 = vmax.f32 %v866_v47, 0.0  ;;  %v875_v20 = vmax.f32 %v867_v31, 0.0  ;;  %v876_v13 = vmax.f32 %v868_v52, 0.0  ;;  %v845_v37 = vmul.f32 %v843_v25, %v3103_v60 }
  0xf3   :  { %v846_v18 = vmul.f32 %v843_v25, %v3105_v11  ;;  %v847_v45 = vmul.f32 %v843_v25, %v3107_v4  ;;  %v848_v10 = vmul.f32 %v843_v25, %v822_v39  ;;  %v849_v48 = vmul.f32 %v843_v25, %v823_v23 }
  0xf4   :  { %v850_v30 = vmul.f32 %v843_v25, %v824_v9  ;;  %v851_v26 = vmul.f32 %v843_v25, %v825_v41  ;;  %v878_v1 = vmul.f32 %v877_v27, %v869_v3  ;;  %v879_v63 = vmul.f32 %v877_v27, %v870_v33 }
  0xf5   :  { %v880_v54 = vmul.f32 %v877_v27, %v871_v32  ;;  %v881_v58 = vmul.f32 %v877_v27, %v872_v24  ;;  %v882_v43 = vmul.f32 %v877_v27, %v873_v49  ;;  %v852_v57 = vadd.f32 %v844_v15, %v801_v21 }
  0xf6   :  { %v883_v40 = vmul.f32 %v877_v27, %v874_v51  ;;  %v884_v17 = vmul.f32 %v877_v27, %v875_v20  ;;  %v885_v6 = vmul.f32 %v877_v27, %v876_v13  ;;  %v853_v60 = vadd.f32 %v845_v37, %v802_v42 }
  0xf7   :  { %v854_v11 = vadd.f32 %v846_v18, %v803_v46  ;;  %v855_v35 = vadd.f32 %v847_v45, %v804_v8  ;;  %v856_v4 = vadd.f32 %v848_v10, %v805_v19  ;;  %v857_v39 = vadd.f32 %v849_v48, %v806_v61 }
  0xf8   :  { %v858_v23 = vadd.f32 %v850_v30, %v807_v0  ;;  %v859_v9 = vadd.f32 %v851_v26, %v808_v2  ;;  %v886_v41 = vadd.f32 %v878_v1, %v835_v5  ;;  %v887_v25 = vadd.f32 %v879_v63, %v836_v62  ;;  %v3795_v5 = vld [vmem:[#allocation31_spill] sm:$0xff] }
  0xf9   :  { %v888_v53 = vadd.f32 %v880_v54, %v837_v7  ;;  %v889_v47 = vadd.f32 %v881_v58, %v838_v56  ;;  %v890_v31 = vadd.f32 %v882_v43, %v839_v44  ;;  %v891_v52 = vadd.f32 %v883_v40, %v840_v12 }
  0xfa   :  { %v892_v29 = vadd.f32 %v884_v17, %v841_v22  ;;  %v893_v21 = vadd.f32 %v885_v6, %v842_v28  ;;  %v911_v15 = vstv %s3133_s3  ;;  %v901_v12 = vmul.f32 %v3795_v5, %v875_v20  ;;  %s3348_s3 = sld [smem:[#allocation7 + $0x17]] }
  0xfb   :  { %v912_v27 = vsub.f32 %v3018_v14, %v911_v15  ;;  %v913_v42 = vsub.f32 %v3021_v16, %v911_v15  ;;  %v914_v46 = vsub.f32 %v3024_v59, %v911_v15  ;;  %v915_v8 = vsub.f32 %v3027_v38, %v911_v15 }
  0xfc   :  { %v916_v19 = vsub.f32 %v3032_v36, %v911_v15  ;;  %v917_v61 = vsub.f32 %v3035_v55, %v911_v15  ;;  %v918_v0 = vsub.f32 %v3038_v50, %v911_v15  ;;  %v919_v2 = vsub.f32 %v3041_v34, %v911_v15  ;;  %v3796_v15 = vld [vmem:[#allocation23_spill] sm:$0xff] }
  0xfd   :  { %v895_v14 = vmul.f32 %v3795_v5, %v869_v3  ;;  %v896_v16 = vmul.f32 %v3795_v5, %v870_v33  ;;  %v920_v62 = vmax.f32 %v912_v27, 0.0  ;;  %v928_v59 = vstv %s3138_s15  ;;  %s3357_s15 = sld [smem:[#allocation2 + $0x18]] }
  0xfe   :  { %v921_v7 = vmax.f32 %v913_v42, 0.0  ;;  %v922_v38 = vmax.f32 %v914_v46, 0.0  ;;  %v923_v56 = vmax.f32 %v915_v8, 0.0  ;;  %v924_v44 = vmax.f32 %v916_v19, 0.0  ;;  %v3797_v42 = vld [vmem:[#allocation24_spill] sm:$0xff] }
  0xff   :  { %v897_v36 = vmul.f32 %v3795_v5, %v871_v32  ;;  %v898_v55 = vmul.f32 %v3795_v5, %v872_v24  ;;  %v899_v50 = vmul.f32 %v3795_v5, %v873_v49  ;;  %v900_v34 = vmul.f32 %v3795_v5, %v874_v51 }
 0x100   :  { %v925_v22 = vmax.f32 %v917_v61, 0.0  ;;  %v926_v28 = vmax.f32 %v918_v0, 0.0  ;;  %v927_v3 = vmax.f32 %v919_v2, 0.0  ;;  %v902_v33 = vmul.f32 %v3795_v5, %v876_v13  ;;  %v3800_v0 = vld [vmem:[#allocation27_spill] sm:$0xff]  ;;  %v3803_v5 = vld [vmem:[#allocation30_spill] sm:$0xff] }
 0x101   :  { %v903_v37 = vadd.f32 %v895_v14, %v852_v57  ;;  %v904_v18 = vadd.f32 %v896_v16, %v853_v60  ;;  %v929_v45 = vmul.f32 %v928_v59, %v920_v62  ;;  %v930_v10 = vmul.f32 %v928_v59, %v921_v7 }
 0x102   :  { %v931_v32 = vmul.f32 %v928_v59, %v922_v38  ;;  %v932_v48 = vmul.f32 %v928_v59, %v923_v56  ;;  %v933_v24 = vmul.f32 %v928_v59, %v924_v44  ;;  %v905_v49 = vadd.f32 %v897_v36, %v854_v11  ;;  %v3798_v11 = vld [vmem:[#allocation25_spill] sm:$0xff] }
 0x103   :  { %v906_v51 = vadd.f32 %v898_v55, %v855_v35  ;;  %v907_v30 = vadd.f32 %v899_v50, %v856_v4  ;;  %v908_v20 = vadd.f32 %v900_v34, %v857_v39  ;;  %v934_v26 = vmul.f32 %v928_v59, %v925_v22  ;;  %v3799_v4 = vld [vmem:[#allocation26_spill] sm:$0xff] }
 0x104   :  { %v935_v1 = vmul.f32 %v928_v59, %v926_v28  ;;  %v936_v63 = vmul.f32 %v928_v59, %v927_v3  ;;  %v962_v54 = vstv %s3145_s16  ;;  %v909_v13 = vadd.f32 %v901_v12, %v858_v23  ;;  %s3359_s16 = sld [smem:[#allocation8 + $0x17]] }
 0x105   :  { %v910_v58 = vadd.f32 %v902_v33, %v859_v9  ;;  %v937_v43 = vadd.f32 %v929_v45, %v886_v41  ;;  %v945_v57 = vstv %s3151_s17  ;;  %v938_v40 = vadd.f32 %v930_v10, %v887_v25  ;;  %s3362_s17 = sld [smem:[#allocation7 + $0x18]] }
 0x106   :  { %v939_v17 = vadd.f32 %v931_v32, %v888_v53  ;;  %v940_v6 = vadd.f32 %v932_v48, %v889_v47  ;;  %v941_v60 = vadd.f32 %v933_v24, %v890_v31  ;;  %v963_v27 = vsub.f32 %v3796_v15, %v962_v54  ;;  %v3801_v53 = vld [vmem:[#allocation28_spill] sm:$0xff]  ;;  %v3802_v31 = vld [vmem:[#allocation29_spill] sm:$0xff] }
 0x107   :  { %v964_v46 = vsub.f32 %v3797_v42, %v962_v54  ;;  %v965_v35 = vsub.f32 %v3798_v11, %v962_v54  ;;  %v966_v39 = vsub.f32 %v3799_v4, %v962_v54  ;;  %v942_v8 = vadd.f32 %v934_v26, %v891_v52 }
 0x108   :  { %v943_v19 = vadd.f32 %v935_v1, %v892_v29  ;;  %v944_v61 = vadd.f32 %v936_v63, %v893_v21  ;;  %v967_v23 = vsub.f32 %v3800_v0, %v962_v54  ;;  %v946_v9 = vmul.f32 %v945_v57, %v920_v62 }
 0x109   :  { %v947_v41 = vmul.f32 %v945_v57, %v921_v7  ;;  %v948_v25 = vmul.f32 %v945_v57, %v922_v38  ;;  %v968_v47 = vsub.f32 %v3801_v53, %v962_v54  ;;  %v969_v2 = vsub.f32 %v3802_v31, %v962_v54 }
 0x10a   :  { %v970_v52 = vsub.f32 %v3803_v5, %v962_v54  ;;  %v971_v29 = vmax.f32 %v963_v27, 0.0  ;;  %v972_v21 = vmax.f32 %v964_v46, 0.0  ;;  %v973_v14 = vmax.f32 %v965_v35, 0.0 }
 0x10b   :  { %v974_v16 = vmax.f32 %v966_v39, 0.0  ;;  %v975_v59 = vmax.f32 %v967_v23, 0.0  ;;  %v979_v36 = vstv %s3162_s18  ;;  %v949_v55 = vmul.f32 %v945_v57, %v923_v56  ;;  %s3379_s18 = sld [smem:[#allocation2 + $0x19]] }
 0x10c   :  { %v950_v50 = vmul.f32 %v945_v57, %v924_v44  ;;  %v951_v34 = vmul.f32 %v945_v57, %v925_v22  ;;  %v952_v62 = vmul.f32 %v945_v57, %v926_v28  ;;  %v953_v7 = vmul.f32 %v945_v57, %v927_v3 }
 0x10d   :  { %v954_v38 = vadd.f32 %v946_v9, %v903_v37  ;;  %v955_v12 = vadd.f32 %v947_v41, %v904_v18  ;;  %v976_v33 = vmax.f32 %v968_v47, 0.0  ;;  %v3181_v45 = vadd.f32 %v948_v25, %v905_v49 }
 0x10e   :  { %v977_v10 = vmax.f32 %v969_v2, 0.0  ;;  %v978_v32 = vmax.f32 %v970_v52, 0.0  ;;  %v980_v48 = vmul.f32 %v979_v36, %v971_v29  ;;  %v981_v24 = vmul.f32 %v979_v36, %v972_v21 }
 0x10f   :  { %v982_v26 = vmul.f32 %v979_v36, %v973_v14  ;;  %v983_v1 = vmul.f32 %v979_v36, %v974_v16  ;;  %v984_v63 = vmul.f32 %v979_v36, %v975_v59  ;;  %v957_v56 = vadd.f32 %v949_v55, %v906_v51 }
 0x110   :  { %v958_v44 = vadd.f32 %v950_v50, %v907_v30  ;;  %v959_v22 = vadd.f32 %v951_v34, %v908_v20  ;;  %v960_v28 = vadd.f32 %v952_v62, %v909_v13  ;;  %v961_v3 = vadd.f32 %v953_v7, %v910_v58 }
 0x111   :  { %v985_v37 = vmul.f32 %v979_v36, %v976_v33  ;;  %v996_v18 = vstv %s3173_s20  ;;  %v1013_v54 = vstv %s3171_s19  ;;  %v986_v57 = vmul.f32 %v979_v36, %v977_v10  ;;  %s3388_s19 = sld [smem:[#allocation8 + $0x18]]  ;;  %s3390_s20 = sld [smem:[#allocation7 + $0x19]] }
 0x112   :  { %v987_v27 = vmul.f32 %v979_v36, %v978_v32  ;;  %v988_v49 = vadd.f32 %v980_v48, %v937_v43  ;;  %v1030_v46 = vstv %s3176_s21  ;;  %v989_v35 = vadd.f32 %v981_v24, %v938_v40  ;;  %s3392_s21 = sld [smem:[#allocation8 + $0x19]] }
 0x113   :  { %v990_v39 = vadd.f32 %v982_v26, %v939_v17  ;;  %v991_v23 = vadd.f32 %v983_v1, %v940_v6  ;;  %v992_v9 = vadd.f32 %v984_v63, %v941_v60  ;;  %v1014_v41 = vsub.f32 %v3796_v15, %v1013_v54 }
 0x114   :  { %v1015_v25 = vsub.f32 %v3797_v42, %v1013_v54  ;;  %v1016_v51 = vsub.f32 %v3798_v11, %v1013_v54  ;;  %v1017_v30 = vsub.f32 %v3799_v4, %v1013_v54  ;;  %v993_v20 = vadd.f32 %v985_v37, %v942_v8 }
 0x115   :  { %v1018_v13 = vsub.f32 %v3800_v0, %v1013_v54  ;;  %v1019_v58 = vsub.f32 %v3801_v53, %v1013_v54  ;;  %v1020_v43 = vsub.f32 %v3802_v31, %v1013_v54  ;;  %v994_v40 = vadd.f32 %v986_v57, %v943_v19 }
 0x116   :  { %v995_v17 = vadd.f32 %v987_v27, %v944_v61  ;;  %v997_v6 = vmul.f32 %v996_v18, %v971_v29  ;;  %v1021_v60 = vsub.f32 %v3803_v5, %v1013_v54  ;;  %v1022_v47 = vmax.f32 %v1014_v41, 0.0 }
 0x117   :  { %v3196_v2 = vmax.f32 %v1015_v25, 0.0  ;;  %v3198_v52 = vmax.f32 %v1016_v51, 0.0  ;;  %v3200_v36 = vmax.f32 %v1017_v30, 0.0  ;;  %v998_v8 = vmul.f32 %v996_v18, %v972_v21 }
 0x118   :  { %v1026_v55 = vmax.f32 %v1018_v13, 0.0  ;;  %v1027_v50 = vmax.f32 %v1019_v58, 0.0  ;;  %v1028_v34 = vmax.f32 %v1020_v43, 0.0  ;;  %v999_v62 = vmul.f32 %v996_v18, %v973_v14 }
 0x119   :  { %v1000_v7 = vmul.f32 %v996_v18, %v974_v16  ;;  %v1001_v19 = vmul.f32 %v996_v18, %v975_v59  ;;  %v1002_v61 = vmul.f32 %v996_v18, %v976_v33  ;;  %v1003_v29 = vmul.f32 %v996_v18, %v977_v10 }
 0x11a   :  { %v1004_v48 = vmul.f32 %v996_v18, %v978_v32  ;;  %v1005_v24 = vadd.f32 %v997_v6, %v954_v38  ;;  %v1029_v26 = vmax.f32 %v1021_v60, 0.0  ;;  %v1031_v1 = vmul.f32 %v1030_v46, %v1022_v47 }
 0x11b   :  { %v1032_v63 = vmul.f32 %v1030_v46, %v3196_v2  ;;  %v1033_v21 = vmul.f32 %v1030_v46, %v3198_v52  ;;  %v1034_v37 = vmul.f32 %v1030_v46, %v3200_v36  ;;  %v1006_v14 = vadd.f32 %v998_v8, %v955_v12 }
 0x11c   :  { %v1035_v16 = vmul.f32 %v1030_v46, %v1026_v55  ;;  %v1036_v59 = vmul.f32 %v1030_v46, %v1027_v50  ;;  %v1037_v33 = vmul.f32 %v1030_v46, %v1028_v34  ;;  %v1007_v38 = vadd.f32 %v999_v62, %v3181_v45 }
 0x11d   :  { %v1008_v10 = vadd.f32 %v1000_v7, %v957_v56  ;;  %v1009_v32 = vadd.f32 %v1001_v19, %v958_v44  ;;  %v1010_v18 = vadd.f32 %v1002_v61, %v959_v22  ;;  %v1011_v54 = vadd.f32 %v1003_v29, %v960_v28 }
 0x11e   :  { %v1012_v57 = vadd.f32 %v1004_v48, %v961_v3  ;;  %v1038_v27 = vmul.f32 %v1030_v46, %v1029_v26  ;;  %v1064_v41 = vstv %s3193_s22  ;;  %v1039_v25 = vadd.f32 %v1031_v1, %v988_v49  ;;  %s3412_s22 = sld [smem:[#allocation2 + $0x1a]] }
 0x11f   :  { %v1040_v51 = vadd.f32 %v1032_v63, %v989_v35  ;;  %v1041_v30 = vadd.f32 %v1033_v21, %v990_v39  ;;  %v1042_v13 = vadd.f32 %v1034_v37, %v991_v23  ;;  %v1043_v12 = vadd.f32 %v1035_v16, %v992_v9 }
 0x120   :  { %v1044_v58 = vadd.f32 %v1036_v59, %v993_v20  ;;  %v1045_v43 = vadd.f32 %v1037_v33, %v994_v40  ;;  %v1047_v6 = vstv %s3202_s23  ;;  %v1065_v60 = vsub.f32 %v3796_v15, %v1064_v41  ;;  %s3417_s23 = sld [smem:[#allocation7 + $0x1a]] }
 0x121   :  { %v1066_v45 = vsub.f32 %v3797_v42, %v1064_v41  ;;  %v1067_v56 = vsub.f32 %v3798_v11, %v1064_v41  ;;  %v1068_v44 = vsub.f32 %v3799_v4, %v1064_v41  ;;  %v1069_v22 = vsub.f32 %v3800_v0, %v1064_v41 }
 0x122   :  { %v1070_v28 = vsub.f32 %v3801_v53, %v1064_v41  ;;  %v1071_v3 = vsub.f32 %v3802_v31, %v1064_v41  ;;  %v1072_v49 = vsub.f32 %v3803_v5, %v1064_v41  ;;  %v1046_v46 = vadd.f32 %v1038_v27, %v995_v17 }
 0x123   :  { %v1073_v35 = vmax.f32 %v1065_v60, 0.0  ;;  %v1081_v39 = vstv %s3204_s26  ;;  %v3224_v23 = vstv %s3206_s27  ;;  %v1074_v9 = vmax.f32 %v1066_v45, 0.0  ;;  %s3424_s26 = sld [smem:[#allocation2 + $0x1b]]  ;;  %s3430_s27 = sld [smem:[#allocation8 + $0x1a]] }
 0x124   :  { %3804 = vst [vmem:[#allocation32_spill] sm:$0xff] %v3224_v23  ;;  %v1075_v20 = vmax.f32 %v1067_v56, 0.0  ;;  %v1076_v40 = vmax.f32 %v1068_v44, 0.0  ;;  %v1077_v8 = vmax.f32 %v1069_v22, 0.0  ;;  %v1048_v62 = vmul.f32 %v1047_v6, %v1022_v47 }
 0x125   :  { %v1078_v7 = vmax.f32 %v1070_v28, 0.0  ;;  %v1079_v19 = vmax.f32 %v1071_v3, 0.0  ;;  %v1080_v61 = vmax.f32 %v1072_v49, 0.0  ;;  %v1049_v29 = vmul.f32 %v1047_v6, %v3196_v2 }
 0x126   :  { %v1050_v48 = vmul.f32 %v1047_v6, %v3198_v52  ;;  %v1051_v17 = vmul.f32 %v1047_v6, %v3200_v36  ;;  %v1052_v1 = vmul.f32 %v1047_v6, %v1026_v55  ;;  %v1053_v63 = vmul.f32 %v1047_v6, %v1027_v50 }
 0x127   :  { %v1054_v21 = vmul.f32 %v1047_v6, %v1028_v34  ;;  %v1055_v37 = vmul.f32 %v1047_v6, %v1029_v26  ;;  %v1082_v16 = vmul.f32 %v1081_v39, %v1073_v35  ;;  %v1083_v59 = vmul.f32 %v1081_v39, %v1074_v9 }
 0x128   :  { %v1084_v33 = vmul.f32 %v1081_v39, %v1075_v20  ;;  %v1085_v27 = vmul.f32 %v1081_v39, %v1076_v40  ;;  %v1086_v47 = vmul.f32 %v1081_v39, %v1077_v8  ;;  %v1056_v41 = vadd.f32 %v1048_v62, %v1005_v24 }
 0x129   :  { %v1087_v60 = vmul.f32 %v1081_v39, %v1078_v7  ;;  %v1088_v45 = vmul.f32 %v1081_v39, %v1079_v19  ;;  %v1089_v56 = vmul.f32 %v1081_v39, %v1080_v61  ;;  %v1057_v2 = vadd.f32 %v1049_v29, %v1006_v14 }
 0x12a   :  { %v1058_v52 = vadd.f32 %v1050_v48, %v1007_v38  ;;  %v1059_v44 = vadd.f32 %v1051_v17, %v1008_v10  ;;  %v1060_v36 = vadd.f32 %v1052_v1, %v1009_v32  ;;  %v1061_v55 = vadd.f32 %v1053_v63, %v1010_v18 }
 0x12b   :  { %v1062_v50 = vadd.f32 %v1054_v21, %v1011_v54  ;;  %v1063_v34 = vadd.f32 %v1055_v37, %v1012_v57  ;;  %v1090_v26 = vadd.f32 %v1082_v16, %v1039_v25  ;;  %v1091_v6 = vadd.f32 %v1083_v59, %v1040_v51  ;;  %v3805_v25 = vld [vmem:[#allocation32_spill] sm:$0xff] }
 0x12c   :  { %v1092_v22 = vadd.f32 %v1084_v33, %v1041_v30  ;;  %v1093_v28 = vadd.f32 %v1085_v27, %v1042_v13  ;;  %v1094_v3 = vadd.f32 %v1086_v47, %v1043_v12  ;;  %v1095_v49 = vadd.f32 %v1087_v60, %v1044_v58 }
 0x12d   :  { %v1096_v23 = vadd.f32 %v1088_v45, %v1045_v43  ;;  %v1097_v24 = vadd.f32 %v1089_v56, %v1046_v46  ;;  %v1115_v62 = vstv %s3226_s2  ;;  %v1099_v51 = vmul.f32 %v3805_v25, %v1073_v35  ;;  %s3441_s2 = sld [smem:[#allocation7 + $0x1b]] }
 0x12e   :  { %v1116_v39 = vsub.f32 %v3796_v15, %v1115_v62  ;;  %v1117_v14 = vsub.f32 %v3797_v42, %v1115_v62  ;;  %v1118_v38 = vsub.f32 %v3798_v11, %v1115_v62  ;;  %v1119_v10 = vsub.f32 %v3799_v4, %v1115_v62 }
 0x12f   :  { %v1120_v32 = vsub.f32 %v3800_v0, %v1115_v62  ;;  %v1121_v18 = vsub.f32 %v3801_v53, %v1115_v62  ;;  %v1122_v54 = vsub.f32 %v3802_v31, %v1115_v62  ;;  %v1123_v57 = vsub.f32 %v3803_v5, %v1115_v62 }
 0x130   :  { %v1100_v30 = vmul.f32 %v3805_v25, %v1074_v9  ;;  %v1124_v13 = vmax.f32 %v1116_v39, 0.0  ;;  %v1132_v12 = vstv %s3231_s28  ;;  %v1125_v58 = vmax.f32 %v1117_v14, 0.0  ;;  %s3450_s28 = sld [smem:[#allocation2 + $0x1c]] }
 0x131   :  { %v1126_v43 = vmax.f32 %v1118_v38, 0.0  ;;  %v1127_v46 = vmax.f32 %v1119_v10, 0.0  ;;  %v1128_v29 = vmax.f32 %v1120_v32, 0.0  ;;  %v1101_v48 = vmul.f32 %v3805_v25, %v1075_v20 }
 0x132   :  { %v1102_v17 = vmul.f32 %v3805_v25, %v1076_v40  ;;  %v1103_v1 = vmul.f32 %v3805_v25, %v1077_v8  ;;  %v1104_v63 = vmul.f32 %v3805_v25, %v1078_v7  ;;  %v1105_v21 = vmul.f32 %v3805_v25, %v1079_v19 }
 0x133   :  { %v1129_v37 = vmax.f32 %v1121_v18, 0.0  ;;  %v1130_v35 = vmax.f32 %v1122_v54, 0.0  ;;  %v1131_v16 = vmax.f32 %v1123_v57, 0.0  ;;  %v1106_v9 = vmul.f32 %v3805_v25, %v1080_v61 }
 0x134   :  { %v1107_v59 = vadd.f32 %v1099_v51, %v1056_v41  ;;  %v1108_v33 = vadd.f32 %v1100_v30, %v1057_v2  ;;  %v1133_v27 = vmul.f32 %v1132_v12, %v1124_v13  ;;  %v1134_v47 = vmul.f32 %v1132_v12, %v1125_v58 }
 0x135   :  { %v1135_v20 = vmul.f32 %v1132_v12, %v1126_v43  ;;  %v1136_v60 = vmul.f32 %v1132_v12, %v1127_v46  ;;  %v1137_v40 = vmul.f32 %v1132_v12, %v1128_v29  ;;  %v1109_v8 = vadd.f32 %v1101_v48, %v1058_v52 }
 0x136   :  { %v1110_v7 = vadd.f32 %v1102_v17, %v1059_v44  ;;  %v1111_v45 = vadd.f32 %v1103_v1, %v1060_v36  ;;  %v1112_v19 = vadd.f32 %v1104_v63, %v1061_v55  ;;  %v1138_v56 = vmul.f32 %v1132_v12, %v1129_v37 }
 0x137   :  { %v1139_v62 = vmul.f32 %v1132_v12, %v1130_v35  ;;  %v1140_v39 = vmul.f32 %v1132_v12, %v1131_v16  ;;  %v1166_v14 = vstv %s3238_s29  ;;  %v1113_v61 = vadd.f32 %v1105_v21, %v1062_v50  ;;  %s3452_s29 = sld [smem:[#allocation8 + $0x1b]] }
 0x138   :  { %v1114_v38 = vadd.f32 %v1106_v9, %v1063_v34  ;;  %v1141_v41 = vadd.f32 %v1133_v27, %v1090_v26  ;;  %v1149_v2 = vstv %s3244_s4  ;;  %v1142_v10 = vadd.f32 %v1134_v47, %v1091_v6  ;;  %s3455_s4 = sld [smem:[#allocation7 + $0x1c]] }
 0x139   :  { %v1143_v32 = vadd.f32 %v1135_v20, %v1092_v22  ;;  %v1144_v18 = vadd.f32 %v1136_v60, %v1093_v28  ;;  %v1145_v54 = vadd.f32 %v1137_v40, %v1094_v3  ;;  %v1167_v57 = vsub.f32 %v3796_v15, %v1166_v14 }
 0x13a   :  { %v1168_v25 = vsub.f32 %v3797_v42, %v1166_v14  ;;  %v1169_v52 = vsub.f32 %v3798_v11, %v1166_v14  ;;  %v1170_v44 = vsub.f32 %v3799_v4, %v1166_v14  ;;  %v1146_v36 = vadd.f32 %v1138_v56, %v1095_v49 }
 0x13b   :  { %v1147_v55 = vadd.f32 %v1139_v62, %v1096_v23  ;;  %v1148_v51 = vadd.f32 %v1140_v39, %v1097_v24  ;;  %v1171_v50 = vsub.f32 %v3800_v0, %v1166_v14  ;;  %v1150_v34 = vmul.f32 %v1149_v2, %v1124_v13 }
 0x13c   :  { %v1151_v26 = vmul.f32 %v1149_v2, %v1125_v58  ;;  %v1152_v6 = vmul.f32 %v1149_v2, %v1126_v43  ;;  %v1172_v22 = vsub.f32 %v3801_v53, %v1166_v14  ;;  %v1173_v28 = vsub.f32 %v3802_v31, %v1166_v14 }
 0x13d   :  { %v1174_v3 = vsub.f32 %v3803_v5, %v1166_v14  ;;  %v1175_v23 = vmax.f32 %v1167_v57, 0.0  ;;  %v1176_v49 = vmax.f32 %v1168_v25, 0.0  ;;  %v1177_v24 = vmax.f32 %v1169_v52, 0.0 }
 0x13e   :  { %v1178_v30 = vmax.f32 %v1170_v44, 0.0  ;;  %v1179_v12 = vmax.f32 %v1171_v50, 0.0  ;;  %v1183_v48 = vstv %s3255_s30  ;;  %v1153_v17 = vmul.f32 %v1149_v2, %v1127_v46  ;;  %s3472_s30 = sld [smem:[#allocation2 + $0x1d]] }
 0x13f   :  { %v1154_v1 = vmul.f32 %v1149_v2, %v1128_v29  ;;  %v1155_v63 = vmul.f32 %v1149_v2, %v1129_v37  ;;  %v1156_v13 = vmul.f32 %v1149_v2, %v1130_v35  ;;  %v1157_v58 = vmul.f32 %v1149_v2, %v1131_v16 }
 0x140   :  { %v1158_v43 = vadd.f32 %v1150_v34, %v1107_v59  ;;  %v1159_v21 = vadd.f32 %v1151_v26, %v1108_v33  ;;  %v1180_v9 = vmax.f32 %v1172_v22, 0.0  ;;  %v3274_v27 = vadd.f32 %v1152_v6, %v1109_v8 }
 0x141   :  { %v1181_v47 = vmax.f32 %v1173_v28, 0.0  ;;  %v1182_v20 = vmax.f32 %v1174_v3, 0.0  ;;  %v1184_v60 = vmul.f32 %v1183_v48, %v1175_v23  ;;  %v1185_v40 = vmul.f32 %v1183_v48, %v1176_v49 }
 0x142   :  { %v1186_v56 = vmul.f32 %v1183_v48, %v1177_v24  ;;  %v1187_v62 = vmul.f32 %v1183_v48, %v1178_v30  ;;  %v1188_v39 = vmul.f32 %v1183_v48, %v1179_v12  ;;  %v1161_v46 = vadd.f32 %v1153_v17, %v1110_v7 }
 0x143   :  { %v1162_v29 = vadd.f32 %v1154_v1, %v1111_v45  ;;  %v1163_v37 = vadd.f32 %v1155_v63, %v1112_v19  ;;  %v1164_v35 = vadd.f32 %v1156_v13, %v1113_v61  ;;  %v1165_v16 = vadd.f32 %v1157_v58, %v1114_v38 }
 0x144   :  { %v1189_v59 = vmul.f32 %v1183_v48, %v1180_v9  ;;  %v1200_v33 = vstv %s3266_s7  ;;  %v1217_v14 = vstv %s3264_s6  ;;  %v1190_v2 = vmul.f32 %v1183_v48, %v1181_v47  ;;  %s3481_s6 = sld [smem:[#allocation8 + $0x1c]]  ;;  %s3483_s7 = sld [smem:[#allocation7 + $0x1d]] }
 0x145   :  { %v1191_v57 = vmul.f32 %v1183_v48, %v1182_v20  ;;  %v1192_v8 = vadd.f32 %v1184_v60, %v1141_v41  ;;  %v1234_v25 = vstv %s3269_s8  ;;  %v1193_v52 = vadd.f32 %v1185_v40, %v1142_v10  ;;  %s3485_s8 = sld [smem:[#allocation8 + $0x1d]] }
 0x146   :  { %v1194_v44 = vadd.f32 %v1186_v56, %v1143_v32  ;;  %v1195_v50 = vadd.f32 %v1187_v62, %v1144_v18  ;;  %v1196_v34 = vadd.f32 %v1188_v39, %v1145_v54  ;;  %v1218_v26 = vsub.f32 %v3796_v15, %v1217_v14 }
 0x147   :  { %v1219_v6 = vsub.f32 %v3797_v42, %v1217_v14  ;;  %v1220_v7 = vsub.f32 %v3798_v11, %v1217_v14  ;;  %v1221_v45 = vsub.f32 %v3799_v4, %v1217_v14  ;;  %v1197_v19 = vadd.f32 %v1189_v59, %v1146_v36 }
 0x148   :  { %v1222_v61 = vsub.f32 %v3800_v0, %v1217_v14  ;;  %v1223_v38 = vsub.f32 %v3801_v53, %v1217_v14  ;;  %v1224_v41 = vsub.f32 %v3802_v31, %v1217_v14  ;;  %v1198_v10 = vadd.f32 %v1190_v2, %v1147_v55 }
 0x149   :  { %v1199_v32 = vadd.f32 %v1191_v57, %v1148_v51  ;;  %v1201_v18 = vmul.f32 %v1200_v33, %v1175_v23  ;;  %v1225_v54 = vsub.f32 %v3803_v5, %v1217_v14  ;;  %v1226_v22 = vmax.f32 %v1218_v26, 0.0 }
 0x14a   :  { %v3289_v28 = vmax.f32 %v1219_v6, 0.0  ;;  %v3291_v3 = vmax.f32 %v1220_v7, 0.0  ;;  %v3293_v48 = vmax.f32 %v1221_v45, 0.0  ;;  %v1202_v36 = vmul.f32 %v1200_v33, %v1176_v49 }
 0x14b   :  { %v1230_v17 = vmax.f32 %v1222_v61, 0.0  ;;  %v1231_v1 = vmax.f32 %v1223_v38, 0.0  ;;  %v1232_v63 = vmax.f32 %v1224_v41, 0.0  ;;  %v1203_v13 = vmul.f32 %v1200_v33, %v1177_v24 }
 0x14c   :  { %v1204_v58 = vmul.f32 %v1200_v33, %v1178_v30  ;;  %v1205_v55 = vmul.f32 %v1200_v33, %v1179_v12  ;;  %v1206_v51 = vmul.f32 %v1200_v33, %v1180_v9  ;;  %v1207_v23 = vmul.f32 %v1200_v33, %v1181_v47 }
 0x14d   :  { %v1208_v60 = vmul.f32 %v1200_v33, %v1182_v20  ;;  %v1209_v40 = vadd.f32 %v1201_v18, %v1158_v43  ;;  %v1233_v56 = vmax.f32 %v1225_v54, 0.0  ;;  %v1235_v62 = vmul.f32 %v1234_v25, %v1226_v22 }
 0x14e   :  { %v1236_v39 = vmul.f32 %v1234_v25, %v3289_v28  ;;  %v1237_v49 = vmul.f32 %v1234_v25, %v3291_v3  ;;  %v1238_v59 = vmul.f32 %v1234_v25, %v3293_v48  ;;  %v1210_v24 = vadd.f32 %v1202_v36, %v1159_v21 }
 0x14f   :  { %v1239_v30 = vmul.f32 %v1234_v25, %v1230_v17  ;;  %v1240_v12 = vmul.f32 %v1234_v25, %v1231_v1  ;;  %v1241_v9 = vmul.f32 %v1234_v25, %v1232_v63  ;;  %v1211_v43 = vadd.f32 %v1203_v13, %v3274_v27 }
 0x150   :  { %v1212_v47 = vadd.f32 %v1204_v58, %v1161_v46  ;;  %v1213_v20 = vadd.f32 %v1205_v55, %v1162_v29  ;;  %v1214_v33 = vadd.f32 %v1206_v51, %v1163_v37  ;;  %v1215_v14 = vadd.f32 %v1207_v23, %v1164_v35 }
 0x151   :  { %v1216_v2 = vadd.f32 %v1208_v60, %v1165_v16  ;;  %v1242_v57 = vmul.f32 %v1234_v25, %v1233_v56  ;;  %v1268_v26 = vstv %s3286_s9  ;;  %v1243_v6 = vadd.f32 %v1235_v62, %v1192_v8  ;;  %s3505_s9 = sld [smem:[#allocation2 + $0x1e]] }
 0x152   :  { %v1244_v7 = vadd.f32 %v1236_v39, %v1193_v52  ;;  %v1245_v45 = vadd.f32 %v1237_v49, %v1194_v44  ;;  %v1246_v61 = vadd.f32 %v1238_v59, %v1195_v50  ;;  %v1247_v21 = vadd.f32 %v1239_v30, %v1196_v34 }
 0x153   :  { %v1248_v38 = vadd.f32 %v1240_v12, %v1197_v19  ;;  %v1249_v41 = vadd.f32 %v1241_v9, %v1198_v10  ;;  %v1251_v18 = vstv %s3295_s10  ;;  %v1269_v54 = vsub.f32 %v3796_v15, %v1268_v26  ;;  %s3510_s10 = sld [smem:[#allocation7 + $0x1e]] }
 0x154   :  { %v1270_v27 = vsub.f32 %v3797_v42, %v1268_v26  ;;  %v1271_v46 = vsub.f32 %v3798_v11, %v1268_v26  ;;  %v1272_v29 = vsub.f32 %v3799_v4, %v1268_v26  ;;  %v1273_v37 = vsub.f32 %v3800_v0, %v1268_v26 }
 0x155   :  { %v1274_v35 = vsub.f32 %v3801_v53, %v1268_v26  ;;  %v1275_v16 = vsub.f32 %v3802_v31, %v1268_v26  ;;  %v1276_v8 = vsub.f32 %v3803_v5, %v1268_v26  ;;  %v1250_v25 = vadd.f32 %v1242_v57, %v1199_v32 }
 0x156   :  { %v1277_v52 = vmax.f32 %v1269_v54, 0.0  ;;  %v1285_v44 = vstv %s3297_s11  ;;  %v3317_v50 = vstv %s3299_s12  ;;  %v1278_v34 = vmax.f32 %v1270_v27, 0.0  ;;  %s3523_s11 = sld [smem:[#allocation2 + $0x1f]]  ;;  %s3525_s12 = sld [smem:[#allocation8 + $0x1e]] }
 0x157   :  { %3806 = vst [vmem:[#allocation33_spill] sm:$0xff] %v3317_v50  ;;  %v1279_v19 = vmax.f32 %v1271_v46, 0.0  ;;  %v1280_v10 = vmax.f32 %v1272_v29, 0.0  ;;  %v1281_v36 = vmax.f32 %v1273_v37, 0.0  ;;  %v1252_v13 = vmul.f32 %v1251_v18, %v1226_v22 }
 0x158   :  { %v1282_v58 = vmax.f32 %v1274_v35, 0.0  ;;  %v1283_v55 = vmax.f32 %v1275_v16, 0.0  ;;  %v1284_v51 = vmax.f32 %v1276_v8, 0.0  ;;  %v1253_v23 = vmul.f32 %v1251_v18, %v3289_v28 }
 0x159   :  { %v1254_v60 = vmul.f32 %v1251_v18, %v3291_v3  ;;  %v1255_v32 = vmul.f32 %v1251_v18, %v3293_v48  ;;  %v1256_v62 = vmul.f32 %v1251_v18, %v1230_v17  ;;  %v1257_v39 = vmul.f32 %v1251_v18, %v1231_v1 }
 0x15a   :  { %v1258_v49 = vmul.f32 %v1251_v18, %v1232_v63  ;;  %v1259_v59 = vmul.f32 %v1251_v18, %v1233_v56  ;;  %v1286_v30 = vmul.f32 %v1285_v44, %v1277_v52  ;;  %v1287_v12 = vmul.f32 %v1285_v44, %v1278_v34 }
 0x15b   :  { %v1288_v9 = vmul.f32 %v1285_v44, %v1279_v19  ;;  %v1289_v57 = vmul.f32 %v1285_v44, %v1280_v10  ;;  %v1290_v22 = vmul.f32 %v1285_v44, %v1281_v36  ;;  %v1260_v26 = vadd.f32 %v1252_v13, %v1209_v40 }
 0x15c   :  { %v1291_v54 = vmul.f32 %v1285_v44, %v1282_v58  ;;  %v1292_v27 = vmul.f32 %v1285_v44, %v1283_v55  ;;  %v1293_v46 = vmul.f32 %v1285_v44, %v1284_v51  ;;  %v1261_v28 = vadd.f32 %v1253_v23, %v1210_v24 }
 0x15d   :  { %v1262_v3 = vadd.f32 %v1254_v60, %v1211_v43  ;;  %v1263_v29 = vadd.f32 %v1255_v32, %v1212_v47  ;;  %v1264_v48 = vadd.f32 %v1256_v62, %v1213_v20  ;;  %v1265_v17 = vadd.f32 %v1257_v39, %v1214_v33 }
 0x15e   :  { %v1266_v1 = vadd.f32 %v1258_v49, %v1215_v14  ;;  %v1267_v63 = vadd.f32 %v1259_v59, %v1216_v2  ;;  %v1294_v56 = vadd.f32 %v1286_v30, %v1243_v6  ;;  %v1295_v18 = vadd.f32 %v1287_v12, %v1244_v7  ;;  %v3807_v6 = vld [vmem:[#allocation33_spill] sm:$0xff] }
 0x15f   :  { %v1296_v37 = vadd.f32 %v1288_v9, %v1245_v45  ;;  %v1297_v35 = vadd.f32 %v1289_v57, %v1246_v61  ;;  %v1298_v16 = vadd.f32 %v1290_v22, %v1247_v21  ;;  %v1299_v8 = vadd.f32 %v1291_v54, %v1248_v38 }
 0x160   :  { %v1300_v50 = vadd.f32 %v1292_v27, %v1249_v41  ;;  %v1301_v40 = vadd.f32 %v1293_v46, %v1250_v25  ;;  %v1319_v13 = vstv %s3319_s13  ;;  %v1303_v7 = vmul.f32 %v3807_v6, %v1277_v52  ;;  %s3558_s13 = sld [smem:[#allocation7 + $0x1f]] }
 0x161   :  { %v1320_v44 = vsub.f32 %v3796_v15, %v1319_v13  ;;  %v1321_v24 = vsub.f32 %v3797_v42, %v1319_v13  ;;  %v1322_v43 = vsub.f32 %v3798_v11, %v1319_v13  ;;  %v1323_v47 = vsub.f32 %v3799_v4, %v1319_v13 }
 0x162   :  { %v1324_v20 = vsub.f32 %v3800_v0, %v1319_v13  ;;  %v1325_v33 = vsub.f32 %v3801_v53, %v1319_v13  ;;  %v1326_v14 = vsub.f32 %v3802_v31, %v1319_v13  ;;  %v1327_v2 = vsub.f32 %v3803_v5, %v1319_v13 }
 0x163   :  { %v1304_v45 = vmul.f32 %v3807_v6, %v1278_v34  ;;  %v1328_v61 = vmax.f32 %v1320_v44, 0.0  ;;  %v1336_v21 = vstv %s3324_s14  ;;  %v1329_v38 = vmax.f32 %v1321_v24, 0.0  ;;  %s3568_s14 = sld [smem:[#allocation8 + $0x1f]] }
 0x164   :  { %v1330_v41 = vmax.f32 %v1322_v43, 0.0  ;;  %v1331_v25 = vmax.f32 %v1323_v47, 0.0  ;;  %v1332_v23 = vmax.f32 %v1324_v20, 0.0  ;;  %v1305_v60 = vmul.f32 %v3807_v6, %v1279_v19 }
 0x165   :  { %v1306_v32 = vmul.f32 %v3807_v6, %v1280_v10  ;;  %v1307_v62 = vmul.f32 %v3807_v6, %v1281_v36  ;;  %v1308_v39 = vmul.f32 %v3807_v6, %v1282_v58  ;;  %v1309_v49 = vmul.f32 %v3807_v6, %v1283_v55 }
 0x166   :  { %v1333_v59 = vmax.f32 %v1325_v33, 0.0  ;;  %v1334_v52 = vmax.f32 %v1326_v14, 0.0  ;;  %v1335_v30 = vmax.f32 %v1327_v2, 0.0  ;;  %v1310_v34 = vmul.f32 %v3807_v6, %v1284_v51 }
 0x167   :  { %v1311_v12 = vadd.f32 %v1303_v7, %v1260_v26  ;;  %v1312_v9 = vadd.f32 %v1304_v45, %v1261_v28  ;;  %v1337_v57 = vmul.f32 %v1336_v21, %v1328_v61  ;;  %v1338_v22 = vmul.f32 %v1336_v21, %v1329_v38 }
 0x168   :  { %v1339_v19 = vmul.f32 %v1336_v21, %v1330_v41  ;;  %v1340_v54 = vmul.f32 %v1336_v21, %v1331_v25  ;;  %v1341_v10 = vmul.f32 %v1336_v21, %v1332_v23  ;;  %v1313_v36 = vadd.f32 %v1305_v60, %v1262_v3 }
 0x169   :  { %v1314_v58 = vadd.f32 %v1306_v32, %v1263_v29  ;;  %v1315_v27 = vadd.f32 %v1307_v62, %v1264_v48  ;;  %v1316_v55 = vadd.f32 %v1308_v39, %v1265_v17  ;;  %v1342_v46 = vmul.f32 %v1336_v21, %v1333_v59 }
 0x16a   :  { %v1343_v13 = vmul.f32 %v1336_v21, %v1334_v52  ;;  %v1344_v44 = vmul.f32 %v1336_v21, %v1335_v30  ;;  %v1370_v24 = vstv %s3331_s0  ;;  %v1317_v51 = vadd.f32 %v1309_v49, %v1266_v1  ;;  %s2245_s0 = smov [#allocation12]  }
 0x16b   :  { %v1318_v43 = vadd.f32 %v1310_v34, %v1267_v63  ;;  %v1345_v26 = vadd.f32 %v1337_v57, %v1294_v56  ;;  %v1353_v28 = vstv %s3337_s1  ;;  %v1346_v47 = vadd.f32 %v1338_v22, %v1295_v18  ;;  %s1948_s1 = sshll.u32 %s2245_s0, 4  ;;  %s1949_s1 = int_to_ptr.vmem [resolvable:$true] %s1948_s1 }
 0x16c   :  { %v1347_v20 = vadd.f32 %v1339_v19, %v1296_v37  ;;  %v1348_v33 = vadd.f32 %v1340_v54, %v1297_v35  ;;  %v1349_v14 = vadd.f32 %v1341_v10, %v1298_v16  ;;  %v1371_v2 = vsub.f32 %v3796_v15, %v1370_v24  ;;  %p2211_p13 = scmp.lt.s32.totalorder %s1949_s1, %s1949_s1 }
 0x16d   :  { %v1372_v6 = vsub.f32 %v3797_v42, %v1370_v24  ;;  %v1373_v3 = vsub.f32 %v3798_v11, %v1370_v24  ;;  %v1374_v29 = vsub.f32 %v3799_v4, %v1370_v24  ;;  %v1350_v48 = vadd.f32 %v1342_v46, %v1299_v8 }
 0x16e   :  { %v1351_v17 = vadd.f32 %v1343_v13, %v1300_v50  ;;  %v1352_v7 = vadd.f32 %v1344_v44, %v1301_v40  ;;  %v1375_v1 = vsub.f32 %v3800_v0, %v1370_v24  ;;  %v1354_v63 = vmul.f32 %v1353_v28, %v1328_v61 }
 0x16f   :  { %v1355_v56 = vmul.f32 %v1353_v28, %v1329_v38  ;;  %v1356_v18 = vmul.f32 %v1353_v28, %v1330_v41  ;;  %v1376_v37 = vsub.f32 %v3801_v53, %v1370_v24  ;;  %v1377_v35 = vsub.f32 %v3802_v31, %v1370_v24 }
 0x170   :  { %v1378_v16 = vsub.f32 %v3803_v5, %v1370_v24  ;;  %v1379_v50 = vmax.f32 %v1371_v2, 0.0  ;;  %v1380_v8 = vmax.f32 %v1372_v6, 0.0  ;;  %v1381_v40 = vmax.f32 %v1373_v3, 0.0 }
 0x171   :  { %v1382_v45 = vmax.f32 %v1374_v29, 0.0  ;;  %v1383_v21 = vmax.f32 %v1375_v1, 0.0  ;;  %v1387_v60 = vstv %s3348_s3  ;;  %v1357_v32 = vmul.f32 %v1353_v28, %v1331_v25  ;;  %s2206_s3 = scalar_lea.vmem %s1949_s1, 2048 }
 0x172   :  { %v1358_v62 = vmul.f32 %v1353_v28, %v1332_v23  ;;  %v1359_v39 = vmul.f32 %v1353_v28, %v1333_v59  ;;  %v1360_v61 = vmul.f32 %v1353_v28, %v1334_v52  ;;  %v1361_v38 = vmul.f32 %v1353_v28, %v1335_v30  ;;  %p2207_p12 = scmp.ne.s32.totalorder %s1949_s1, %s2206_s3  ;;  %p2212_p0 = scmp.lt.s32.totalorder %s2206_s3, %s2206_s3 }
 0x173   :  { %v1362_v41 = vadd.f32 %v1354_v63, %v1311_v12  ;;  %v1363_v49 = vadd.f32 %v1355_v56, %v1312_v9  ;;  %v1384_v34 = vmax.f32 %v1376_v37, 0.0  ;;  %v3367_v57 = vadd.f32 %v1356_v18, %v1313_v36 }
 0x174   :  { %v1385_v22 = vmax.f32 %v1377_v35, 0.0  ;;  %v1386_v19 = vmax.f32 %v1378_v16, 0.0  ;;  %v1388_v54 = vmul.f32 %v1387_v60, %v1379_v50  ;;  %v1389_v10 = vmul.f32 %v1387_v60, %v1380_v8  ;;  %p2213_p1 = por %p2212_p0, %p2211_p13 }
 0x175   :  { %v1390_v46 = vmul.f32 %v1387_v60, %v1381_v40  ;;  %v1391_v13 = vmul.f32 %v1387_v60, %v1382_v45  ;;  %v1392_v44 = vmul.f32 %v1387_v60, %v1383_v21  ;;  %v1365_v25 = vadd.f32 %v1357_v32, %v1314_v58 }
 0x176   :  { %v1366_v23 = vadd.f32 %v1358_v62, %v1315_v27  ;;  %v1367_v59 = vadd.f32 %v1359_v39, %v1316_v55  ;;  %v1368_v52 = vadd.f32 %v1360_v61, %v1317_v51  ;;  %v1369_v30 = vadd.f32 %v1361_v38, %v1318_v43  ;;  %p2214_p2 = pnand %p2213_p1, %p2207_p12 }
 0x177   :  { %v1393_v12 = vmul.f32 %v1387_v60, %v1384_v34  ;;  %v1404_v9 = vstv %s3359_s16  ;;  %v1421_v24 = vstv %s3357_s15  ;;  %v1394_v28 = vmul.f32 %v1387_v60, %v1385_v22 }
 0x178   :  { %v1395_v2 = vmul.f32 %v1387_v60, %v1386_v19  ;;  %v1396_v36 = vadd.f32 %v1388_v54, %v1345_v26  ;;  %v1438_v6 = vstv %s3362_s17  ;;  %v1397_v3 = vadd.f32 %v1389_v10, %v1346_v47 }
 0x179   :  { %v1398_v29 = vadd.f32 %v1390_v46, %v1347_v20  ;;  %v1399_v1 = vadd.f32 %v1391_v13, %v1348_v33  ;;  %v1400_v63 = vadd.f32 %v1392_v44, %v1349_v14  ;;  %v1422_v56 = vsub.f32 %v3796_v15, %v1421_v24 }
 0x17a   :  { %v1423_v18 = vsub.f32 %v3797_v42, %v1421_v24  ;;  %v1424_v58 = vsub.f32 %v3798_v11, %v1421_v24  ;;  %v1425_v27 = vsub.f32 %v3799_v4, %v1421_v24  ;;  %v1401_v55 = vadd.f32 %v1393_v12, %v1350_v48 }
 0x17b   :  { %v1426_v51 = vsub.f32 %v3800_v0, %v1421_v24  ;;  %v1427_v43 = vsub.f32 %v3801_v53, %v1421_v24  ;;  %v1428_v26 = vsub.f32 %v3802_v31, %v1421_v24  ;;  %v1402_v47 = vadd.f32 %v1394_v28, %v1351_v17 }
 0x17c   :  { %v1403_v20 = vadd.f32 %v1395_v2, %v1352_v7  ;;  %v1405_v33 = vmul.f32 %v1404_v9, %v1379_v50  ;;  %v1429_v14 = vsub.f32 %v3803_v5, %v1421_v24  ;;  %v1430_v37 = vmax.f32 %v1422_v56, 0.0 }
 0x17d   :  { %v3382_v35 = vmax.f32 %v1423_v18, 0.0  ;;  %v3384_v16 = vmax.f32 %v1424_v58, 0.0  ;;  %v3386_v60 = vmax.f32 %v1425_v27, 0.0  ;;  %v1406_v48 = vmul.f32 %v1404_v9, %v1380_v8 }
 0x17e   :  { %v1434_v32 = vmax.f32 %v1426_v51, 0.0  ;;  %v1435_v62 = vmax.f32 %v1427_v43, 0.0  ;;  %v1436_v39 = vmax.f32 %v1428_v26, 0.0  ;;  %v1407_v61 = vmul.f32 %v1404_v9, %v1381_v40 }
 0x17f   :  { %v1408_v38 = vmul.f32 %v1404_v9, %v1382_v45  ;;  %v1409_v17 = vmul.f32 %v1404_v9, %v1383_v21  ;;  %v1410_v7 = vmul.f32 %v1404_v9, %v1384_v34  ;;  %v1411_v50 = vmul.f32 %v1404_v9, %v1385_v22 }
 0x180   :  { %v1412_v54 = vmul.f32 %v1404_v9, %v1386_v19  ;;  %v1413_v10 = vadd.f32 %v1405_v33, %v1362_v41  ;;  %v1437_v46 = vmax.f32 %v1429_v14, 0.0  ;;  %v1439_v13 = vmul.f32 %v1438_v6, %v1430_v37 }
 0x181   :  { %v1440_v44 = vmul.f32 %v1438_v6, %v3382_v35  ;;  %v1441_v8 = vmul.f32 %v1438_v6, %v3384_v16  ;;  %v1442_v12 = vmul.f32 %v1438_v6, %v3386_v60  ;;  %v1414_v40 = vadd.f32 %v1406_v48, %v1363_v49 }
 0x182   :  { %v1443_v45 = vmul.f32 %v1438_v6, %v1434_v32  ;;  %v1444_v21 = vmul.f32 %v1438_v6, %v1435_v62  ;;  %v1445_v34 = vmul.f32 %v1438_v6, %v1436_v39  ;;  %v1415_v41 = vadd.f32 %v1407_v61, %v3367_v57 }
 0x183   :  { %v1416_v22 = vadd.f32 %v1408_v38, %v1365_v25  ;;  %v1417_v19 = vadd.f32 %v1409_v17, %v1366_v23  ;;  %v1418_v9 = vadd.f32 %v1410_v7, %v1367_v59  ;;  %v1419_v24 = vadd.f32 %v1411_v50, %v1368_v52 }
 0x184   :  { %v1420_v28 = vadd.f32 %v1412_v54, %v1369_v30  ;;  %v1446_v2 = vmul.f32 %v1438_v6, %v1437_v46  ;;  %v1472_v56 = vstv %s3379_s18  ;;  %v1447_v18 = vadd.f32 %v1439_v13, %v1396_v36 }
 0x185   :  { %v1448_v58 = vadd.f32 %v1440_v44, %v1397_v3  ;;  %v1449_v27 = vadd.f32 %v1441_v8, %v1398_v29  ;;  %v1450_v51 = vadd.f32 %v1442_v12, %v1399_v1  ;;  %v1451_v49 = vadd.f32 %v1443_v45, %v1400_v63 }
 0x186   :  { %v1452_v43 = vadd.f32 %v1444_v21, %v1401_v55  ;;  %v1453_v26 = vadd.f32 %v1445_v34, %v1402_v47  ;;  %v1455_v33 = vstv %s3388_s19  ;;  %v1473_v14 = vsub.f32 %v3796_v15, %v1472_v56 }
 0x187   :  { %v1474_v57 = vsub.f32 %v3797_v42, %v1472_v56  ;;  %v1475_v25 = vsub.f32 %v3798_v11, %v1472_v56  ;;  %v1476_v23 = vsub.f32 %v3799_v4, %v1472_v56  ;;  %v1477_v59 = vsub.f32 %v3800_v0, %v1472_v56 }
 0x188   :  { %v1478_v52 = vsub.f32 %v3801_v53, %v1472_v56  ;;  %v1479_v30 = vsub.f32 %v3802_v31, %v1472_v56  ;;  %v1480_v36 = vsub.f32 %v3803_v5, %v1472_v56  ;;  %v1454_v6 = vadd.f32 %v1446_v2, %v1403_v20 }
 0x189   :  { %v1481_v3 = vmax.f32 %v1473_v14, 0.0  ;;  %v1489_v29 = vstv %s3390_s20  ;;  %v3410_v1 = vstv %s3392_s21  ;;  %v1482_v63 = vmax.f32 %v1474_v57, 0.0 }
 0x18a   :  { %3808 = vst [vmem:[#allocation34_spill] sm:$0xff] %v3410_v1  ;;  %v1483_v55 = vmax.f32 %v1475_v25, 0.0  ;;  %v1484_v47 = vmax.f32 %v1476_v23, 0.0  ;;  %v1485_v48 = vmax.f32 %v1477_v59, 0.0  ;;  %v1456_v61 = vmul.f32 %v1455_v33, %v1430_v37 }
 0x18b   :  { %v1486_v38 = vmax.f32 %v1478_v52, 0.0  ;;  %v1487_v17 = vmax.f32 %v1479_v30, 0.0  ;;  %v1488_v7 = vmax.f32 %v1480_v36, 0.0  ;;  %v1457_v50 = vmul.f32 %v1455_v33, %v3382_v35 }
 0x18c   :  { %v1458_v54 = vmul.f32 %v1455_v33, %v3384_v16  ;;  %v1459_v20 = vmul.f32 %v1455_v33, %v3386_v60  ;;  %v1460_v13 = vmul.f32 %v1455_v33, %v1434_v32  ;;  %v1461_v44 = vmul.f32 %v1455_v33, %v1435_v62 }
 0x18d   :  { %v1462_v8 = vmul.f32 %v1455_v33, %v1436_v39  ;;  %v1463_v12 = vmul.f32 %v1455_v33, %v1437_v46  ;;  %v1490_v45 = vmul.f32 %v1489_v29, %v1481_v3  ;;  %v1491_v21 = vmul.f32 %v1489_v29, %v1482_v63 }
 0x18e   :  { %v1492_v34 = vmul.f32 %v1489_v29, %v1483_v55  ;;  %v1493_v2 = vmul.f32 %v1489_v29, %v1484_v47  ;;  %v1494_v37 = vmul.f32 %v1489_v29, %v1485_v48  ;;  %v1464_v56 = vadd.f32 %v1456_v61, %v1413_v10 }
 0x18f   :  { %v1495_v14 = vmul.f32 %v1489_v29, %v1486_v38  ;;  %v1496_v57 = vmul.f32 %v1489_v29, %v1487_v17  ;;  %v1497_v25 = vmul.f32 %v1489_v29, %v1488_v7  ;;  %v1465_v35 = vadd.f32 %v1457_v50, %v1414_v40 }
 0x190   :  { %v1466_v16 = vadd.f32 %v1458_v54, %v1415_v41  ;;  %v1467_v23 = vadd.f32 %v1459_v20, %v1416_v22  ;;  %v1468_v60 = vadd.f32 %v1460_v13, %v1417_v19  ;;  %v1469_v32 = vadd.f32 %v1461_v44, %v1418_v9 }
 0x191   :  { %v1470_v62 = vadd.f32 %v1462_v8, %v1419_v24  ;;  %v1471_v39 = vadd.f32 %v1463_v12, %v1420_v28  ;;  %v1498_v46 = vadd.f32 %v1490_v45, %v1447_v18  ;;  %v1499_v33 = vadd.f32 %v1491_v21, %v1448_v58  ;;  %v3809_v18 = vld [vmem:[#allocation34_spill] sm:$0xff] }
 0x192   :  { %v1500_v59 = vadd.f32 %v1492_v34, %v1449_v27  ;;  %v1501_v52 = vadd.f32 %v1493_v2, %v1450_v51  ;;  %v1502_v30 = vadd.f32 %v1494_v37, %v1451_v49  ;;  %v1503_v36 = vadd.f32 %v1495_v14, %v1452_v43 }
 0x193   :  { %v1504_v1 = vadd.f32 %v1496_v57, %v1453_v26  ;;  %v1505_v10 = vadd.f32 %v1497_v25, %v1454_v6  ;;  %v1523_v61 = vstv %s3412_s22  ;;  %v1507_v58 = vmul.f32 %v3809_v18, %v1481_v3 }
 0x194   :  { %v1524_v29 = vsub.f32 %v3796_v15, %v1523_v61  ;;  %v1525_v40 = vsub.f32 %v3797_v42, %v1523_v61  ;;  %v1526_v41 = vsub.f32 %v3798_v11, %v1523_v61  ;;  %v1527_v22 = vsub.f32 %v3799_v4, %v1523_v61 }
 0x195   :  { %v1528_v19 = vsub.f32 %v3800_v0, %v1523_v61  ;;  %v1529_v9 = vsub.f32 %v3801_v53, %v1523_v61  ;;  %v1530_v24 = vsub.f32 %v3802_v31, %v1523_v61  ;;  %v1531_v28 = vsub.f32 %v3803_v5, %v1523_v61 }
 0x196   :  { %v1508_v27 = vmul.f32 %v3809_v18, %v1482_v63  ;;  %v1532_v51 = vmax.f32 %v1524_v29, 0.0  ;;  %v1540_v49 = vstv %s3417_s23  ;;  %v1533_v43 = vmax.f32 %v1525_v40, 0.0 }
 0x197   :  { %v1534_v26 = vmax.f32 %v1526_v41, 0.0  ;;  %v1535_v6 = vmax.f32 %v1527_v22, 0.0  ;;  %v1536_v50 = vmax.f32 %v1528_v19, 0.0  ;;  %v1509_v54 = vmul.f32 %v3809_v18, %v1483_v55 }
 0x198   :  { %v1510_v20 = vmul.f32 %v3809_v18, %v1484_v47  ;;  %v1511_v13 = vmul.f32 %v3809_v18, %v1485_v48  ;;  %v1512_v44 = vmul.f32 %v3809_v18, %v1486_v38  ;;  %v1513_v8 = vmul.f32 %v3809_v18, %v1487_v17 }
 0x199   :  { %v1537_v12 = vmax.f32 %v1529_v9, 0.0  ;;  %v1538_v3 = vmax.f32 %v1530_v24, 0.0  ;;  %v1539_v45 = vmax.f32 %v1531_v28, 0.0  ;;  %v1514_v63 = vmul.f32 %v3809_v18, %v1488_v7 }
 0x19a   :  { %v1515_v21 = vadd.f32 %v1507_v58, %v1464_v56  ;;  %v1516_v34 = vadd.f32 %v1508_v27, %v1465_v35  ;;  %v1541_v2 = vmul.f32 %v1540_v49, %v1532_v51  ;;  %v1542_v37 = vmul.f32 %v1540_v49, %v1533_v43 }
 0x19b   :  { %v1543_v55 = vmul.f32 %v1540_v49, %v1534_v26  ;;  %v1544_v14 = vmul.f32 %v1540_v49, %v1535_v6  ;;  %v1545_v47 = vmul.f32 %v1540_v49, %v1536_v50  ;;  %v1517_v48 = vadd.f32 %v1509_v54, %v1466_v16 }
 0x19c   :  { %v1518_v38 = vadd.f32 %v1510_v20, %v1467_v23  ;;  %v1519_v57 = vadd.f32 %v1511_v13, %v1468_v60  ;;  %v1520_v17 = vadd.f32 %v1512_v44, %v1469_v32  ;;  %v1546_v25 = vmul.f32 %v1540_v49, %v1537_v12 }
 0x19d   :  { %v1547_v61 = vmul.f32 %v1540_v49, %v1538_v3  ;;  %v1548_v29 = vmul.f32 %v1540_v49, %v1539_v45  ;;  %v1574_v40 = vstv %s3424_s26  ;;  %v1521_v7 = vadd.f32 %v1513_v8, %v1470_v62 }
 0x19e   :  { %v1522_v41 = vadd.f32 %v1514_v63, %v1471_v39  ;;  %v1549_v56 = vadd.f32 %v1541_v2, %v1498_v46  ;;  %v1557_v35 = vstv %s3430_s27  ;;  %v1550_v22 = vadd.f32 %v1542_v37, %v1499_v33 }
 0x19f   :  { %v1551_v19 = vadd.f32 %v1543_v55, %v1500_v59  ;;  %v1552_v9 = vadd.f32 %v1544_v14, %v1501_v52  ;;  %v1553_v24 = vadd.f32 %v1545_v47, %v1502_v30  ;;  %v1575_v28 = vsub.f32 %v3796_v15, %v1574_v40 }
 0x1a0   :  { %v1576_v18 = vsub.f32 %v3797_v42, %v1574_v40  ;;  %v1577_v16 = vsub.f32 %v3798_v11, %v1574_v40  ;;  %v1578_v23 = vsub.f32 %v3799_v4, %v1574_v40  ;;  %v1554_v60 = vadd.f32 %v1546_v25, %v1503_v36 }
 0x1a1   :  { %v1555_v32 = vadd.f32 %v1547_v61, %v1504_v1  ;;  %v1556_v58 = vadd.f32 %v1548_v29, %v1505_v10  ;;  %v1579_v62 = vsub.f32 %v3800_v0, %v1574_v40  ;;  %v1558_v39 = vmul.f32 %v1557_v35, %v1532_v51 }
 0x1a2   :  { %v1559_v46 = vmul.f32 %v1557_v35, %v1533_v43  ;;  %v1560_v33 = vmul.f32 %v1557_v35, %v1534_v26  ;;  %v1580_v59 = vsub.f32 %v3801_v53, %v1574_v40  ;;  %v1581_v52 = vsub.f32 %v3802_v31, %v1574_v40 }
 0x1a3   :  { %v1582_v30 = vsub.f32 %v3803_v5, %v1574_v40  ;;  %v1583_v1 = vmax.f32 %v1575_v28, 0.0  ;;  %v1584_v36 = vmax.f32 %v1576_v18, 0.0  ;;  %v1585_v10 = vmax.f32 %v1577_v16, 0.0 }
 0x1a4   :  { %v1586_v27 = vmax.f32 %v1578_v23, 0.0  ;;  %v1587_v49 = vmax.f32 %v1579_v62, 0.0  ;;  %v1591_v54 = vstv %s3441_s2  ;;  %v1561_v20 = vmul.f32 %v1557_v35, %v1535_v6 }
 0x1a5   :  { %v1562_v13 = vmul.f32 %v1557_v35, %v1536_v50  ;;  %v1563_v44 = vmul.f32 %v1557_v35, %v1537_v12  ;;  %v1564_v51 = vmul.f32 %v1557_v35, %v1538_v3  ;;  %v1565_v43 = vmul.f32 %v1557_v35, %v1539_v45 }
 0x1a6   :  { %v1566_v26 = vadd.f32 %v1558_v39, %v1515_v21  ;;  %v1567_v8 = vadd.f32 %v1559_v46, %v1516_v34  ;;  %v1588_v63 = vmax.f32 %v1580_v59, 0.0  ;;  %v3460_v2 = vadd.f32 %v1560_v33, %v1517_v48 }
 0x1a7   :  { %v1589_v37 = vmax.f32 %v1581_v52, 0.0  ;;  %v1590_v55 = vmax.f32 %v1582_v30, 0.0  ;;  %v1592_v14 = vmul.f32 %v1591_v54, %v1583_v1  ;;  %v1593_v47 = vmul.f32 %v1591_v54, %v1584_v36 }
 0x1a8   :  { %v1594_v25 = vmul.f32 %v1591_v54, %v1585_v10  ;;  %v1595_v61 = vmul.f32 %v1591_v54, %v1586_v27  ;;  %v1596_v29 = vmul.f32 %v1591_v54, %v1587_v49  ;;  %v1569_v6 = vadd.f32 %v1561_v20, %v1518_v38 }
 0x1a9   :  { %v1570_v50 = vadd.f32 %v1562_v13, %v1519_v57  ;;  %v1571_v12 = vadd.f32 %v1563_v44, %v1520_v17  ;;  %v1572_v3 = vadd.f32 %v1564_v51, %v1521_v7  ;;  %v1573_v45 = vadd.f32 %v1565_v43, %v1522_v41 }
 0x1aa   :  { %v1597_v21 = vmul.f32 %v1591_v54, %v1588_v63  ;;  %v1608_v34 = vstv %s3452_s29  ;;  %v1625_v40 = vstv %s3450_s28  ;;  %v1598_v35 = vmul.f32 %v1591_v54, %v1589_v37 }
 0x1ab   :  { %v1599_v28 = vmul.f32 %v1591_v54, %v1590_v55  ;;  %v1600_v48 = vadd.f32 %v1592_v14, %v1549_v56  ;;  %v1642_v18 = vstv %s3455_s4  ;;  %v1601_v16 = vadd.f32 %v1593_v47, %v1550_v22 }
 0x1ac   :  { %v1602_v23 = vadd.f32 %v1594_v25, %v1551_v19  ;;  %v1603_v62 = vadd.f32 %v1595_v61, %v1552_v9  ;;  %v1604_v39 = vadd.f32 %v1596_v29, %v1553_v24  ;;  %v1626_v46 = vsub.f32 %v3796_v15, %v1625_v40 }
 0x1ad   :  { %v1627_v33 = vsub.f32 %v3797_v42, %v1625_v40  ;;  %v1628_v38 = vsub.f32 %v3798_v11, %v1625_v40  ;;  %v1629_v57 = vsub.f32 %v3799_v4, %v1625_v40  ;;  %v1605_v17 = vadd.f32 %v1597_v21, %v1554_v60 }
 0x1ae   :  { %v1630_v7 = vsub.f32 %v3800_v0, %v1625_v40  ;;  %v1631_v41 = vsub.f32 %v3801_v53, %v1625_v40  ;;  %v1632_v56 = vsub.f32 %v3802_v31, %v1625_v40  ;;  %v1606_v22 = vadd.f32 %v1598_v35, %v1555_v32 }
 0x1af   :  { %v1607_v19 = vadd.f32 %v1599_v28, %v1556_v58  ;;  %v1609_v9 = vmul.f32 %v1608_v34, %v1583_v1  ;;  %v1633_v24 = vsub.f32 %v3803_v5, %v1625_v40  ;;  %v1634_v59 = vmax.f32 %v1626_v46, 0.0 }
 0x1b0   :  { %v3475_v52 = vmax.f32 %v1627_v33, 0.0  ;;  %v3477_v30 = vmax.f32 %v1628_v38, 0.0  ;;  %v3479_v54 = vmax.f32 %v1629_v57, 0.0  ;;  %v1610_v60 = vmul.f32 %v1608_v34, %v1584_v36 }
 0x1b1   :  { %v1638_v20 = vmax.f32 %v1630_v7, 0.0  ;;  %v1639_v13 = vmax.f32 %v1631_v41, 0.0  ;;  %v1640_v44 = vmax.f32 %v1632_v56, 0.0  ;;  %v1611_v51 = vmul.f32 %v1608_v34, %v1585_v10 }
 0x1b2   :  { %v1612_v43 = vmul.f32 %v1608_v34, %v1586_v27  ;;  %v1613_v32 = vmul.f32 %v1608_v34, %v1587_v49  ;;  %v1614_v58 = vmul.f32 %v1608_v34, %v1588_v63  ;;  %v1615_v1 = vmul.f32 %v1608_v34, %v1589_v37 }
 0x1b3   :  { %v1616_v14 = vmul.f32 %v1608_v34, %v1590_v55  ;;  %v1617_v47 = vadd.f32 %v1609_v9, %v1566_v26  ;;  %v1641_v25 = vmax.f32 %v1633_v24, 0.0  ;;  %v1643_v61 = vmul.f32 %v1642_v18, %v1634_v59 }
 0x1b4   :  { %v1644_v29 = vmul.f32 %v1642_v18, %v3475_v52  ;;  %v1645_v36 = vmul.f32 %v1642_v18, %v3477_v30  ;;  %v1646_v21 = vmul.f32 %v1642_v18, %v3479_v54  ;;  %v1618_v10 = vadd.f32 %v1610_v60, %v1567_v8 }
 0x1b5   :  { %v1647_v27 = vmul.f32 %v1642_v18, %v1638_v20  ;;  %v1648_v49 = vmul.f32 %v1642_v18, %v1639_v13  ;;  %v1649_v63 = vmul.f32 %v1642_v18, %v1640_v44  ;;  %v1619_v26 = vadd.f32 %v1611_v51, %v3460_v2 }
 0x1b6   :  { %v1620_v37 = vadd.f32 %v1612_v43, %v1569_v6  ;;  %v1621_v55 = vadd.f32 %v1613_v32, %v1570_v50  ;;  %v1622_v34 = vadd.f32 %v1614_v58, %v1571_v12  ;;  %v1623_v40 = vadd.f32 %v1615_v1, %v1572_v3 }
 0x1b7   :  { %v1624_v35 = vadd.f32 %v1616_v14, %v1573_v45  ;;  %v1650_v28 = vmul.f32 %v1642_v18, %v1641_v25  ;;  %v1676_v46 = vstv %s3472_s30  ;;  %v1651_v33 = vadd.f32 %v1643_v61, %v1600_v48 }
 0x1b8   :  { %v1652_v38 = vadd.f32 %v1644_v29, %v1601_v16  ;;  %v1653_v57 = vadd.f32 %v1645_v36, %v1602_v23  ;;  %v1654_v7 = vadd.f32 %v1646_v21, %v1603_v62  ;;  %v1655_v8 = vadd.f32 %v1647_v27, %v1604_v39 }
 0x1b9   :  { %v1656_v41 = vadd.f32 %v1648_v49, %v1605_v17  ;;  %v1657_v56 = vadd.f32 %v1649_v63, %v1606_v22  ;;  %v1659_v9 = vstv %s3481_s6  ;;  %v1677_v24 = vsub.f32 %v3796_v15, %v1676_v46 }
 0x1ba   :  { %v1678_v2 = vsub.f32 %v3797_v42, %v1676_v46  ;;  %v1679_v6 = vsub.f32 %v3798_v11, %v1676_v46  ;;  %v1680_v50 = vsub.f32 %v3799_v4, %v1676_v46  ;;  %v1681_v12 = vsub.f32 %v3800_v0, %v1676_v46 }
 0x1bb   :  { %v1682_v3 = vsub.f32 %v3801_v53, %v1676_v46  ;;  %v1683_v45 = vsub.f32 %v3802_v31, %v1676_v46  ;;  %v1684_v48 = vsub.f32 %v3803_v5, %v1676_v46  ;;  %v1658_v18 = vadd.f32 %v1650_v28, %v1607_v19 }
 0x1bc   :  { %v1685_v16 = vmax.f32 %v1677_v24, 0.0  ;;  %v1693_v23 = vstv %s3483_s7  ;;  %v3503_v62 = vstv %s3485_s8  ;;  %v1686_v39 = vmax.f32 %v1678_v2, 0.0 }
 0x1bd   :  { %v1687_v17 = vmax.f32 %v1679_v6, 0.0  ;;  %v1688_v22 = vmax.f32 %v1680_v50, 0.0  ;;  %v1689_v60 = vmax.f32 %v1681_v12, 0.0  ;;  %v1660_v51 = vmul.f32 %v1659_v9, %v1634_v59 }
 0x1be   :  { %v1690_v43 = vmax.f32 %v1682_v3, 0.0  ;;  %v1691_v32 = vmax.f32 %v1683_v45, 0.0  ;;  %v1692_v58 = vmax.f32 %v1684_v48, 0.0  ;;  %v1661_v1 = vmul.f32 %v1659_v9, %v3475_v52 }
 0x1bf   :  { %v1662_v14 = vmul.f32 %v1659_v9, %v3477_v30  ;;  %v1663_v19 = vmul.f32 %v1659_v9, %v3479_v54  ;;  %v1664_v61 = vmul.f32 %v1659_v9, %v1638_v20  ;;  %v1665_v29 = vmul.f32 %v1659_v9, %v1639_v13 }
 0x1c0   :  { %v1666_v36 = vmul.f32 %v1659_v9, %v1640_v44  ;;  %v1667_v21 = vmul.f32 %v1659_v9, %v1641_v25  ;;  %v1694_v27 = vmul.f32 %v1693_v23, %v1685_v16  ;;  %v1695_v49 = vmul.f32 %v1693_v23, %v1686_v39 }
 0x1c1   :  { %v1696_v63 = vmul.f32 %v1693_v23, %v1687_v17  ;;  %v1697_v28 = vmul.f32 %v1693_v23, %v1688_v22  ;;  %v1698_v59 = vmul.f32 %v1693_v23, %v1689_v60  ;;  %v1668_v46 = vadd.f32 %v1660_v51, %v1617_v47 }
 0x1c2   :  { %v1699_v24 = vmul.f32 %v1693_v23, %v1690_v43  ;;  %v1700_v2 = vmul.f32 %v1693_v23, %v1691_v32  ;;  %v1701_v6 = vmul.f32 %v1693_v23, %v1692_v58  ;;  %v1669_v52 = vadd.f32 %v1661_v1, %v1618_v10 }
 0x1c3   :  { %v1670_v30 = vadd.f32 %v1662_v14, %v1619_v26  ;;  %v1671_v50 = vadd.f32 %v1663_v19, %v1620_v37  ;;  %v1672_v54 = vadd.f32 %v1664_v61, %v1621_v55  ;;  %v1673_v20 = vadd.f32 %v1665_v29, %v1622_v34 }
 0x1c4   :  { %v1674_v12 = vadd.f32 %v1666_v36, %v1623_v40  ;;  %v3512_v3 = vadd.f32 %v1667_v21, %v1624_v35  ;;  %v1702_v13 = vadd.f32 %v1694_v27, %v1651_v33  ;;  %v1703_v44 = vadd.f32 %v1695_v49, %v1652_v38 }
 0x1c5   :  { %v1704_v25 = vadd.f32 %v1696_v63, %v1653_v57  ;;  %v1705_v9 = vadd.f32 %v1697_v28, %v1654_v7  ;;  %v1706_v45 = vadd.f32 %v1698_v59, %v1655_v8  ;;  %v1707_v48 = vadd.f32 %v1699_v24, %v1656_v41 }
 0x1c6   :  { %v3514_v47 = vadd.f32 %v1700_v2, %v1657_v56  ;;  %v3516_v51 = vadd.f32 %v1701_v6, %v1658_v18  ;;  %v1727_v23 = vstv %s3505_s9  ;;  %v1711_v34 = vmul.f32 %v3503_v62, %v1685_v16 }
 0x1c7   :  { %v1728_v10 = vsub.f32 %v3796_v15, %v1727_v23  ;;  %v1729_v26 = vsub.f32 %v3797_v42, %v1727_v23  ;;  %v1730_v37 = vsub.f32 %v3798_v11, %v1727_v23  ;;  %v1731_v55 = vsub.f32 %v3799_v4, %v1727_v23 }
 0x1c8   :  { %v1732_v40 = vsub.f32 %v3800_v0, %v1727_v23  ;;  %v1733_v35 = vsub.f32 %v3801_v53, %v1727_v23  ;;  %v1744_v33 = vstv %s3510_s10  ;;  %v1734_v38 = vsub.f32 %v3802_v31, %v1727_v23 }
 0x1c9   :  { %v1735_v57 = vsub.f32 %v3803_v5, %v1727_v23  ;;  %v1736_v7 = vmax.f32 %v1728_v10, 0.0  ;;  %v1737_v8 = vmax.f32 %v1729_v26, 0.0  ;;  %v3533_v41 = vmax.f32 %v1730_v37, 0.0 }
 0x1ca   :  { %v3535_v56 = vmax.f32 %v1731_v55, 0.0  ;;  %v3537_v18 = vmax.f32 %v1732_v40, 0.0  ;;  %v3539_v1 = vmax.f32 %v1733_v35, 0.0  ;;  %v1712_v16 = vmul.f32 %v3503_v62, %v1686_v39 }
 0x1cb   :  { %v1713_v14 = vmul.f32 %v3503_v62, %v1687_v17  ;;  %v1714_v19 = vmul.f32 %v3503_v62, %v1688_v22  ;;  %v1715_v61 = vmul.f32 %v3503_v62, %v1689_v60  ;;  %v1716_v29 = vmul.f32 %v3503_v62, %v1690_v43 }
 0x1cc   :  { %v1717_v36 = vmul.f32 %v3503_v62, %v1691_v32  ;;  %v3548_v21 = vmul.f32 %v3503_v62, %v1692_v58  ;;  %v1719_v27 = vadd.f32 %v1711_v34, %v1668_v46  ;;  %v3550_v49 = vmax.f32 %v1734_v38, 0.0 }
 0x1cd   :  { %v3552_v63 = vmax.f32 %v1735_v57, 0.0  ;;  %v1745_v39 = vmul.f32 %v1744_v33, %v1736_v7  ;;  %v1746_v17 = vmul.f32 %v1744_v33, %v1737_v8  ;;  %v1747_v22 = vmul.f32 %v1744_v33, %v3533_v41 }
 0x1ce   :  { %v1748_v60 = vmul.f32 %v1744_v33, %v3535_v56  ;;  %v1749_v43 = vmul.f32 %v1744_v33, %v3537_v18  ;;  %v1750_v32 = vmul.f32 %v1744_v33, %v3539_v1  ;;  %v1720_v62 = vadd.f32 %v1712_v16, %v1669_v52 }
 0x1cf   :  { %v1721_v58 = vadd.f32 %v1713_v14, %v1670_v30  ;;  %v1722_v28 = vadd.f32 %v1714_v19, %v1671_v50  ;;  %v1723_v59 = vadd.f32 %v1715_v61, %v1672_v54  ;;  %v3560_v46 = vadd.f32 %v1716_v29, %v1673_v20 }
 0x1d0   :  { %v3562_v24 = vadd.f32 %v1717_v36, %v1674_v12  ;;  %v3565_v2 = vstv %s3525_s12  ;;  %v1778_v6 = vstv %s3523_s11  ;;  %v1751_v23 = vmul.f32 %v1744_v33, %v3550_v49 }
 0x1d1   :  { %v1752_v10 = vmul.f32 %v1744_v33, %v3552_v63  ;;  %v1753_v26 = vadd.f32 %v1745_v39, %v1702_v13  ;;  %v1754_v37 = vadd.f32 %v1746_v17, %v1703_v44  ;;  %v1755_v55 = vadd.f32 %v1747_v22, %v1704_v25 }
 0x1d2   :  { %v1756_v52 = vadd.f32 %v1748_v60, %v1705_v9  ;;  %v1757_v30 = vadd.f32 %v1749_v43, %v1706_v45  ;;  %v1758_v50 = vadd.f32 %v1750_v32, %v1707_v48  ;;  %v1779_v54 = vsub.f32 %v3796_v15, %v1778_v6 }
 0x1d3   :  { %v1780_v20 = vsub.f32 %v3797_v42, %v1778_v6  ;;  %v1781_v12 = vsub.f32 %v3798_v11, %v1778_v6  ;;  %v1782_v34 = vsub.f32 %v3799_v4, %v1778_v6  ;;  %v1783_v40 = vsub.f32 %v3800_v0, %v1778_v6 }
 0x1d4   :  { %v1784_v35 = vsub.f32 %v3801_v53, %v1778_v6  ;;  %v1785_v13 = vsub.f32 %v3802_v31, %v1778_v6  ;;  %v1786_v44 = vsub.f32 %v3803_v5, %v1778_v6  ;;  %v1787_v25 = vmax.f32 %v1779_v54, 0.0 }
 0x1d5   :  { %v1788_v9 = vmax.f32 %v1780_v20, 0.0  ;;  %v1789_v45 = vmax.f32 %v1781_v12, 0.0  ;;  %v1790_v48 = vmax.f32 %v1782_v34, 0.0  ;;  %v1759_v15 = vadd.f32 %v1751_v23, %v3514_v47 }
 0x1d6   :  { %v1791_v42 = vmax.f32 %v1783_v40, 0.0  ;;  %v3581_v11 = vmax.f32 %v1784_v35, 0.0  ;;  %v3583_v4 = vmax.f32 %v1785_v13, 0.0  ;;  %v1762_v0 = vmul.f32 %v3565_v2, %v1736_v7 }
 0x1d7   :  { %v1763_v53 = vmul.f32 %v3565_v2, %v1737_v8  ;;  %v3587_v33 = vmax.f32 %v1786_v44, 0.0  ;;  %v1795_v31 = vstv %s3558_s13  ;;  %v3593_v61 = vstv %s3568_s14 }
 0x1d8   :  { %v1796_v5 = vmul.f32 %v1795_v31, %v1787_v25  ;;  %v1797_v38 = vmul.f32 %v1795_v31, %v1788_v9  ;;  %v1798_v57 = vmul.f32 %v1795_v31, %v1789_v45  ;;  %v1799_v16 = vmul.f32 %v1795_v31, %v1790_v48 }
 0x1d9   :  { %v1800_v14 = vmul.f32 %v1795_v31, %v1791_v42  ;;  %v1801_v19 = vmul.f32 %v1795_v31, %v3581_v11  ;;  %v1802_v47 = vmul.f32 %v1795_v31, %v3583_v4  ;;  %v1760_v29 = vadd.f32 %v1752_v10, %v3516_v51 }
 0x1da   :  { %v1764_v7 = vmul.f32 %v3565_v2, %v3533_v41  ;;  %v1765_v8 = vmul.f32 %v3565_v2, %v3535_v56  ;;  %v1766_v36 = vmul.f32 %v3565_v2, %v3537_v18  ;;  %v1770_v39 = vadd.f32 %v1762_v0, %v1719_v27 }
 0x1db   :  { %v1771_v17 = vadd.f32 %v1763_v53, %v1720_v62  ;;  %v1803_v22 = vmul.f32 %v1795_v31, %v3587_v33  ;;  %v1804_v60 = vadd.f32 %v1796_v5, %v1753_v26  ;;  %v1805_v43 = vadd.f32 %v1797_v38, %v1754_v37 }
 0x1dc   :  { %v1806_v32 = vadd.f32 %v1798_v57, %v1755_v55  ;;  %v1807_v6 = vadd.f32 %v1799_v16, %v1756_v52  ;;  %v1813_v23 = vmul.f32 %v3593_v61, %v1787_v25  ;;  %v1808_v51 = vadd.f32 %v1800_v14, %v1757_v30 }
 0x1dd   :  { %v1809_v10 = vadd.f32 %v1801_v19, %v1758_v50  ;;  %v1810_v54 = vadd.f32 %v1802_v47, %v1759_v15  ;;  %v1814_v41 = vmul.f32 %v3593_v61, %v1788_v9  ;;  %v1772_v20 = vadd.f32 %v1764_v7, %v1721_v58 }
 0x1de   :  { %v1773_v56 = vadd.f32 %v1765_v8, %v1722_v28  ;;  %v1774_v12 = vadd.f32 %v1766_v36, %v1723_v59  ;;  %v1815_v18 = vmul.f32 %v3593_v61, %v1789_v45  ;;  %v1811_v27 = vadd.f32 %v1803_v22, %v1760_v29 }
 0x1df   :  { %v1816_v62 = vmul.f32 %v3593_v61, %v1790_v48  ;;  %v1817_v26 = vmul.f32 %v3593_v61, %v1791_v42  ;;  %v1821_v37 = vadd.f32 %v1813_v23, %v1770_v39  ;;  %v1829_v55 = vsub.f32 0.0, %v1804_v60 }
 0x1e0   :  { %v1830_v52 = vsub.f32 0.0, %v1805_v43  ;;  %v1831_v34 = vsub.f32 0.0, %v1806_v32  ;;  %v1832_v40 = vsub.f32 0.0, %v1807_v6  ;;  %v1822_v30 = vadd.f32 %v1814_v41, %v1771_v17 }
 0x1e1   :  { %v1833_v50 = vsub.f32 0.0, %v1808_v51  ;;  %v1834_v35 = vsub.f32 0.0, %v1809_v10  ;;  %v1835_v13 = vsub.f32 0.0, %v1810_v54  ;;  %v1823_v44 = vadd.f32 %v1815_v18, %v1772_v20 }
 0x1e2   :  { %v1837_v58 = vmul.f32 1.442695, %v1829_v55  ;;  %v1839_v28 = vmul.f32 1.442695, %v1830_v52  ;;  %v1841_v59 = vmul.f32 1.442695, %v1831_v34  ;;  %v1726_v25 = vadd.f32 %v3548_v21, %v3512_v3 }
 0x1e3   :  { %v1824_v9 = vadd.f32 %v1816_v62, %v1773_v56  ;;  %v1836_v45 = vsub.f32 0.0, %v1811_v27  ;;  %v1843_v48 = vmul.f32 1.442695, %v1832_v40  ;;  %v1825_v15 = vadd.f32 %v1817_v26, %v1774_v12 }
 0x1e4   :  { %2066 = vpow2.f32 %v1837_v58  ;;  %v1845_v42 = vmul.f32 1.442695, %v1833_v50  ;;  %v1885_v0 = vsub.f32 0.0, %v1821_v37  ;;  %v1767_v53 = vmul.f32 %v3565_v2, %v3539_v1 }
 0x1e5   :  { %2068 = vpow2.f32 %v1839_v28  ;;  %v1847_v31 = vmul.f32 1.442695, %v1834_v35  ;;  %v1886_v5 = vsub.f32 0.0, %v1822_v30  ;;  %v1768_v38 = vmul.f32 %v3565_v2, %v3550_v49 }
 0x1e6   :  { %2070 = vpow2.f32 %v1841_v59  ;;  %v1849_v57 = vmul.f32 1.442695, %v1835_v13  ;;  %v1887_v16 = vsub.f32 0.0, %v1823_v44  ;;  %v1769_v3 = vmul.f32 %v3565_v2, %v3552_v63 }
 0x1e7   :  { %2072 = vpow2.f32 %v1843_v48  ;;  %v1851_v21 = vmul.f32 1.442695, %v1836_v45  ;;  %v1888_v14 = vsub.f32 0.0, %v1824_v9  ;;  %v1889_v19 = vsub.f32 0.0, %v1825_v15 }
 0x1e8   :  { %2074 = vpow2.f32 %v1845_v42  ;;  %v1893_v47 = vmul.f32 1.442695, %v1885_v0  ;;  %v1775_v1 = vadd.f32 %v1767_v53, %v3560_v46  ;;  %v1818_v29 = vmul.f32 %v3593_v61, %v3581_v11 }
 0x1e9   :  { %2076 = vpow2.f32 %v1847_v31  ;;  %v1895_v7 = vmul.f32 1.442695, %v1886_v5  ;;  %v1776_v49 = vadd.f32 %v1768_v38, %v3562_v24  ;;  %v1819_v8 = vmul.f32 %v3593_v61, %v3583_v4 }
 0x1ea   :  { %2078 = vpow2.f32 %v1849_v57  ;;  %v1897_v63 = vmul.f32 1.442695, %v1887_v16  ;;  %v1777_v2 = vadd.f32 %v1769_v3, %v1726_v25  ;;  %v1820_v36 = vmul.f32 %v3593_v61, %v3587_v33 }
 0x1eb   :  { %2080 = vpow2.f32 %v1851_v21  ;;  %v1899_v39 = vmul.f32 1.442695, %v1888_v14  ;;  %v1901_v46 = vmul.f32 1.442695, %v1889_v19  ;;  %v1826_v17 = vadd.f32 %v1818_v29, %v1775_v1 }
 0x1ec   :  { %2082 = vpow2.f32 %v1893_v47  ;;  %v1827_v22 = vadd.f32 %v1819_v8, %v1776_v49  ;;  %v1828_v24 = vadd.f32 %v1820_v36, %v1777_v2 }
 0x1ed   :  { %2084 = vpow2.f32 %v1895_v7  ;;  %v1890_v33 = vsub.f32 0.0, %v1826_v17 }
 0x1ee   :  { %v2067_v11 = vpop.eup %2066  ;;  %2086 = vpow2.f32 %v1897_v63  ;;  %v1891_v10 = vsub.f32 0.0, %v1827_v22  ;;  %v1892_v20 = vsub.f32 0.0, %v1828_v24 }
 0x1ef   :  { %v2069_v60 = vpop.eup %2068  ;;  %v1853_v43 = vadd.f32 1.0, %v2067_v11  ;;  %2088 = vpow2.f32 %v1899_v39  ;;  %v1903_v62 = vmul.f32 1.442695, %v1890_v33 }
 0x1f0   :  { %v2071_v4 = vpop.eup %2070  ;;  %v1854_v32 = vadd.f32 1.0, %v2069_v60  ;;  %2090 = vpow2.f32 %v1901_v46  ;;  %v1905_v55 = vmul.f32 1.442695, %v1891_v10  ;;  %v1907_v34 = vmul.f32 1.442695, %v1892_v20 }
 0x1f1   :  { %v2073_v6 = vpop.eup %2072  ;;  %v1855_v23 = vadd.f32 1.0, %v2071_v4  ;;  %2092 = vrcp.f32 %v1853_v43 }
 0x1f2   :  { %v2075_v61 = vpop.eup %2074  ;;  %v1856_v51 = vadd.f32 1.0, %v2073_v6  ;;  %2094 = vrcp.f32 %v1854_v32 }
 0x1f3   :  { %v2077_v54 = vpop.eup %2076  ;;  %v1857_v41 = vadd.f32 1.0, %v2075_v61  ;;  %2096 = vrcp.f32 %v1855_v23 }
 0x1f4   :  { %v2079_v56 = vpop.eup %2078  ;;  %v1858_v12 = vadd.f32 1.0, %v2077_v54  ;;  %2098 = vrcp.f32 %v1856_v51 }
 0x1f5   :  { %v2081_v18 = vpop.eup %2080  ;;  %v1859_v27 = vadd.f32 1.0, %v2079_v56  ;;  %2100 = vrcp.f32 %v1857_v41 }
 0x1f6   :  { %v2083_v26 = vpop.eup %2082  ;;  %v1860_v37 = vadd.f32 1.0, %v2081_v18  ;;  %2102 = vrcp.f32 %v1858_v12 }
 0x1f7   :  { %v2085_v52 = vpop.eup %2084  ;;  %2104 = vrcp.f32 %v1859_v27  ;;  %v1909_v30 = vadd.f32 1.0, %v2083_v26 }
 0x1f8   :  { %v2087_v40 = vpop.eup %2086  ;;  %2106 = vrcp.f32 %v1860_v37  ;;  %v1910_v35 = vadd.f32 1.0, %v2085_v52 }
 0x1f9   :  { %v2089_v50 = vpop.eup %2088  ;;  %2108 = vpow2.f32 %v1903_v62  ;;  %v1911_v44 = vadd.f32 1.0, %v2087_v40 }
 0x1fa   :  { %v2091_v13 = vpop.eup %2090  ;;  %2110 = vpow2.f32 %v1905_v55  ;;  %v1912_v28 = vadd.f32 1.0, %v2089_v50 }
 0x1fb   :  { %v2093_v58 = vpop.eup %2092  ;;  %2112 = vpow2.f32 %v1907_v34  ;;  %v1913_v25 = vadd.f32 1.0, %v2091_v13 }
 0x1fc   :  { %v2095_v59 = vpop.eup %2094  ;;  %1877 = vst [vmem:[#allocation12] sm:$0xff] %v2093_v58  ;;  %2114 = vrcp.f32 %v1909_v30 }
 0x1fd   :  { %v2097_v9 = vpop.eup %2096  ;;  %1878 = vst [vmem:[#allocation12 + $0x8] sm:$0xff] %v2095_v59  ;;  %2116 = vrcp.f32 %v1910_v35 }
 0x1fe   :  { %v2099_v45 = vpop.eup %2098  ;;  %1879 = vst [vmem:[#allocation12 + $0x10] sm:$0xff] %v2097_v9  ;;  %2118 = vrcp.f32 %v1911_v44 }
 0x1ff   :  { %v2101_v48 = vpop.eup %2100  ;;  %1880 = vst [vmem:[#allocation12 + $0x18] sm:$0xff] %v2099_v45  ;;  %2120 = vrcp.f32 %v1912_v28 }
 0x200   :  { %v2103_v15 = vpop.eup %2102  ;;  %1881 = vst [vmem:[#allocation12 + $0x20] sm:$0xff] %v2101_v48  ;;  %2122 = vrcp.f32 %v1913_v25 }
 0x201   :  { %v2105_v42 = vpop.eup %2104  ;;  %1882 = vst [vmem:[#allocation12 + $0x28] sm:$0xff] %v2103_v15 }
 0x202   :  { %v2107_v0 = vpop.eup %2106  ;;  %1883 = vst [vmem:[#allocation12 + $0x30] sm:$0xff] %v2105_v42 }
 0x203   :  { %v2109_v53 = vpop.eup %2108  ;;  %1884 = vst [vmem:[#allocation12 + $0x38] sm:$0xff] %v2107_v0 }
 0x204   :  { %v2111_v31 = vpop.eup %2110  ;;  %v1914_v5 = vadd.f32 1.0, %v2109_v53 }
 0x205   :  { %v2113_v38 = vpop.eup %2112  ;;  %v1915_v57 = vadd.f32 1.0, %v2111_v31 }
 0x206   :  { %v2115_v16 = vpop.eup %2114  ;;  %v1916_v3 = vadd.f32 1.0, %v2113_v38  ;;  %2124 = vrcp.f32 %v1914_v5 }
 0x207   :  { %v2117_v21 = vpop.eup %2116  ;;  %2126 = vrcp.f32 %v1915_v57  ;;  %1935 = vst [vmem:[#allocation12 + $0x40] sm:$0xff] %v2115_v16 }
 0x208   :  { %v2119_v14 = vpop.eup %2118  ;;  %2128 = vrcp.f32 %v1916_v3  ;;  %1936 = vst [vmem:[#allocation12 + $0x48] sm:$0xff] %v2117_v21 }
 0x209   :  { %v2121_v19 = vpop.eup %2120  ;;  %1937 = vst [vmem:[#allocation12 + $0x50] sm:$0xff] %v2119_v14 }
 0x20a   :  { %v2123_v47 = vpop.eup %2122  ;;  %1938 = vst [vmem:[#allocation12 + $0x58] sm:$0xff] %v2121_v19 }
 0x20b   :  { %1939 = vst [vmem:[#allocation12 + $0x60] sm:$0xff] %v2123_v47 }
 0x210   :  { %v2125_v1 = vpop.eup %2124 }
 0x211   :  { %v2127_v29 = vpop.eup %2126  ;;  %1940 = vst [vmem:[#allocation12 + $0x68] sm:$0xff] %v2125_v1 }
 0x212   :  { %v2129_v7 = vpop.eup %2128  ;;  %1941 = vst [vmem:[#allocation12 + $0x70] sm:$0xff] %v2127_v29 }
 0x213   :  { %1942 = vst [vmem:[#allocation12 + $0x78] sm:$0xff] %v2129_v7 }
 0x214   :  { %2217 = shalt.err (!%p2214_p2)
}
 0x215   :  { %s2218_s17 = scalar_lea.hbm %s3644_s5, 2048 }
 0x216   :  { %p2219_p3 = scmp.ne.s32.totalorder %s3644_s5, %s2218_s17  ;;  %p2222_p4 = scmp.lt.u32.totalorder %s2218_s17, %s3644_s5 }
 0x218   :  { %p2224_p5 = pnand %p2222_p4, %p2219_p3 }
 0x21a   :  { %2227 = shalt.err (!%p2224_p5)
}
 0x21b   :  { %1954 = dma.vmem_to_hbm [thread:$0]  %s1949_s1, 2048, %s3644_s5, [#allocation4], %s2243_s24, %s2243_s24, %s2244_s25  }
 0x21c   :  { %2236 = dma.done.wait [#allocation4], 2048  }
 0x21d   :  { %2237 = vsyncadd [#allocation4], 4294965248 }
 0x21e   :  { %1958 = vsyncpa [#allocation3], 1 }
 0x21f   :  { %1959 = vsyncpa [#allocation4], 1 }
 0x220   :  { %1960 = vsyncpa [#allocation5], 1 }
 0x221   :  { %1961 = vsyncpa [#allocation6], 1 }
 0x222   :  { %1962 = vsyncpa [#allocation9], 1 }

</bundles_post_ra>
